<compile_context>
chip_gen: v6e
topology: v6e:2x2x1
jax: 0.10.0
libtpu: 0.0.40
codegen_flags: <defaults>
</compile_context>

<pallas_src>
import numpy as np
import jax
import jax.numpy as jnp
from jax.experimental import pallas as pl
from jax.experimental.pallas import tpu as pltpu

# ----------------------------------------------------------------------------
# Static geometry implied by the PyTorch module (fc1 expects 12*5*5 -> 28x28 in)
# ----------------------------------------------------------------------------
H0 = W0 = 28
K1, C1 = 5, 6            # conv1: 5x5, 1 -> 6
H1 = W1 = H0 - K1 + 1    # 24
P1 = H1 // 2             # 12 after pool1
K2, C2 = 3, 12           # conv2: 3x3, 6 -> 12
H2 = W2 = P1 - K2 + 1    # 10
P2 = H2 // 2             # 5 after pool2
NF = C2 * P2 * P2        # 300
NOUT = 10
EPS = 1e-5


# ----------------------------------------------------------------------------
# Fused kernel: everything in VMEM, only 2D MXU matmuls + VPU elementwise.
# ----------------------------------------------------------------------------
def mynet_kernel(x_ref, r1_ref, r2_ref, sp1_ref, sq1_ref, sp2_ref, sq2_ref,
                 m1_ref, m2_ref, gb1_ref, gb2_ref, wfr_ref, bf_ref, o_ref):
    B = x_ref.shape[0]

    def dot(a, b):
        return jnp.dot(a, b, preferred_element_type=jnp.float32)

    def bn_affine(ys, m_ref, gbl_ref, n):
        """Training-mode BN: one-pass stats, channel reduce+broadcast on MXU.

        Returns lane-wide (1, lanes) scale/shift so BN is a single FMA later.
        """
        s = jnp.sum(ys[0], axis=0, keepdims=True)
        q = jnp.sum(ys[0] * ys[0], axis=0, keepdims=True)
        for yb in ys[1:]:
            s = s + jnp.sum(yb, axis=0, keepdims=True)
            q = q + jnp.sum(yb * yb, axis=0, keepdims=True)
        inv_n = 1.0 / n
        mean = dot(s, m_ref[...]) * inv_n                  # per-channel, lane-wide
        ex2 = dot(q, m_ref[...]) * inv_n
        var = jnp.maximum(ex2 - mean * mean, 0.0)          # biased variance
        scale = gbl_ref[0:1, :] * jax.lax.rsqrt(var + EPS)
        shift = gbl_ref[1:2, :] - mean * scale
        return scale, shift

    def pool2x2(a, sp_ref, sq_ref):
        """Exact 2x2 max-pool via one-hot column/row gather matmuls."""
        tw = jnp.maximum(dot(a, sp_ref[0]), dot(a, sp_ref[1]))
        return jnp.maximum(dot(sq_ref[0], tw), dot(sq_ref[1], tw))

    # ---- conv1 via banded matmuls: y1[b] is (24, 144), lane = ow*6 + co ----
    y1 = []
    for b in range(B):
        xb = x_ref[b]                                      # (28, 28), loaded once
        acc = dot(xb[0:H1, :], r1_ref[0])
        for kh in range(1, K1):
            acc = acc + dot(xb[kh:kh + H1, :], r1_ref[kh])
        y1.append(acc)

    # ---- BN1 (batch stats) + ReLU + maxpool1 -> (12, 72), lane = j*6 + c ----
    sc1, sh1 = bn_affine(y1, m1_ref, gb1_ref, float(B * H1 * W1))
    p1 = [pool2x2(jnp.maximum(y1[b] * sc1 + sh1, 0.0), sp1_ref, sq1_ref)
          for b in range(B)]

    # ---- conv2 via banded matmuls: y2[b] is (10, 120), lane = ow*12 + co ----
    y2 = []
    for b in range(B):
        acc = dot(p1[b][0:H2, :], r2_ref[0])
        for kh in range(1, K2):
            acc = acc + dot(p1[b][kh:kh + H2, :], r2_ref[kh])
        y2.append(acc)

    # ---- BN2 (no ReLU in the reference forward) + maxpool2 + fc1 ------------
    sc2, sh2 = bn_affine(y2, m2_ref, gb2_ref, float(B * H2 * W2))
    bf = bf_ref[...]                                       # (1, 10)
    for b in range(B):
        p2 = pool2x2(y2[b] * sc2 + sh2, sp2_ref, sq2_ref)  # (5, 60)
        out = bf
        for i in range(P2):                                # contract row i
            out = out + dot(p2[i:i + 1, :], wfr_ref[i])    # (1,60) @ (60,10)
        o_ref[b:b + 1, :] = out


# ----------------------------------------------------------------------------
# Shape-only constants (selection / channel-broadcast matrices), built once.
# ----------------------------------------------------------------------------
def _pool_cols(width, channels):
    """SP[dw, (2j+dw)*C + c, j*C + c] = 1 : stride-2 lane gather on (H, W*C)."""
    sp = np.zeros((2, width * channels, (width // 2) * channels), np.float32)
    for dw in range(2):
        for j in range(width // 2):
            for c in range(channels):
                sp[dw, (2 * j + dw) * channels + c, j * channels + c] = 1.0
    return sp


def _pool_rows(height):
    """SQ[dh, i, 2i+dh] = 1 : stride-2 sublane gather."""
    sq = np.zeros((2, height // 2, height), np.float32)
    for dh in range(2):
        for i in range(height // 2):
            sq[dh, i, 2 * i + dh] = 1.0
    return sq


def _chan_broadcast(width, channels):
    """M[w1*C+c1, w2*C+c2] = (c1 == c2): per-channel sum-and-broadcast."""
    expand = np.tile(np.eye(channels, dtype=np.float32), width)   # (C, W*C)
    return expand.T @ expand                                       # (W*C, W*C)


def _onehot_band(ksize, in_size, out_size):
    """(kw, p, ow) one-hot with 1 where p == ow + kw (valid-conv band)."""
    kw = np.arange(ksize)[:, None, None]
    p = np.arange(in_size)[None, :, None]
    ow = np.arange(out_size)[None, None, :]
    return (p == ow + kw).astype(np.float32)


_CONSTS = {
    "sp1": _pool_cols(H1, C1),          # (2, 144, 72)
    "sq1": _pool_rows(H1),              # (2, 12, 24)
    "sp2": _pool_cols(H2, C2),          # (2, 120, 60)
    "sq2": _pool_rows(H2),              # (2, 5, 10)
    "m1": _chan_broadcast(W1, C1),      # (144, 144)
    "m2": _chan_broadcast(W2, C2),      # (120, 120)
}


# ----------------------------------------------------------------------------
# Parameters (PyTorch layout) and one-time packing into kernel inputs.
# ----------------------------------------------------------------------------
def init_params(key):
    ks = jax.random.split(key, 10)
    return {
        "w1": 0.1 * jax.random.normal(ks[0], (C1, 1, K1, K1), jnp.float32),
        "b1": 0.1 * jax.random.normal(ks[1], (C1,), jnp.float32),
        "g1": 1.0 + 0.1 * jax.random.normal(ks[2], (C1,), jnp.float32),
        "be1": 0.1 * jax.random.normal(ks[3], (C1,), jnp.float32),
        "w2": 0.05 * jax.random.normal(ks[4], (C2, C1, K2, K2), jnp.float32),
        "b2": 0.1 * jax.random.normal(ks[5], (C2,), jnp.float32),
        "g2": 1.0 + 0.1 * jax.random.normal(ks[6], (C2,), jnp.float32),
        "be2": 0.1 * jax.random.normal(ks[7], (C2,), jnp.float32),
        "wf": 0.05 * jax.random.normal(ks[8], (NOUT, NF), jnp.float32),
        "bf": 0.05 * jax.random.normal(ks[9], (NOUT,), jnp.float32),
    }


def pack_params(params):
    """One-time rearrangement of PyTorch-layout weights into kernel inputs.

    Conv biases (b1, b2) are intentionally dropped: training-mode BatchNorm
    subtracts the per-channel batch mean, so a constant per-channel bias
    before BN cancels exactly (variance is also unchanged).
    """
    # conv1 banded weights: R1[kh, p, ow*6+co] = w1[co, 0, kh, p-ow]
    band1 = jnp.asarray(_onehot_band(K1, W0, W1))              # (5, 28, 24)
    wt1 = jnp.transpose(params["w1"][:, 0], (1, 2, 0))         # (kh, kw, co)
    r1 = jnp.einsum("kpw,hkc->hpwc", band1, wt1).reshape(K1, W0, W1 * C1)

    # conv2 banded weights: R2[kh, wi*6+ci, ow*12+co] = w2[co, ci, kh, wi-ow]
    band2 = jnp.asarray(_onehot_band(K2, P1, W2))              # (3, 12, 10)
    wt2 = jnp.transpose(params["w2"], (2, 3, 1, 0))            # (kh, kw, ci, co)
    r2 = jnp.einsum("kwo,hkcd->hwcod", band2, wt2).reshape(K2, P1 * C1, W2 * C2)

    # fc1 weight permuted so the pooled (i, j*12+co) slab is consumed directly,
    # matching PyTorch's x.view(B, -1) order (co, i, j).
    wf4 = params["wf"].reshape(NOUT, C2, P2, P2)               # (o, co, i, j)
    wfr = jnp.transpose(wf4, (2, 3, 1, 0)).reshape(P2, P2 * C2, NOUT)

    kp = {
        "r1": r1, "r2": r2, "wfr": wfr,
        # gamma/beta pre-tiled to lane width (lane = w*C + c).
        "gb1": jnp.stack([jnp.tile(params["g1"], W1),
                          jnp.tile(params["be1"], W1)]),       # (2, 144)
        "gb2": jnp.stack([jnp.tile(params["g2"], W2),
                          jnp.tile(params["be2"], W2)]),       # (2, 120)
        "bf": params["bf"].reshape(1, NOUT),                   # (1, 10)
    }
    kp.update({k: jnp.asarray(v) for k, v in _CONSTS.items()})
    return kp


# ----------------------------------------------------------------------------
# Forward: one fused pallas_call (no grid, everything VMEM-resident).
# ----------------------------------------------------------------------------
@jax.jit
def mynet_forward(x_nchw, kp):
    B = x_nchw.shape[0]
    x3 = x_nchw.reshape(B, H0, W0).astype(jnp.float32)
    inputs = (x3, kp["r1"], kp["r2"], kp["sp1"], kp["sq1"], kp["sp2"], kp["sq2"],
              kp["m1"], kp["m2"], kp["gb1"], kp["gb2"], kp["wfr"], kp["bf"])
    return pl.pallas_call(
        mynet_kernel,
        out_shape=jax.ShapeDtypeStruct((B, NOUT), jnp.float32),
        in_specs=[pl.BlockSpec(memory_space=pltpu.MemorySpace.VMEM)] * len(inputs),
        out_specs=pl.BlockSpec(memory_space=pltpu.MemorySpace.VMEM),
    )(*inputs)


# ----------------------------------------------------------------------------
# Pure-JAX reference (same semantics, *with* conv biases) for a sanity check.
# ----------------------------------------------------------------------------
def reference_forward(x_nchw, params):
    x = x_nchw.astype(jnp.float32)

    def conv(x, w, b):
        y = jax.lax.conv_general_dilated(
            x, w, (1, 1), "VALID",
            dimension_numbers=("NCHW", "OIHW", "NCHW"),
            precision=jax.lax.Precision.HIGHEST)
        return y + b.reshape(1, -1, 1, 1)

    def bn(x, g, b):
        m = jnp.mean(x, axis=(0, 2, 3), keepdims=True)
        v = jnp.var(x, axis=(0, 2, 3), keepdims=True)
        return (x - m) * jax.lax.rsqrt(v + EPS) * g.reshape(1, -1, 1, 1) \
            + b.reshape(1, -1, 1, 1)

    def pool(x):
        return jax.lax.reduce_window(x, -jnp.inf, jax.lax.max,
                                     (1, 1, 2, 2), (1, 1, 2, 2), "VALID")

    y = pool(jax.nn.relu(bn(conv(x, params["w1"], params["b1"]),
                            params["g1"], params["be1"])))
    y = pool(bn(conv(y, params["w2"], params["b2"]),
                params["g2"], params["be2"]))
    feat = y.reshape(x.shape[0], -1)
    return jnp.dot(feat, params["wf"].T,
                   precision=jax.lax.Precision.HIGHEST) + params["bf"]


if __name__ == "__main__":
    key = jax.random.PRNGKey(0)
    kx, kparam = jax.random.split(key)
    x = jax.random.normal(kx, (2, 1, H0, W0), jnp.float32)
    params = init_params(kparam)
    kernel_inputs = pack_params(params)

    out = jax.block_until_ready(mynet_forward(x, kernel_inputs))
    assert out.shape == (2, NOUT) and out.dtype == jnp.float32

    ref = reference_forward(x, params)
    max_err = float(jnp.max(jnp.abs(out - ref)))
    assert jnp.allclose(out, ref, rtol=1e-2, atol=1e-2), max_err

    print("KERNEL_OK")
</pallas_src>

<mosaic_0001>
module attributes {stable_mosaic.version = 11 : i64} {
  func.func @mynet_kernel(%arg0: memref<2x28x28xf32, #tpu.memory_space<vmem>>, %arg1: memref<5x28x144xf32, #tpu.memory_space<vmem>>, %arg2: memref<3x72x120xf32, #tpu.memory_space<vmem>>, %arg3: memref<2x144x72xf32, #tpu.memory_space<vmem>>, %arg4: memref<2x12x24xf32, #tpu.memory_space<vmem>>, %arg5: memref<2x120x60xf32, #tpu.memory_space<vmem>>, %arg6: memref<2x5x10xf32, #tpu.memory_space<vmem>>, %arg7: memref<144x144xf32, #tpu.memory_space<vmem>>, %arg8: memref<120x120xf32, #tpu.memory_space<vmem>>, %arg9: memref<2x144xf32, #tpu.memory_space<vmem>>, %arg10: memref<2x120xf32, #tpu.memory_space<vmem>>, %arg11: memref<5x60x10xf32, #tpu.memory_space<vmem>>, %arg12: memref<1x10xf32, #tpu.memory_space<vmem>>, %arg13: memref<2x10xf32, #tpu.memory_space<vmem>>) attributes {dimension_semantics = [], scalar_prefetch = 0 : i64, scratch_operands = 0 : i64, tpu.core_type = #tpu.core_type<tc>} {
    %c0 = arith.constant 0 : index
    %c0_0 = arith.constant 0 : index
    %c0_1 = arith.constant 0 : index
    %0 = vector.load %arg0[%c0, %c0_0, %c0_1] : memref<2x28x28xf32, #tpu.memory_space<vmem>>, vector<1x28x28xf32>
    %1 = vector.shape_cast %0 : vector<1x28x28xf32> to vector<28x28xf32>
    %2 = vector.extract_strided_slice %1 {offsets = [0, 0], sizes = [24, 28], strides = [1, 1]} : vector<28x28xf32> to vector<24x28xf32>
    %c0_2 = arith.constant 0 : index
    %c0_3 = arith.constant 0 : index
    %c0_4 = arith.constant 0 : index
    %3 = vector.load %arg1[%c0_2, %c0_3, %c0_4] : memref<5x28x144xf32, #tpu.memory_space<vmem>>, vector<1x28x144xf32>
    %4 = vector.shape_cast %3 : vector<1x28x144xf32> to vector<28x144xf32>
    %cst = arith.constant dense<0.000000e+00> : vector<24x144xf32>
    %5 = tpu.matmul %2, %4, %cst {dimension_numbers = #tpu.dot_dimension_numbers<[1], [0], [0], [1], [0, 0, 1, 1], [], []>} : vector<24x28xf32>, vector<28x144xf32>, vector<24x144xf32> -> vector<24x144xf32>
    %6 = vector.extract_strided_slice %1 {offsets = [1, 0], sizes = [24, 28], strides = [1, 1]} : vector<28x28xf32> to vector<24x28xf32>
    %c1 = arith.constant 1 : index
    %c0_5 = arith.constant 0 : index
    %c0_6 = arith.constant 0 : index
    %7 = vector.load %arg1[%c1, %c0_5, %c0_6] : memref<5x28x144xf32, #tpu.memory_space<vmem>>, vector<1x28x144xf32>
    %8 = vector.shape_cast %7 : vector<1x28x144xf32> to vector<28x144xf32>
    %cst_7 = arith.constant dense<0.000000e+00> : vector<24x144xf32>
    %9 = tpu.matmul %6, %8, %cst_7 {dimension_numbers = #tpu.dot_dimension_numbers<[1], [0], [0], [1], [0, 0, 1, 1], [], []>} : vector<24x28xf32>, vector<28x144xf32>, vector<24x144xf32> -> vector<24x144xf32>
    %10 = arith.addf %5, %9 : vector<24x144xf32>
    %11 = vector.extract_strided_slice %1 {offsets = [2, 0], sizes = [24, 28], strides = [1, 1]} : vector<28x28xf32> to vector<24x28xf32>
    %c2 = arith.constant 2 : index
    %c0_8 = arith.constant 0 : index
    %c0_9 = arith.constant 0 : index
    %12 = vector.load %arg1[%c2, %c0_8, %c0_9] : memref<5x28x144xf32, #tpu.memory_space<vmem>>, vector<1x28x144xf32>
    %13 = vector.shape_cast %12 : vector<1x28x144xf32> to vector<28x144xf32>
    %cst_10 = arith.constant dense<0.000000e+00> : vector<24x144xf32>
    %14 = tpu.matmul %11, %13, %cst_10 {dimension_numbers = #tpu.dot_dimension_numbers<[1], [0], [0], [1], [0, 0, 1, 1], [], []>} : vector<24x28xf32>, vector<28x144xf32>, vector<24x144xf32> -> vector<24x144xf32>
    %15 = arith.addf %10, %14 : vector<24x144xf32>
    %16 = vector.extract_strided_slice %1 {offsets = [3, 0], sizes = [24, 28], strides = [1, 1]} : vector<28x28xf32> to vector<24x28xf32>
    %c3 = arith.constant 3 : index
    %c0_11 = arith.constant 0 : index
    %c0_12 = arith.constant 0 : index
    %17 = vector.load %arg1[%c3, %c0_11, %c0_12] : memref<5x28x144xf32, #tpu.memory_space<vmem>>, vector<1x28x144xf32>
    %18 = vector.shape_cast %17 : vector<1x28x144xf32> to vector<28x144xf32>
    %cst_13 = arith.constant dense<0.000000e+00> : vector<24x144xf32>
    %19 = tpu.matmul %16, %18, %cst_13 {dimension_numbers = #tpu.dot_dimension_numbers<[1], [0], [0], [1], [0, 0, 1, 1], [], []>} : vector<24x28xf32>, vector<28x144xf32>, vector<24x144xf32> -> vector<24x144xf32>
    %20 = arith.addf %15, %19 : vector<24x144xf32>
    %21 = vector.extract_strided_slice %1 {offsets = [4, 0], sizes = [24, 28], strides = [1, 1]} : vector<28x28xf32> to vector<24x28xf32>
    %c4 = arith.constant 4 : index
    %c0_14 = arith.constant 0 : index
    %c0_15 = arith.constant 0 : index
    %22 = vector.load %arg1[%c4, %c0_14, %c0_15] : memref<5x28x144xf32, #tpu.memory_space<vmem>>, vector<1x28x144xf32>
    %23 = vector.shape_cast %22 : vector<1x28x144xf32> to vector<28x144xf32>
    %cst_16 = arith.constant dense<0.000000e+00> : vector<24x144xf32>
    %24 = tpu.matmul %21, %23, %cst_16 {dimension_numbers = #tpu.dot_dimension_numbers<[1], [0], [0], [1], [0, 0, 1, 1], [], []>} : vector<24x28xf32>, vector<28x144xf32>, vector<24x144xf32> -> vector<24x144xf32>
    %25 = arith.addf %20, %24 : vector<24x144xf32>
    %c1_17 = arith.constant 1 : index
    %c0_18 = arith.constant 0 : index
    %c0_19 = arith.constant 0 : index
    %26 = vector.load %arg0[%c1_17, %c0_18, %c0_19] : memref<2x28x28xf32, #tpu.memory_space<vmem>>, vector<1x28x28xf32>
    %27 = vector.shape_cast %26 : vector<1x28x28xf32> to vector<28x28xf32>
    %28 = vector.extract_strided_slice %27 {offsets = [0, 0], sizes = [24, 28], strides = [1, 1]} : vector<28x28xf32> to vector<24x28xf32>
    %c0_20 = arith.constant 0 : index
    %c0_21 = arith.constant 0 : index
    %c0_22 = arith.constant 0 : index
    %29 = vector.load %arg1[%c0_20, %c0_21, %c0_22] : memref<5x28x144xf32, #tpu.memory_space<vmem>>, vector<1x28x144xf32>
    %30 = vector.shape_cast %29 : vector<1x28x144xf32> to vector<28x144xf32>
    %cst_23 = arith.constant dense<0.000000e+00> : vector<24x144xf32>
    %31 = tpu.matmul %28, %30, %cst_23 {dimension_numbers = #tpu.dot_dimension_numbers<[1], [0], [0], [1], [0, 0, 1, 1], [], []>} : vector<24x28xf32>, vector<28x144xf32>, vector<24x144xf32> -> vector<24x144xf32>
    %32 = vector.extract_strided_slice %27 {offsets = [1, 0], sizes = [24, 28], strides = [1, 1]} : vector<28x28xf32> to vector<24x28xf32>
    %c1_24 = arith.constant 1 : index
    %c0_25 = arith.constant 0 : index
    %c0_26 = arith.constant 0 : index
    %33 = vector.load %arg1[%c1_24, %c0_25, %c0_26] : memref<5x28x144xf32, #tpu.memory_space<vmem>>, vector<1x28x144xf32>
    %34 = vector.shape_cast %33 : vector<1x28x144xf32> to vector<28x144xf32>
    %cst_27 = arith.constant dense<0.000000e+00> : vector<24x144xf32>
    %35 = tpu.matmul %32, %34, %cst_27 {dimension_numbers = #tpu.dot_dimension_numbers<[1], [0], [0], [1], [0, 0, 1, 1], [], []>} : vector<24x28xf32>, vector<28x144xf32>, vector<24x144xf32> -> vector<24x144xf32>
    %36 = arith.addf %31, %35 : vector<24x144xf32>
    %37 = vector.extract_strided_slice %27 {offsets = [2, 0], sizes = [24, 28], strides = [1, 1]} : vector<28x28xf32> to vector<24x28xf32>
    %c2_28 = arith.constant 2 : index
    %c0_29 = arith.constant 0 : index
    %c0_30 = arith.constant 0 : index
    %38 = vector.load %arg1[%c2_28, %c0_29, %c0_30] : memref<5x28x144xf32, #tpu.memory_space<vmem>>, vector<1x28x144xf32>
    %39 = vector.shape_cast %38 : vector<1x28x144xf32> to vector<28x144xf32>
    %cst_31 = arith.constant dense<0.000000e+00> : vector<24x144xf32>
    %40 = tpu.matmul %37, %39, %cst_31 {dimension_numbers = #tpu.dot_dimension_numbers<[1], [0], [0], [1], [0, 0, 1, 1], [], []>} : vector<24x28xf32>, vector<28x144xf32>, vector<24x144xf32> -> vector<24x144xf32>
    %41 = arith.addf %36, %40 : vector<24x144xf32>
    %42 = vector.extract_strided_slice %27 {offsets = [3, 0], sizes = [24, 28], strides = [1, 1]} : vector<28x28xf32> to vector<24x28xf32>
    %c3_32 = arith.constant 3 : index
    %c0_33 = arith.constant 0 : index
    %c0_34 = arith.constant 0 : index
    %43 = vector.load %arg1[%c3_32, %c0_33, %c0_34] : memref<5x28x144xf32, #tpu.memory_space<vmem>>, vector<1x28x144xf32>
    %44 = vector.shape_cast %43 : vector<1x28x144xf32> to vector<28x144xf32>
    %cst_35 = arith.constant dense<0.000000e+00> : vector<24x144xf32>
    %45 = tpu.matmul %42, %44, %cst_35 {dimension_numbers = #tpu.dot_dimension_numbers<[1], [0], [0], [1], [0, 0, 1, 1], [], []>} : vector<24x28xf32>, vector<28x144xf32>, vector<24x144xf32> -> vector<24x144xf32>
    %46 = arith.addf %41, %45 : vector<24x144xf32>
    %47 = vector.extract_strided_slice %27 {offsets = [4, 0], sizes = [24, 28], strides = [1, 1]} : vector<28x28xf32> to vector<24x28xf32>
    %c4_36 = arith.constant 4 : index
    %c0_37 = arith.constant 0 : index
    %c0_38 = arith.constant 0 : index
    %48 = vector.load %arg1[%c4_36, %c0_37, %c0_38] : memref<5x28x144xf32, #tpu.memory_space<vmem>>, vector<1x28x144xf32>
    %49 = vector.shape_cast %48 : vector<1x28x144xf32> to vector<28x144xf32>
    %cst_39 = arith.constant dense<0.000000e+00> : vector<24x144xf32>
    %50 = tpu.matmul %47, %49, %cst_39 {dimension_numbers = #tpu.dot_dimension_numbers<[1], [0], [0], [1], [0, 0, 1, 1], [], []>} : vector<24x28xf32>, vector<28x144xf32>, vector<24x144xf32> -> vector<24x144xf32>
    %51 = arith.addf %46, %50 : vector<24x144xf32>
    %cst_40 = arith.constant dense<0.000000e+00> : vector<144xf32>
    %52 = vector.multi_reduction <add>, %25, %cst_40 [0] : vector<24x144xf32> to vector<144xf32>
    %53 = vector.shape_cast %52 : vector<144xf32> to vector<1x144xf32>
    %54 = arith.mulf %25, %25 : vector<24x144xf32>
    %cst_41 = arith.constant dense<0.000000e+00> : vector<144xf32>
    %55 = vector.multi_reduction <add>, %54, %cst_41 [0] : vector<24x144xf32> to vector<144xf32>
    %56 = vector.shape_cast %55 : vector<144xf32> to vector<1x144xf32>
    %cst_42 = arith.constant dense<0.000000e+00> : vector<144xf32>
    %57 = vector.multi_reduction <add>, %51, %cst_42 [0] : vector<24x144xf32> to vector<144xf32>
    %58 = vector.shape_cast %57 : vector<144xf32> to vector<1x144xf32>
    %59 = arith.addf %53, %58 : vector<1x144xf32>
    %60 = arith.mulf %51, %51 : vector<24x144xf32>
    %cst_43 = arith.constant dense<0.000000e+00> : vector<144xf32>
    %61 = vector.multi_reduction <add>, %60, %cst_43 [0] : vector<24x144xf32> to vector<144xf32>
    %62 = vector.shape_cast %61 : vector<144xf32> to vector<1x144xf32>
    %63 = arith.addf %56, %62 : vector<1x144xf32>
    %c0_44 = arith.constant 0 : index
    %c0_45 = arith.constant 0 : index
    %64 = vector.load %arg7[%c0_44, %c0_45] : memref<144x144xf32, #tpu.memory_space<vmem>>, vector<144x144xf32>
    %cst_46 = arith.constant dense<0.000000e+00> : vector<1x144xf32>
    %65 = tpu.matmul %59, %64, %cst_46 {dimension_numbers = #tpu.dot_dimension_numbers<[1], [0], [0], [1], [0, 0, 1, 1], [], []>} : vector<1x144xf32>, vector<144x144xf32>, vector<1x144xf32> -> vector<1x144xf32>
    %cst_47 = arith.constant 8.68055562E-4 : f32
    %66 = vector.broadcast %cst_47 : f32 to vector<1x144xf32>
    %67 = arith.mulf %65, %66 : vector<1x144xf32>
    %c0_48 = arith.constant 0 : index
    %c0_49 = arith.constant 0 : index
    %68 = vector.load %arg7[%c0_48, %c0_49] : memref<144x144xf32, #tpu.memory_space<vmem>>, vector<144x144xf32>
    %cst_50 = arith.constant dense<0.000000e+00> : vector<1x144xf32>
    %69 = tpu.matmul %63, %68, %cst_50 {dimension_numbers = #tpu.dot_dimension_numbers<[1], [0], [0], [1], [0, 0, 1, 1], [], []>} : vector<1x144xf32>, vector<144x144xf32>, vector<1x144xf32> -> vector<1x144xf32>
    %cst_51 = arith.constant 8.68055562E-4 : f32
    %70 = vector.broadcast %cst_51 : f32 to vector<1x144xf32>
    %71 = arith.mulf %69, %70 : vector<1x144xf32>
    %72 = arith.mulf %67, %67 : vector<1x144xf32>
    %73 = arith.subf %71, %72 : vector<1x144xf32>
    %cst_52 = arith.constant 0.000000e+00 : f32
    %74 = vector.broadcast %cst_52 : f32 to vector<1x144xf32>
    %75 = arith.maximumf %73, %74 : vector<1x144xf32>
    %c0_53 = arith.constant 0 : index
    %c0_54 = arith.constant 0 : index
    %76 = vector.load %arg9[%c0_53, %c0_54] : memref<2x144xf32, #tpu.memory_space<vmem>>, vector<1x144xf32>
    %cst_55 = arith.constant 9.99999974E-6 : f32
    %77 = vector.broadcast %cst_55 : f32 to vector<1x144xf32>
    %78 = arith.addf %75, %77 : vector<1x144xf32>
    %79 = math.rsqrt %78 : vector<1x144xf32>
    %80 = arith.mulf %76, %79 : vector<1x144xf32>
    %c1_56 = arith.constant 1 : index
    %c0_57 = arith.constant 0 : index
    %81 = vector.load %arg9[%c1_56, %c0_57] : memref<2x144xf32, #tpu.memory_space<vmem>>, vector<1x144xf32>
    %82 = arith.mulf %67, %80 : vector<1x144xf32>
    %83 = arith.subf %81, %82 : vector<1x144xf32>
    %84 = vector.broadcast %80 : vector<1x144xf32> to vector<24x144xf32>
    %85 = arith.mulf %25, %84 : vector<24x144xf32>
    %86 = vector.broadcast %83 : vector<1x144xf32> to vector<24x144xf32>
    %87 = arith.addf %85, %86 : vector<24x144xf32>
    %cst_58 = arith.constant 0.000000e+00 : f32
    %88 = vector.broadcast %cst_58 : f32 to vector<24x144xf32>
    %89 = arith.maximumf %87, %88 : vector<24x144xf32>
    %c0_59 = arith.constant 0 : index
    %c0_60 = arith.constant 0 : index
    %c0_61 = arith.constant 0 : index
    %90 = vector.load %arg3[%c0_59, %c0_60, %c0_61] : memref<2x144x72xf32, #tpu.memory_space<vmem>>, vector<1x144x72xf32>
    %91 = vector.shape_cast %90 : vector<1x144x72xf32> to vector<144x72xf32>
    %cst_62 = arith.constant dense<0.000000e+00> : vector<24x72xf32>
    %92 = tpu.matmul %89, %91, %cst_62 {dimension_numbers = #tpu.dot_dimension_numbers<[1], [0], [0], [1], [0, 0, 1, 1], [], []>} : vector<24x144xf32>, vector<144x72xf32>, vector<24x72xf32> -> vector<24x72xf32>
    %c1_63 = arith.constant 1 : index
    %c0_64 = arith.constant 0 : index
    %c0_65 = arith.constant 0 : index
    %93 = vector.load %arg3[%c1_63, %c0_64, %c0_65] : memref<2x144x72xf32, #tpu.memory_space<vmem>>, vector<1x144x72xf32>
    %94 = vector.shape_cast %93 : vector<1x144x72xf32> to vector<144x72xf32>
    %cst_66 = arith.constant dense<0.000000e+00> : vector<24x72xf32>
    %95 = tpu.matmul %89, %94, %cst_66 {dimension_numbers = #tpu.dot_dimension_numbers<[1], [0], [0], [1], [0, 0, 1, 1], [], []>} : vector<24x144xf32>, vector<144x72xf32>, vector<24x72xf32> -> vector<24x72xf32>
    %96 = arith.maximumf %92, %95 : vector<24x72xf32>
    %c0_67 = arith.constant 0 : index
    %c0_68 = arith.constant 0 : index
    %c0_69 = arith.constant 0 : index
    %97 = vector.load %arg4[%c0_67, %c0_68, %c0_69] : memref<2x12x24xf32, #tpu.memory_space<vmem>>, vector<1x12x24xf32>
    %98 = vector.shape_cast %97 : vector<1x12x24xf32> to vector<12x24xf32>
    %cst_70 = arith.constant dense<0.000000e+00> : vector<12x72xf32>
    %99 = tpu.matmul %98, %96, %cst_70 {dimension_numbers = #tpu.dot_dimension_numbers<[1], [0], [0], [1], [0, 0, 1, 1], [], []>} : vector<12x24xf32>, vector<24x72xf32>, vector<12x72xf32> -> vector<12x72xf32>
    %c1_71 = arith.constant 1 : index
    %c0_72 = arith.constant 0 : index
    %c0_73 = arith.constant 0 : index
    %100 = vector.load %arg4[%c1_71, %c0_72, %c0_73] : memref<2x12x24xf32, #tpu.memory_space<vmem>>, vector<1x12x24xf32>
    %101 = vector.shape_cast %100 : vector<1x12x24xf32> to vector<12x24xf32>
    %cst_74 = arith.constant dense<0.000000e+00> : vector<12x72xf32>
    %102 = tpu.matmul %101, %96, %cst_74 {dimension_numbers = #tpu.dot_dimension_numbers<[1], [0], [0], [1], [0, 0, 1, 1], [], []>} : vector<12x24xf32>, vector<24x72xf32>, vector<12x72xf32> -> vector<12x72xf32>
    %103 = arith.maximumf %99, %102 : vector<12x72xf32>
    %104 = vector.broadcast %80 : vector<1x144xf32> to vector<24x144xf32>
    %105 = arith.mulf %51, %104 : vector<24x144xf32>
    %106 = vector.broadcast %83 : vector<1x144xf32> to vector<24x144xf32>
    %107 = arith.addf %105, %106 : vector<24x144xf32>
    %cst_75 = arith.constant 0.000000e+00 : f32
    %108 = vector.broadcast %cst_75 : f32 to vector<24x144xf32>
    %109 = arith.maximumf %107, %108 : vector<24x144xf32>
    %c0_76 = arith.constant 0 : index
    %c0_77 = arith.constant 0 : index
    %c0_78 = arith.constant 0 : index
    %110 = vector.load %arg3[%c0_76, %c0_77, %c0_78] : memref<2x144x72xf32, #tpu.memory_space<vmem>>, vector<1x144x72xf32>
    %111 = vector.shape_cast %110 : vector<1x144x72xf32> to vector<144x72xf32>
    %cst_79 = arith.constant dense<0.000000e+00> : vector<24x72xf32>
    %112 = tpu.matmul %109, %111, %cst_79 {dimension_numbers = #tpu.dot_dimension_numbers<[1], [0], [0], [1], [0, 0, 1, 1], [], []>} : vector<24x144xf32>, vector<144x72xf32>, vector<24x72xf32> -> vector<24x72xf32>
    %c1_80 = arith.constant 1 : index
    %c0_81 = arith.constant 0 : index
    %c0_82 = arith.constant 0 : index
    %113 = vector.load %arg3[%c1_80, %c0_81, %c0_82] : memref<2x144x72xf32, #tpu.memory_space<vmem>>, vector<1x144x72xf32>
    %114 = vector.shape_cast %113 : vector<1x144x72xf32> to vector<144x72xf32>
    %cst_83 = arith.constant dense<0.000000e+00> : vector<24x72xf32>
    %115 = tpu.matmul %109, %114, %cst_83 {dimension_numbers = #tpu.dot_dimension_numbers<[1], [0], [0], [1], [0, 0, 1, 1], [], []>} : vector<24x144xf32>, vector<144x72xf32>, vector<24x72xf32> -> vector<24x72xf32>
    %116 = arith.maximumf %112, %115 : vector<24x72xf32>
    %c0_84 = arith.constant 0 : index
    %c0_85 = arith.constant 0 : index
    %c0_86 = arith.constant 0 : index
    %117 = vector.load %arg4[%c0_84, %c0_85, %c0_86] : memref<2x12x24xf32, #tpu.memory_space<vmem>>, vector<1x12x24xf32>
    %118 = vector.shape_cast %117 : vector<1x12x24xf32> to vector<12x24xf32>
    %cst_87 = arith.constant dense<0.000000e+00> : vector<12x72xf32>
    %119 = tpu.matmul %118, %116, %cst_87 {dimension_numbers = #tpu.dot_dimension_numbers<[1], [0], [0], [1], [0, 0, 1, 1], [], []>} : vector<12x24xf32>, vector<24x72xf32>, vector<12x72xf32> -> vector<12x72xf32>
    %c1_88 = arith.constant 1 : index
    %c0_89 = arith.constant 0 : index
    %c0_90 = arith.constant 0 : index
    %120 = vector.load %arg4[%c1_88, %c0_89, %c0_90] : memref<2x12x24xf32, #tpu.memory_space<vmem>>, vector<1x12x24xf32>
    %121 = vector.shape_cast %120 : vector<1x12x24xf32> to vector<12x24xf32>
    %cst_91 = arith.constant dense<0.000000e+00> : vector<12x72xf32>
    %122 = tpu.matmul %121, %116, %cst_91 {dimension_numbers = #tpu.dot_dimension_numbers<[1], [0], [0], [1], [0, 0, 1, 1], [], []>} : vector<12x24xf32>, vector<24x72xf32>, vector<12x72xf32> -> vector<12x72xf32>
    %123 = arith.maximumf %119, %122 : vector<12x72xf32>
    %124 = vector.extract_strided_slice %103 {offsets = [0, 0], sizes = [10, 72], strides = [1, 1]} : vector<12x72xf32> to vector<10x72xf32>
    %c0_92 = arith.constant 0 : index
    %c0_93 = arith.constant 0 : index
    %c0_94 = arith.constant 0 : index
    %125 = vector.load %arg2[%c0_92, %c0_93, %c0_94] : memref<3x72x120xf32, #tpu.memory_space<vmem>>, vector<1x72x120xf32>
    %126 = vector.shape_cast %125 : vector<1x72x120xf32> to vector<72x120xf32>
    %cst_95 = arith.constant dense<0.000000e+00> : vector<10x120xf32>
    %127 = tpu.matmul %124, %126, %cst_95 {dimension_numbers = #tpu.dot_dimension_numbers<[1], [0], [0], [1], [0, 0, 1, 1], [], []>} : vector<10x72xf32>, vector<72x120xf32>, vector<10x120xf32> -> vector<10x120xf32>
    %128 = vector.extract_strided_slice %103 {offsets = [1, 0], sizes = [10, 72], strides = [1, 1]} : vector<12x72xf32> to vector<10x72xf32>
    %c1_96 = arith.constant 1 : index
    %c0_97 = arith.constant 0 : index
    %c0_98 = arith.constant 0 : index
    %129 = vector.load %arg2[%c1_96, %c0_97, %c0_98] : memref<3x72x120xf32, #tpu.memory_space<vmem>>, vector<1x72x120xf32>
    %130 = vector.shape_cast %129 : vector<1x72x120xf32> to vector<72x120xf32>
    %cst_99 = arith.constant dense<0.000000e+00> : vector<10x120xf32>
    %131 = tpu.matmul %128, %130, %cst_99 {dimension_numbers = #tpu.dot_dimension_numbers<[1], [0], [0], [1], [0, 0, 1, 1], [], []>} : vector<10x72xf32>, vector<72x120xf32>, vector<10x120xf32> -> vector<10x120xf32>
    %132 = arith.addf %127, %131 : vector<10x120xf32>
    %133 = vector.extract_strided_slice %103 {offsets = [2, 0], sizes = [10, 72], strides = [1, 1]} : vector<12x72xf32> to vector<10x72xf32>
    %c2_100 = arith.constant 2 : index
    %c0_101 = arith.constant 0 : index
    %c0_102 = arith.constant 0 : index
    %134 = vector.load %arg2[%c2_100, %c0_101, %c0_102] : memref<3x72x120xf32, #tpu.memory_space<vmem>>, vector<1x72x120xf32>
    %135 = vector.shape_cast %134 : vector<1x72x120xf32> to vector<72x120xf32>
    %cst_103 = arith.constant dense<0.000000e+00> : vector<10x120xf32>
    %136 = tpu.matmul %133, %135, %cst_103 {dimension_numbers = #tpu.dot_dimension_numbers<[1], [0], [0], [1], [0, 0, 1, 1], [], []>} : vector<10x72xf32>, vector<72x120xf32>, vector<10x120xf32> -> vector<10x120xf32>
    %137 = arith.addf %132, %136 : vector<10x120xf32>
    %138 = vector.extract_strided_slice %123 {offsets = [0, 0], sizes = [10, 72], strides = [1, 1]} : vector<12x72xf32> to vector<10x72xf32>
    %c0_104 = arith.constant 0 : index
    %c0_105 = arith.constant 0 : index
    %c0_106 = arith.constant 0 : index
    %139 = vector.load %arg2[%c0_104, %c0_105, %c0_106] : memref<3x72x120xf32, #tpu.memory_space<vmem>>, vector<1x72x120xf32>
    %140 = vector.shape_cast %139 : vector<1x72x120xf32> to vector<72x120xf32>
    %cst_107 = arith.constant dense<0.000000e+00> : vector<10x120xf32>
    %141 = tpu.matmul %138, %140, %cst_107 {dimension_numbers = #tpu.dot_dimension_numbers<[1], [0], [0], [1], [0, 0, 1, 1], [], []>} : vector<10x72xf32>, vector<72x120xf32>, vector<10x120xf32> -> vector<10x120xf32>
    %142 = vector.extract_strided_slice %123 {offsets = [1, 0], sizes = [10, 72], strides = [1, 1]} : vector<12x72xf32> to vector<10x72xf32>
    %c1_108 = arith.constant 1 : index
    %c0_109 = arith.constant 0 : index
    %c0_110 = arith.constant 0 : index
    %143 = vector.load %arg2[%c1_108, %c0_109, %c0_110] : memref<3x72x120xf32, #tpu.memory_space<vmem>>, vector<1x72x120xf32>
    %144 = vector.shape_cast %143 : vector<1x72x120xf32> to vector<72x120xf32>
    %cst_111 = arith.constant dense<0.000000e+00> : vector<10x120xf32>
    %145 = tpu.matmul %142, %144, %cst_111 {dimension_numbers = #tpu.dot_dimension_numbers<[1], [0], [0], [1], [0, 0, 1, 1], [], []>} : vector<10x72xf32>, vector<72x120xf32>, vector<10x120xf32> -> vector<10x120xf32>
    %146 = arith.addf %141, %145 : vector<10x120xf32>
    %147 = vector.extract_strided_slice %123 {offsets = [2, 0], sizes = [10, 72], strides = [1, 1]} : vector<12x72xf32> to vector<10x72xf32>
    %c2_112 = arith.constant 2 : index
    %c0_113 = arith.constant 0 : index
    %c0_114 = arith.constant 0 : index
    %148 = vector.load %arg2[%c2_112, %c0_113, %c0_114] : memref<3x72x120xf32, #tpu.memory_space<vmem>>, vector<1x72x120xf32>
    %149 = vector.shape_cast %148 : vector<1x72x120xf32> to vector<72x120xf32>
    %cst_115 = arith.constant dense<0.000000e+00> : vector<10x120xf32>
    %150 = tpu.matmul %147, %149, %cst_115 {dimension_numbers = #tpu.dot_dimension_numbers<[1], [0], [0], [1], [0, 0, 1, 1], [], []>} : vector<10x72xf32>, vector<72x120xf32>, vector<10x120xf32> -> vector<10x120xf32>
    %151 = arith.addf %146, %150 : vector<10x120xf32>
    %cst_116 = arith.constant dense<0.000000e+00> : vector<120xf32>
    %152 = vector.multi_reduction <add>, %137, %cst_116 [0] : vector<10x120xf32> to vector<120xf32>
    %153 = vector.shape_cast %152 : vector<120xf32> to vector<1x120xf32>
    %154 = arith.mulf %137, %137 : vector<10x120xf32>
    %cst_117 = arith.constant dense<0.000000e+00> : vector<120xf32>
    %155 = vector.multi_reduction <add>, %154, %cst_117 [0] : vector<10x120xf32> to vector<120xf32>
    %156 = vector.shape_cast %155 : vector<120xf32> to vector<1x120xf32>
    %cst_118 = arith.constant dense<0.000000e+00> : vector<120xf32>
    %157 = vector.multi_reduction <add>, %151, %cst_118 [0] : vector<10x120xf32> to vector<120xf32>
    %158 = vector.shape_cast %157 : vector<120xf32> to vector<1x120xf32>
    %159 = arith.addf %153, %158 : vector<1x120xf32>
    %160 = arith.mulf %151, %151 : vector<10x120xf32>
    %cst_119 = arith.constant dense<0.000000e+00> : vector<120xf32>
    %161 = vector.multi_reduction <add>, %160, %cst_119 [0] : vector<10x120xf32> to vector<120xf32>
    %162 = vector.shape_cast %161 : vector<120xf32> to vector<1x120xf32>
    %163 = arith.addf %156, %162 : vector<1x120xf32>
    %c0_120 = arith.constant 0 : index
    %c0_121 = arith.constant 0 : index
    %164 = vector.load %arg8[%c0_120, %c0_121] : memref<120x120xf32, #tpu.memory_space<vmem>>, vector<120x120xf32>
    %cst_122 = arith.constant dense<0.000000e+00> : vector<1x120xf32>
    %165 = tpu.matmul %159, %164, %cst_122 {dimension_numbers = #tpu.dot_dimension_numbers<[1], [0], [0], [1], [0, 0, 1, 1], [], []>} : vector<1x120xf32>, vector<120x120xf32>, vector<1x120xf32> -> vector<1x120xf32>
    %cst_123 = arith.constant 5.000000e-03 : f32
    %166 = vector.broadcast %cst_123 : f32 to vector<1x120xf32>
    %167 = arith.mulf %165, %166 : vector<1x120xf32>
    %c0_124 = arith.constant 0 : index
    %c0_125 = arith.constant 0 : index
    %168 = vector.load %arg8[%c0_124, %c0_125] : memref<120x120xf32, #tpu.memory_space<vmem>>, vector<120x120xf32>
    %cst_126 = arith.constant dense<0.000000e+00> : vector<1x120xf32>
    %169 = tpu.matmul %163, %168, %cst_126 {dimension_numbers = #tpu.dot_dimension_numbers<[1], [0], [0], [1], [0, 0, 1, 1], [], []>} : vector<1x120xf32>, vector<120x120xf32>, vector<1x120xf32> -> vector<1x120xf32>
    %cst_127 = arith.constant 5.000000e-03 : f32
    %170 = vector.broadcast %cst_127 : f32 to vector<1x120xf32>
    %171 = arith.mulf %169, %170 : vector<1x120xf32>
    %172 = arith.mulf %167, %167 : vector<1x120xf32>
    %173 = arith.subf %171, %172 : vector<1x120xf32>
    %cst_128 = arith.constant 0.000000e+00 : f32
    %174 = vector.broadcast %cst_128 : f32 to vector<1x120xf32>
    %175 = arith.maximumf %173, %174 : vector<1x120xf32>
    %c0_129 = arith.constant 0 : index
    %c0_130 = arith.constant 0 : index
    %176 = vector.load %arg10[%c0_129, %c0_130] : memref<2x120xf32, #tpu.memory_space<vmem>>, vector<1x120xf32>
    %cst_131 = arith.constant 9.99999974E-6 : f32
    %177 = vector.broadcast %cst_131 : f32 to vector<1x120xf32>
    %178 = arith.addf %175, %177 : vector<1x120xf32>
    %179 = math.rsqrt %178 : vector<1x120xf32>
    %180 = arith.mulf %176, %179 : vector<1x120xf32>
    %c1_132 = arith.constant 1 : index
    %c0_133 = arith.constant 0 : index
    %181 = vector.load %arg10[%c1_132, %c0_133] : memref<2x120xf32, #tpu.memory_space<vmem>>, vector<1x120xf32>
    %182 = arith.mulf %167, %180 : vector<1x120xf32>
    %183 = arith.subf %181, %182 : vector<1x120xf32>
    %c0_134 = arith.constant 0 : index
    %c0_135 = arith.constant 0 : index
    %184 = vector.load %arg12[%c0_134, %c0_135] : memref<1x10xf32, #tpu.memory_space<vmem>>, vector<1x10xf32>
    %185 = vector.broadcast %180 : vector<1x120xf32> to vector<10x120xf32>
    %186 = arith.mulf %137, %185 : vector<10x120xf32>
    %187 = vector.broadcast %183 : vector<1x120xf32> to vector<10x120xf32>
    %188 = arith.addf %186, %187 : vector<10x120xf32>
    %c0_136 = arith.constant 0 : index
    %c0_137 = arith.constant 0 : index
    %c0_138 = arith.constant 0 : index
    %189 = vector.load %arg5[%c0_136, %c0_137, %c0_138] : memref<2x120x60xf32, #tpu.memory_space<vmem>>, vector<1x120x60xf32>
    %190 = vector.shape_cast %189 : vector<1x120x60xf32> to vector<120x60xf32>
    %cst_139 = arith.constant dense<0.000000e+00> : vector<10x60xf32>
    %191 = tpu.matmul %188, %190, %cst_139 {dimension_numbers = #tpu.dot_dimension_numbers<[1], [0], [0], [1], [0, 0, 1, 1], [], []>} : vector<10x120xf32>, vector<120x60xf32>, vector<10x60xf32> -> vector<10x60xf32>
    %c1_140 = arith.constant 1 : index
    %c0_141 = arith.constant 0 : index
    %c0_142 = arith.constant 0 : index
    %192 = vector.load %arg5[%c1_140, %c0_141, %c0_142] : memref<2x120x60xf32, #tpu.memory_space<vmem>>, vector<1x120x60xf32>
    %193 = vector.shape_cast %192 : vector<1x120x60xf32> to vector<120x60xf32>
    %cst_143 = arith.constant dense<0.000000e+00> : vector<10x60xf32>
    %194 = tpu.matmul %188, %193, %cst_143 {dimension_numbers = #tpu.dot_dimension_numbers<[1], [0], [0], [1], [0, 0, 1, 1], [], []>} : vector<10x120xf32>, vector<120x60xf32>, vector<10x60xf32> -> vector<10x60xf32>
    %195 = arith.maximumf %191, %194 : vector<10x60xf32>
    %c0_144 = arith.constant 0 : index
    %c0_145 = arith.constant 0 : index
    %c0_146 = arith.constant 0 : index
    %196 = vector.load %arg6[%c0_144, %c0_145, %c0_146] : memref<2x5x10xf32, #tpu.memory_space<vmem>>, vector<1x5x10xf32>
    %197 = vector.shape_cast %196 : vector<1x5x10xf32> to vector<5x10xf32>
    %cst_147 = arith.constant dense<0.000000e+00> : vector<5x60xf32>
    %198 = tpu.matmul %197, %195, %cst_147 {dimension_numbers = #tpu.dot_dimension_numbers<[1], [0], [0], [1], [0, 0, 1, 1], [], []>} : vector<5x10xf32>, vector<10x60xf32>, vector<5x60xf32> -> vector<5x60xf32>
    %c1_148 = arith.constant 1 : index
    %c0_149 = arith.constant 0 : index
    %c0_150 = arith.constant 0 : index
    %199 = vector.load %arg6[%c1_148, %c0_149, %c0_150] : memref<2x5x10xf32, #tpu.memory_space<vmem>>, vector<1x5x10xf32>
    %200 = vector.shape_cast %199 : vector<1x5x10xf32> to vector<5x10xf32>
    %cst_151 = arith.constant dense<0.000000e+00> : vector<5x60xf32>
    %201 = tpu.matmul %200, %195, %cst_151 {dimension_numbers = #tpu.dot_dimension_numbers<[1], [0], [0], [1], [0, 0, 1, 1], [], []>} : vector<5x10xf32>, vector<10x60xf32>, vector<5x60xf32> -> vector<5x60xf32>
    %202 = arith.maximumf %198, %201 : vector<5x60xf32>
    %203 = vector.extract_strided_slice %202 {offsets = [0, 0], sizes = [1, 60], strides = [1, 1]} : vector<5x60xf32> to vector<1x60xf32>
    %c0_152 = arith.constant 0 : index
    %c0_153 = arith.constant 0 : index
    %c0_154 = arith.constant 0 : index
    %204 = vector.load %arg11[%c0_152, %c0_153, %c0_154] : memref<5x60x10xf32, #tpu.memory_space<vmem>>, vector<1x60x10xf32>
    %205 = vector.shape_cast %204 : vector<1x60x10xf32> to vector<60x10xf32>
    %cst_155 = arith.constant dense<0.000000e+00> : vector<1x10xf32>
    %206 = tpu.matmul %203, %205, %cst_155 {dimension_numbers = #tpu.dot_dimension_numbers<[1], [0], [0], [1], [0, 0, 1, 1], [], []>} : vector<1x60xf32>, vector<60x10xf32>, vector<1x10xf32> -> vector<1x10xf32>
    %207 = arith.addf %184, %206 : vector<1x10xf32>
    %208 = vector.extract_strided_slice %202 {offsets = [1, 0], sizes = [1, 60], strides = [1, 1]} : vector<5x60xf32> to vector<1x60xf32>
    %c1_156 = arith.constant 1 : index
    %c0_157 = arith.constant 0 : index
    %c0_158 = arith.constant 0 : index
    %209 = vector.load %arg11[%c1_156, %c0_157, %c0_158] : memref<5x60x10xf32, #tpu.memory_space<vmem>>, vector<1x60x10xf32>
    %210 = vector.shape_cast %209 : vector<1x60x10xf32> to vector<60x10xf32>
    %cst_159 = arith.constant dense<0.000000e+00> : vector<1x10xf32>
    %211 = tpu.matmul %208, %210, %cst_159 {dimension_numbers = #tpu.dot_dimension_numbers<[1], [0], [0], [1], [0, 0, 1, 1], [], []>} : vector<1x60xf32>, vector<60x10xf32>, vector<1x10xf32> -> vector<1x10xf32>
    %212 = arith.addf %207, %211 : vector<1x10xf32>
    %213 = vector.extract_strided_slice %202 {offsets = [2, 0], sizes = [1, 60], strides = [1, 1]} : vector<5x60xf32> to vector<1x60xf32>
    %c2_160 = arith.constant 2 : index
    %c0_161 = arith.constant 0 : index
    %c0_162 = arith.constant 0 : index
    %214 = vector.load %arg11[%c2_160, %c0_161, %c0_162] : memref<5x60x10xf32, #tpu.memory_space<vmem>>, vector<1x60x10xf32>
    %215 = vector.shape_cast %214 : vector<1x60x10xf32> to vector<60x10xf32>
    %cst_163 = arith.constant dense<0.000000e+00> : vector<1x10xf32>
    %216 = tpu.matmul %213, %215, %cst_163 {dimension_numbers = #tpu.dot_dimension_numbers<[1], [0], [0], [1], [0, 0, 1, 1], [], []>} : vector<1x60xf32>, vector<60x10xf32>, vector<1x10xf32> -> vector<1x10xf32>
    %217 = arith.addf %212, %216 : vector<1x10xf32>
    %218 = vector.extract_strided_slice %202 {offsets = [3, 0], sizes = [1, 60], strides = [1, 1]} : vector<5x60xf32> to vector<1x60xf32>
    %c3_164 = arith.constant 3 : index
    %c0_165 = arith.constant 0 : index
    %c0_166 = arith.constant 0 : index
    %219 = vector.load %arg11[%c3_164, %c0_165, %c0_166] : memref<5x60x10xf32, #tpu.memory_space<vmem>>, vector<1x60x10xf32>
    %220 = vector.shape_cast %219 : vector<1x60x10xf32> to vector<60x10xf32>
    %cst_167 = arith.constant dense<0.000000e+00> : vector<1x10xf32>
    %221 = tpu.matmul %218, %220, %cst_167 {dimension_numbers = #tpu.dot_dimension_numbers<[1], [0], [0], [1], [0, 0, 1, 1], [], []>} : vector<1x60xf32>, vector<60x10xf32>, vector<1x10xf32> -> vector<1x10xf32>
    %222 = arith.addf %217, %221 : vector<1x10xf32>
    %223 = vector.extract_strided_slice %202 {offsets = [4, 0], sizes = [1, 60], strides = [1, 1]} : vector<5x60xf32> to vector<1x60xf32>
    %c4_168 = arith.constant 4 : index
    %c0_169 = arith.constant 0 : index
    %c0_170 = arith.constant 0 : index
    %224 = vector.load %arg11[%c4_168, %c0_169, %c0_170] : memref<5x60x10xf32, #tpu.memory_space<vmem>>, vector<1x60x10xf32>
    %225 = vector.shape_cast %224 : vector<1x60x10xf32> to vector<60x10xf32>
    %cst_171 = arith.constant dense<0.000000e+00> : vector<1x10xf32>
    %226 = tpu.matmul %223, %225, %cst_171 {dimension_numbers = #tpu.dot_dimension_numbers<[1], [0], [0], [1], [0, 0, 1, 1], [], []>} : vector<1x60xf32>, vector<60x10xf32>, vector<1x10xf32> -> vector<1x10xf32>
    %227 = arith.addf %222, %226 : vector<1x10xf32>
    %c0_172 = arith.constant 0 : index
    %c0_173 = arith.constant 0 : index
    %228 = vector.load %arg13[%c0_172, %c0_173] : memref<2x10xf32, #tpu.memory_space<vmem>>, vector<1x10xf32>
    tpu.vector_store %arg13[%c0_172, %c0_173], %227 {strides = array<i32>} : memref<2x10xf32, #tpu.memory_space<vmem>>, vector<1x10xf32>,
    %229 = vector.broadcast %180 : vector<1x120xf32> to vector<10x120xf32>
    %230 = arith.mulf %151, %229 : vector<10x120xf32>
    %231 = vector.broadcast %183 : vector<1x120xf32> to vector<10x120xf32>
    %232 = arith.addf %230, %231 : vector<10x120xf32>
    %c0_174 = arith.constant 0 : index
    %c0_175 = arith.constant 0 : index
    %c0_176 = arith.constant 0 : index
    %233 = vector.load %arg5[%c0_174, %c0_175, %c0_176] : memref<2x120x60xf32, #tpu.memory_space<vmem>>, vector<1x120x60xf32>
    %234 = vector.shape_cast %233 : vector<1x120x60xf32> to vector<120x60xf32>
    %cst_177 = arith.constant dense<0.000000e+00> : vector<10x60xf32>
    %235 = tpu.matmul %232, %234, %cst_177 {dimension_numbers = #tpu.dot_dimension_numbers<[1], [0], [0], [1], [0, 0, 1, 1], [], []>} : vector<10x120xf32>, vector<120x60xf32>, vector<10x60xf32> -> vector<10x60xf32>
    %c1_178 = arith.constant 1 : index
    %c0_179 = arith.constant 0 : index
    %c0_180 = arith.constant 0 : index
    %236 = vector.load %arg5[%c1_178, %c0_179, %c0_180] : memref<2x120x60xf32, #tpu.memory_space<vmem>>, vector<1x120x60xf32>
    %237 = vector.shape_cast %236 : vector<1x120x60xf32> to vector<120x60xf32>
    %cst_181 = arith.constant dense<0.000000e+00> : vector<10x60xf32>
    %238 = tpu.matmul %232, %237, %cst_181 {dimension_numbers = #tpu.dot_dimension_numbers<[1], [0], [0], [1], [0, 0, 1, 1], [], []>} : vector<10x120xf32>, vector<120x60xf32>, vector<10x60xf32> -> vector<10x60xf32>
    %239 = arith.maximumf %235, %238 : vector<10x60xf32>
    %c0_182 = arith.constant 0 : index
    %c0_183 = arith.constant 0 : index
    %c0_184 = arith.constant 0 : index
    %240 = vector.load %arg6[%c0_182, %c0_183, %c0_184] : memref<2x5x10xf32, #tpu.memory_space<vmem>>, vector<1x5x10xf32>
    %241 = vector.shape_cast %240 : vector<1x5x10xf32> to vector<5x10xf32>
    %cst_185 = arith.constant dense<0.000000e+00> : vector<5x60xf32>
    %242 = tpu.matmul %241, %239, %cst_185 {dimension_numbers = #tpu.dot_dimension_numbers<[1], [0], [0], [1], [0, 0, 1, 1], [], []>} : vector<5x10xf32>, vector<10x60xf32>, vector<5x60xf32> -> vector<5x60xf32>
    %c1_186 = arith.constant 1 : index
    %c0_187 = arith.constant 0 : index
    %c0_188 = arith.constant 0 : index
    %243 = vector.load %arg6[%c1_186, %c0_187, %c0_188] : memref<2x5x10xf32, #tpu.memory_space<vmem>>, vector<1x5x10xf32>
    %244 = vector.shape_cast %243 : vector<1x5x10xf32> to vector<5x10xf32>
    %cst_189 = arith.constant dense<0.000000e+00> : vector<5x60xf32>
    %245 = tpu.matmul %244, %239, %cst_189 {dimension_numbers = #tpu.dot_dimension_numbers<[1], [0], [0], [1], [0, 0, 1, 1], [], []>} : vector<5x10xf32>, vector<10x60xf32>, vector<5x60xf32> -> vector<5x60xf32>
    %246 = arith.maximumf %242, %245 : vector<5x60xf32>
    %247 = vector.extract_strided_slice %246 {offsets = [0, 0], sizes = [1, 60], strides = [1, 1]} : vector<5x60xf32> to vector<1x60xf32>
    %c0_190 = arith.constant 0 : index
    %c0_191 = arith.constant 0 : index
    %c0_192 = arith.constant 0 : index
    %248 = vector.load %arg11[%c0_190, %c0_191, %c0_192] : memref<5x60x10xf32, #tpu.memory_space<vmem>>, vector<1x60x10xf32>
    %249 = vector.shape_cast %248 : vector<1x60x10xf32> to vector<60x10xf32>
    %cst_193 = arith.constant dense<0.000000e+00> : vector<1x10xf32>
    %250 = tpu.matmul %247, %249, %cst_193 {dimension_numbers = #tpu.dot_dimension_numbers<[1], [0], [0], [1], [0, 0, 1, 1], [], []>} : vector<1x60xf32>, vector<60x10xf32>, vector<1x10xf32> -> vector<1x10xf32>
    %251 = arith.addf %184, %250 : vector<1x10xf32>
    %252 = vector.extract_strided_slice %246 {offsets = [1, 0], sizes = [1, 60], strides = [1, 1]} : vector<5x60xf32> to vector<1x60xf32>
    %c1_194 = arith.constant 1 : index
    %c0_195 = arith.constant 0 : index
    %c0_196 = arith.constant 0 : index
    %253 = vector.load %arg11[%c1_194, %c0_195, %c0_196] : memref<5x60x10xf32, #tpu.memory_space<vmem>>, vector<1x60x10xf32>
    %254 = vector.shape_cast %253 : vector<1x60x10xf32> to vector<60x10xf32>
    %cst_197 = arith.constant dense<0.000000e+00> : vector<1x10xf32>
    %255 = tpu.matmul %252, %254, %cst_197 {dimension_numbers = #tpu.dot_dimension_numbers<[1], [0], [0], [1], [0, 0, 1, 1], [], []>} : vector<1x60xf32>, vector<60x10xf32>, vector<1x10xf32> -> vector<1x10xf32>
    %256 = arith.addf %251, %255 : vector<1x10xf32>
    %257 = vector.extract_strided_slice %246 {offsets = [2, 0], sizes = [1, 60], strides = [1, 1]} : vector<5x60xf32> to vector<1x60xf32>
    %c2_198 = arith.constant 2 : index
    %c0_199 = arith.constant 0 : index
    %c0_200 = arith.constant 0 : index
    %258 = vector.load %arg11[%c2_198, %c0_199, %c0_200] : memref<5x60x10xf32, #tpu.memory_space<vmem>>, vector<1x60x10xf32>
    %259 = vector.shape_cast %258 : vector<1x60x10xf32> to vector<60x10xf32>
    %cst_201 = arith.constant dense<0.000000e+00> : vector<1x10xf32>
    %260 = tpu.matmul %257, %259, %cst_201 {dimension_numbers = #tpu.dot_dimension_numbers<[1], [0], [0], [1], [0, 0, 1, 1], [], []>} : vector<1x60xf32>, vector<60x10xf32>, vector<1x10xf32> -> vector<1x10xf32>
    %261 = arith.addf %256, %260 : vector<1x10xf32>
    %262 = vector.extract_strided_slice %246 {offsets = [3, 0], sizes = [1, 60], strides = [1, 1]} : vector<5x60xf32> to vector<1x60xf32>
    %c3_202 = arith.constant 3 : index
    %c0_203 = arith.constant 0 : index
    %c0_204 = arith.constant 0 : index
    %263 = vector.load %arg11[%c3_202, %c0_203, %c0_204] : memref<5x60x10xf32, #tpu.memory_space<vmem>>, vector<1x60x10xf32>
    %264 = vector.shape_cast %263 : vector<1x60x10xf32> to vector<60x10xf32>
    %cst_205 = arith.constant dense<0.000000e+00> : vector<1x10xf32>
    %265 = tpu.matmul %262, %264, %cst_205 {dimension_numbers = #tpu.dot_dimension_numbers<[1], [0], [0], [1], [0, 0, 1, 1], [], []>} : vector<1x60xf32>, vector<60x10xf32>, vector<1x10xf32> -> vector<1x10xf32>
    %266 = arith.addf %261, %265 : vector<1x10xf32>
    %267 = vector.extract_strided_slice %246 {offsets = [4, 0], sizes = [1, 60], strides = [1, 1]} : vector<5x60xf32> to vector<1x60xf32>
    %c4_206 = arith.constant 4 : index
    %c0_207 = arith.constant 0 : index
    %c0_208 = arith.constant 0 : index
    %268 = vector.load %arg11[%c4_206, %c0_207, %c0_208] : memref<5x60x10xf32, #tpu.memory_space<vmem>>, vector<1x60x10xf32>
    %269 = vector.shape_cast %268 : vector<1x60x10xf32> to vector<60x10xf32>
    %cst_209 = arith.constant dense<0.000000e+00> : vector<1x10xf32>
    %270 = tpu.matmul %267, %269, %cst_209 {dimension_numbers = #tpu.dot_dimension_numbers<[1], [0], [0], [1], [0, 0, 1, 1], [], []>} : vector<1x60xf32>, vector<60x10xf32>, vector<1x10xf32> -> vector<1x10xf32>
    %271 = arith.addf %266, %270 : vector<1x10xf32>
    %c1_210 = arith.constant 1 : index
    %c0_211 = arith.constant 0 : index
    %272 = vector.load %arg13[%c1_210, %c0_211] : memref<2x10xf32, #tpu.memory_space<vmem>>, vector<1x10xf32>
    tpu.vector_store %arg13[%c1_210, %c0_211], %271 {strides = array<i32>} : memref<2x10xf32, #tpu.memory_space<vmem>>, vector<1x10xf32>,
    return
  }
}

</mosaic_0001>

<bundles_post_ra>
// kernel: mynet_forward.1
= control target key start
LH: loop header
LB: loop body
LE: loop exit
PB: predicated region body
PF: predicated region fallthrough
CT: control target
= control target key end

     0   :  { %18 = vsyncpa [#allocation3], 0  ;;  %s7991_s0 = inlined_call_operand.vmem [shape: f32[2,28,28], index: 0, kind: input, shape index: {}]   ;;  %s7992_s1 = inlined_call_operand.vmem [shape: f32[5,28,144], index: 1, kind: input, shape index: {}]   ;;  %s7993_s2 = inlined_call_operand.hbm [shape: f32[3,72,120], index: 2, kind: input, shape index: {}]   ;;  %s7994_s3 = inlined_call_operand.vmem [shape: f32[2,144,72], index: 3, kind: input, shape index: {}]   ;;  %s7995_s4 = inlined_call_operand.vmem [shape: f32[2,12,24], index: 4, kind: input, shape index: {}]   ;;  %s7996_s5 = inlined_call_operand.vmem [shape: f32[2,120,60], index: 5, kind: input, shape index: {}]   ;;  %s7997_s6 = inlined_call_operand.vmem [shape: f32[2,5,10], index: 6, kind: input, shape index: {}]   ;;  %s7998_s7 = inlined_call_operand.vmem [shape: f32[144,144], index: 7, kind: input, shape index: {}]   ;;  %s7999_s8 = inlined_call_operand.hbm [shape: f32[120,120], index: 8, kind: input, shape index: {}]   ;;  %s8000_s9 = inlined_call_operand.hbm [shape: f32[2,144], index: 9, kind: input, shape index: {}]   ;;  %s8001_s10 = inlined_call_operand.hbm [shape: f32[2,120], index: 10, kind: input, shape index: {}]   ;;  %s8002_s11 = inlined_call_operand.vmem [shape: f32[5,60,10], index: 11, kind: input, shape index: {}]   ;;  %s8003_s12 = inlined_call_operand.vmem [shape: f32[1,10], index: 12, kind: input, shape index: {}]   ;;  %s8004_s13 = inlined_call_operand.hbm [shape: f32[2,10], index: 13, kind: output, shape index: {}]  }
   0x1   :  { %19 = vsyncpa [#allocation6], 0 }
   0x2   :  { %20 = vsyncpa [#allocation9], 0 }
   0x3   :  { %21 = vsyncpa [#allocation4], 0  ;;  %s5850_s25 = smov [#allocation5]   ;;  %s5851_s27 = smov [#allocation2]  }
   0x4   :  { %s53_s26 = sshll.u32 %s5850_s25, 4  ;;  %s31_s28 = sshll.u32 %s5851_s27, 4  ;;  %s54_s26 = int_to_ptr.vmem [resolvable:$true] %s53_s26  ;;  %s32_s28 = int_to_ptr.vmem [resolvable:$true] %s31_s28 }
   0x5   :  { %s5750_s29 = scalar_lea.vmem %s54_s26, 1920  ;;  %p5755_p1 = scmp.lt.s32.totalorder %s54_s26, %s54_s26 }
   0x6   :  { %p5751_p0 = scmp.ne.s32.totalorder %s54_s26, %s5750_s29  ;;  %p5756_p2 = scmp.lt.s32.totalorder %s5750_s29, %s5750_s29 }
   0x8   :  { %p5757_p3 = por %p5756_p2, %p5755_p1 }
   0xa   :  { %p5758_p4 = pnand %p5757_p3, %p5751_p0 }
   0xc   :  { %5761 = shalt.err (!%p5758_p4)
}
   0xd   :  { %s5852_s30 = smov 128   ;;  %s5853_s14 = smov 8  }
   0xe   :  { %59 = dma.hbm_to_vmem [thread:$0]  %s7999_s8, 1920, %s54_s26, [#allocation6], %s5852_s30, %s5852_s30, %s5853_s14  }
   0xf   :  { %s5770_s17 = scalar_lea.vmem %s32_s28, 3456  ;;  %p5775_p6 = scmp.lt.s32.totalorder %s32_s28, %s32_s28 }
  0x10   :  { %p5771_p5 = scmp.ne.s32.totalorder %s32_s28, %s5770_s17  ;;  %p5776_p7 = scmp.lt.s32.totalorder %s5770_s17, %s5770_s17 }
  0x12   :  { %p5777_p8 = por %p5776_p7, %p5775_p6 }
  0x14   :  { %p5778_p9 = pnand %p5777_p8, %p5771_p5 }
  0x16   :  { %5781 = shalt.err (!%p5778_p9)
}
  0x17   :  { %37 = dma.hbm_to_vmem [thread:$0]  %s7993_s2, 3456, %s32_s28, [#allocation3], %s5852_s30, %s5852_s30, %s5853_s14  }
  0x18   :  { %s5854_s20 = smov [#allocation7]   ;;  %s5855_s22 = smov [#allocation8]  }
  0x19   :  { %s66_s21 = sshll.u32 %s5854_s20, 4  ;;  %s76_s23 = sshll.u32 %s5855_s22, 4  ;;  %s67_s21 = int_to_ptr.vmem [resolvable:$true] %s66_s21  ;;  %s77_s23 = int_to_ptr.vmem [resolvable:$true] %s76_s23 }
  0x1a   :  { %s5790_s24 = scalar_lea.vmem %s67_s21, 64  ;;  %p5795_p11 = scmp.lt.s32.totalorder %s67_s21, %s67_s21 }
  0x1b   :  { %p5791_p10 = scmp.ne.s32.totalorder %s67_s21, %s5790_s24  ;;  %p5796_p12 = scmp.lt.s32.totalorder %s5790_s24, %s5790_s24 }
  0x1d   :  { %p5797_p13 = por %p5796_p12, %p5795_p11 }
  0x1f   :  { %p5798_p0 = pnand %p5797_p13, %p5791_p10 }
  0x21   :  { %5801 = shalt.err (!%p5798_p0)
}
  0x22   :  { %69 = dma.hbm_to_vmem [thread:$0]  %s8000_s9, 64, %s67_s21, [#allocation6]  }
  0x23   :  { %s5810_s26 = scalar_lea.vmem %s77_s23, 32  ;;  %p5815_p2 = scmp.lt.s32.totalorder %s77_s23, %s77_s23 }
  0x24   :  { %p5811_p1 = scmp.ne.s32.totalorder %s77_s23, %s5810_s26  ;;  %p5816_p3 = scmp.lt.s32.totalorder %s5810_s26, %s5810_s26 }
  0x26   :  { %p5817_p4 = por %p5816_p3, %p5815_p2 }
  0x28   :  { %p5818_p5 = pnand %p5817_p4, %p5811_p1 }
  0x2a   :  { %5821 = shalt.err (!%p5818_p5)
}
  0x2b   :  { %79 = dma.hbm_to_vmem [thread:$0]  %s8001_s10, 32, %s77_s23, [#allocation9]  }
  0x2c   :  { %5842 = dma.done.wait [#allocation3], 3456  }
  0x2d   :  { %5843 = vsyncadd [#allocation3], 4294963840 }
  0x2e   :  { %5844 = dma.done.wait [#allocation6], 1984  }
  0x2f   :  { %5845 = vsyncadd [#allocation6], 4294965312 }
  0x30   :  { %5846 = dma.done.wait [#allocation9], 32  }
  0x31   :  { %5847 = vsyncadd [#allocation9], 4294967264  ;;  %v8005_v0 = vmov 0.0   ;;  %vm136_vm0 = vcmask 1043456   ;;  %v5947_v1 = vld [vmem:[%s7992_s1 + $0x78] sm:$0xf] }
  0x32   :  { %207 = vmatprep.mubr.f32.mxu0 %v8005_v0  ;;  %302 = vmatprep.mubr.f32.mxu1 %v8005_v0  ;;  %v5952_v2 = vld [vmem:[%s7992_s1 + $0x38] sm:$0xf]  ;;  %v5957_v3 = vld [vmem:[%s7992_s1 + $0x70] sm:$0xf]  ;;  %v5971_v5 = vld [vmem:[%s7992_s1 + $0x68] sm:$0xff]  ;;  %vm121_vm1 = vcmask 1046528  }
  0x33   :  { %4594 = vmatprep.subr.msk.mxu0 %vm136_vm0, %v5947_v1  ;;  %4599 = vmatprep.subr.msk.mxu1 %vm136_vm0, %v5952_v2  ;;  %v5966_v4 = vld [vmem:[%s7992_s1 + $0x30] sm:$0xf]  ;;  %v5976_v6 = vld [vmem:[%s7992_s1 + $0x28] sm:$0xff]  ;;  %v5985_v7 = vld [vmem:[%s7992_s1 + $0x60] sm:$0xff]  ;;  %vm129_vm2 = vcmask 228352   ;;  %vm330_vm3 = vcmask 1045504  }
  0x34   :  { %4595 = vmatpush1.msk.msra.mxu0 %vm136_vm0, %v5957_v3  ;;  %4600 = vmatpush1.msk.msra.mxu1 %vm136_vm0, %v5966_v4  ;;  %v5990_v8 = vld [vmem:[%s7992_s1 + $0x20] sm:$0xff]  ;;  %v5995_v9 = vld [vmem:[%s7992_s1 + $0x58] sm:$0xff]  ;;  %v6007_v11 = vld [vmem:[%s7992_s1 + $0x50] sm:$0xff]  ;;  %vm448_vm4 = vcmask 1044480   ;;  %vm1182_vm5 = vcmask 130048   ;;  %vm1759_vm6 = vcmask 195584  }
  0x35   :  { %169 = vmatprep.subr.mxu0 %v5971_v5  ;;  %264 = vmatprep.subr.mxu1 %v5976_v6  ;;  %v6002_v10 = vld [vmem:[%s7992_s1 + $0x18] sm:$0xff]  ;;  %v6012_v12 = vld [vmem:[%s7992_s1 + $0x10] sm:$0xff]  ;;  %v6019_v13 = vld [vmem:[%s7992_s1 + $0x48] sm:$0xff]  ;;  %vm2293_vm7 = vcmask 588800   ;;  %vm5858_vm8 = vmmov 0   ;;  %vm2793_vm9 = vcmask 982016  }
  0x36   :  { %170 = vmatpush1.msra.mxu0 %v5985_v7  ;;  %265 = vmatpush1.msra.mxu1 %v5990_v8  ;;  %v6024_v14 = vld [vmem:[%s7992_s1 + $0x8] sm:$0xff]  ;;  %v6029_v15 = vld [vmem:[%s7992_s1 + $0x40] sm:$0xff]  ;;  %v6055_v21 = vld [vmem:[%s7991_s0 + $0x10] sm:$0xff]  ;;  %vm2795_vm10 = vcmask 975872   ;;  %vm3217_vm11 = vcmask 1041408   ;;  %vm3213_vm12 = vcmask 80896  }
  0x37   :  { %171 = vmatprep.subr.mxu0 %v5995_v9  ;;  %266 = vmatprep.subr.mxu1 %v6002_v10  ;;  %v6036_v16 = vld [vmem:[%s7992_s1] sm:$0xff]  ;;  %v6046_v18 = vld [vmem:[%s7991_s0 + $0x8] sm:$0xff]  ;;  %v125_v22 = vrot.slane %v6055_v21, 1  ;;  %v6066_v24 = vld [vmem:[%s7992_s1 + $0xb8] sm:$0xf]  ;;  %v334_v50 = vrot.slane %v6055_v21, 2 }
  0x38   :  { %v6041_v17 = vld [vmem:[%s7991_s0] sm:$0xff]  ;;  %172 = vmatpush1.msra.mxu0 %v6007_v11  ;;  %267 = vmatpush1.msra.mxu1 %v6012_v12  ;;  %v123_v20 = vrot.slane %v6046_v18, 1  ;;  %v6071_v25 = vld [vmem:[%s7992_s1 + $0xf8] sm:$0xf]  ;;  %v6079_v26 = vld [vmem:[%s7992_s1 + $0xb0] sm:$0xf] }
  0x39   :  { %v122_v19 = vrot.slane %v6041_v17, 1  ;;  %173 = vmatprep.subr.mxu0 %v6019_v13  ;;  %268 = vmatprep.subr.mxu1 %v6024_v14  ;;  %v6084_v27 = vld [vmem:[%s7992_s1 + $0xf0] sm:$0xf]  ;;  %v6089_v28 = vld [vmem:[%s7991_s0 + $0x18] sm:$0xf]  ;;  %v6102_v31 = vld [vmem:[%s7992_s1 + $0xa8] sm:$0xff] }
  0x3a   :  { %174 = vmatpush1.msra.mxu0 %v6029_v15  ;;  %269 = vmatpush1.msra.mxu1 %v6036_v16  ;;  %v126_v29 = vsel %vm121_vm1, %v123_v20, %v125_v22  ;;  %v127_v30 = vrot.slane %v6089_v28, 1  ;;  %v6107_v32 = vld [vmem:[%s7992_s1 + $0xe8] sm:$0xff]  ;;  %v6119_v33 = vld [vmem:[%s7992_s1 + $0xa0] sm:$0xff]  ;;  %v6134_v36 = vld [vmem:[%s7992_s1 + $0x98] sm:$0xff]  ;;  %v331_v40 = vrot.slane %v6041_v17, 2  ;;  %v332_v41 = vrot.slane %v6046_v18, 2 }
  0x3b   :  { %v124_v23 = vsel %vm121_vm1, %v122_v19, %v123_v20  ;;  %4601 = vmatmul.mubr.msk.f32.vlgmr.msra.gmra.mxu1 %vm129_vm2, %v6041_v17  ;;  %4612 = vmatprep.subr.msk.mxu0 %vm136_vm0, %v6066_v24  ;;  %v6124_v34 = vld [vmem:[%s7992_s1 + $0xe0] sm:$0xff]  ;;  %v6139_v37 = vld [vmem:[%s7992_s1 + $0xd8] sm:$0xff]  ;;  %v6146_v38 = vld [vmem:[%s7992_s1 + $0x90] sm:$0xff]  ;;  %v449_v42 = vrot.slane %v6041_v17, 3  ;;  %v450_v43 = vrot.slane %v6046_v18, 3  ;;  %v452_v51 = vrot.slane %v6055_v21, 3 }
  0x3c   :  { %4596 = vmatmul.mubr.msk.f32.vlgmr.msra.gmra.mxu0 %vm129_vm2, %v124_v23  ;;  %308 = vmatprep.mubr.f32.mxu1 %v8005_v0  ;;  %v128_v35 = vsel %vm121_vm1, %v125_v22, %v127_v30  ;;  %v6151_v39 = vld [vmem:[%s7992_s1 + $0xd0] sm:$0xff]  ;;  %v6163_v44 = vld [vmem:[%s7992_s1 + $0x88] sm:$0xff]  ;;  %v6175_v46 = vld [vmem:[%s7992_s1 + $0x80] sm:$0xff]  ;;  %v333_v48 = vsel %vm330_vm3, %v331_v40, %v332_v41  ;;  %v335_v54 = vsel %vm330_vm3, %v332_v41, %v334_v50  ;;  %v336_v56 = vrot.slane %v6089_v28, 2 }
  0x3d   :  { %213 = vmatprep.mubr.f32.mxu0 %v8005_v0  ;;  %4625 = vmatprep.subr.msk.mxu1 %vm136_vm0, %v6071_v25  ;;  %v6168_v45 = vld [vmem:[%s7992_s1 + $0xc8] sm:$0xff]  ;;  %v6182_v47 = vld [vmem:[%s7992_s1 + $0xc0] sm:$0xff]  ;;  %v451_v49 = vsel %vm448_vm4, %v449_v42, %v450_v43  ;;  %v6197_v52 = vld [vmem:[%s7992_s1 + $0x138] sm:$0xf]  ;;  %v453_v55 = vsel %vm448_vm4, %v450_v43, %v452_v51  ;;  %v454_v57 = vrot.slane %v6089_v28, 3  ;;  %v567_v19 = vrot.slane %v6046_v18, 4 }
  0x3e   :  { %4613 = vmatpush1.msk.msra.mxu0 %vm136_vm0, %v6079_v26  ;;  %4626 = vmatpush1.msk.msra.mxu1 %vm136_vm0, %v6084_v27  ;;  %v6204_v53 = vld [vmem:[%s7992_s1 + $0x130] sm:$0xf]  ;;  %v6219_v58 = vld [vmem:[%s7992_s1 + $0x128] sm:$0xff]  ;;  %v6230_v59 = vld [vmem:[%s7992_s1 + $0x120] sm:$0xff]  ;;  %v337_v62 = vsel %vm330_vm3, %v334_v50, %v336_v56  ;;  %v569_v30 = vrot.slane %v6055_v21, 4  ;;  %vm3375_vm13 = vcmask 490496  }
  0x3f   :  { %4602 = vmatmul.mubr.msk.f32.gmra.mxu1 %vm129_vm2, %v6046_v18  ;;  %376 = vmatprep.subr.mxu0 %v6102_v31  ;;  %v6235_v60 = vld [vmem:[%s7991_s0 + $0x20] sm:$0xff]  ;;  %v6240_v61 = vld [vmem:[%s7991_s0 + $0x28] sm:$0xff]  ;;  %v455_v63 = vsel %vm448_vm4, %v452_v51, %v454_v57  ;;  %v6274_v23 = vld [vmem:[%s7991_s0 + $0x30] sm:$0xff]  ;;  %vm3797_vm14 = vcmask 73728  }
  0x40   :  { %4597 = vmatmul.mubr.msk.f32.gmra.mxu0 %vm129_vm2, %v126_v29  ;;  %494 = vmatprep.subr.mxu1 %v6107_v32  ;;  %v683_v20 = vrot.slane %v6235_v60, 1  ;;  %v684_v22 = vrot.slane %v6240_v61, 1  ;;  %v1298_v42 = vld [vmem:[%s7998_s7 + $0xf8] sm:$0xff]  ;;  %v1297_v43 = vld [vmem:[%s7998_s7 + $0xf0] sm:$0xff]  ;;  %v1284_v56 = vld [vmem:[%s7998_s7 + $0x88] sm:$0xff] }
  0x41   :  { %219 = vmatprep.mubr.f32.mxu0 %v8005_v0  ;;  %314 = vmatprep.mubr.f32.mxu1 %v8005_v0  ;;  %v1290_v50 = vld [vmem:[%s7998_s7 + $0xb8] sm:$0xff]  ;;  %v1289_v51 = vld [vmem:[%s7998_s7 + $0xb0] sm:$0xff]  ;;  %v1283_v57 = vld [vmem:[%s7998_s7 + $0x80] sm:$0xff] }
  0x42   :  { %377 = vmatpush1.msra.mxu0 %v6119_v33  ;;  %495 = vmatpush1.msra.mxu1 %v6124_v34  ;;  %v685_v29 = vsel %vm121_vm1, %v683_v20, %v684_v22  ;;  %v1272_v20 = vld [vmem:[%s7998_s7 + $0x28] sm:$0xff] }
  0x43   :  { %4603 = vmatmul.mubr.msk.f32.gmra.mxu1 %vm129_vm2, %v6055_v21  ;;  %378 = vmatprep.subr.mxu0 %v6134_v36 }
  0x44   :  { %4598 = vmatmul.mubr.msk.f32.gmra.mxu0 %vm129_vm2, %v128_v35  ;;  %496 = vmatprep.subr.mxu1 %v6139_v37  ;;  %v571_v35 = vrot.slane %v6089_v28, 4 }
  0x45   :  { %379 = vmatpush1.msra.mxu0 %v6146_v38  ;;  %497 = vmatpush1.msra.mxu1 %v6151_v39 }
  0x46   :  { %380 = vmatprep.subr.mxu0 %v6163_v44  ;;  %498 = vmatprep.subr.mxu1 %v6168_v45 }
  0x47   :  { %381 = vmatpush1.msra.mxu0 %v6175_v46  ;;  %414 = vmatprep.mubr.f32.mxu0 %v8005_v0 }
  0x48   :  { %499 = vmatpush1.msra.mxu1 %v6182_v47  ;;  %532 = vmatprep.mubr.f32.mxu1 %v8005_v0 }
  0x49   :  { %4614 = vmatmul.mubr.msk.f32.vlgmr.msra.gmra.mxu0 %vm129_vm2, %v333_v48  ;;  %4627 = vmatmul.mubr.msk.f32.vlgmr.msra.gmra.mxu1 %vm129_vm2, %v451_v49  ;;  %v1292_v48 = vld [vmem:[%s7998_s7 + $0xc8] sm:$0xff]  ;;  %v1291_v49 = vld [vmem:[%s7998_s7 + $0xc0] sm:$0xff] }
  0x4a   :  { %420 = vmatprep.mubr.f32.mxu0 %v8005_v0  ;;  %538 = vmatprep.mubr.f32.mxu1 %v8005_v0 }
  0x4b   :  { %4638 = vmatprep.subr.msk.mxu0 %vm136_vm0, %v6197_v52  ;;  %4647 = vmatprep.subr.msk.mxu1 %vm136_vm0, %v5947_v1  ;;  %v6251_v1 = vld [vmem:[%s7992_s1 + $0x118] sm:$0xff] }
  0x4c   :  { %4639 = vmatpush1.msk.msra.mxu0 %vm136_vm0, %v6204_v53  ;;  %4648 = vmatpush1.msk.msra.mxu1 %vm136_vm0, %v5957_v3  ;;  %v6258_v3 = vld [vmem:[%s7992_s1 + $0x110] sm:$0xff] }
  0x4d   :  { %4615 = vmatmul.mubr.msk.f32.gmra.mxu0 %vm129_vm2, %v335_v54  ;;  %4628 = vmatmul.mubr.msk.f32.gmra.mxu1 %vm129_vm2, %v453_v55  ;;  %v1286_v54 = vld [vmem:[%s7998_s7 + $0x98] sm:$0xff]  ;;  %v1285_v55 = vld [vmem:[%s7998_s7 + $0x90] sm:$0xff] }
  0x4e   :  { %611 = vmatprep.subr.mxu0 %v6219_v58  ;;  %722 = vmatprep.subr.mxu1 %v5971_v5  ;;  %v566_v5 = vrot.slane %v6041_v17, 4  ;;  %v6281_v17 = vld [vmem:[%s7992_s1 + $0x100] sm:$0xff] }
  0x4f   :  { %426 = vmatprep.mubr.f32.mxu0 %v8005_v0  ;;  %544 = vmatprep.mubr.f32.mxu1 %v8005_v0 }
  0x50   :  { %612 = vmatpush1.msra.mxu0 %v6230_v59  ;;  %723 = vmatpush1.msra.mxu1 %v5985_v7  ;;  %v6269_v7 = vld [vmem:[%s7992_s1 + $0x108] sm:$0xff]  ;;  %v568_v18 = vsel %vm136_vm0, %v566_v5, %v567_v19  ;;  %v1274_v5 = vld [vmem:[%s7998_s7 + $0x38] sm:$0xff] }
  0x51   :  { %4616 = vmatmul.mubr.msk.f32.gmra.mxu0 %vm129_vm2, %v337_v62  ;;  %4629 = vmatmul.mubr.msk.f32.gmra.mxu1 %vm129_vm2, %v455_v63  ;;  %v1278_v62 = vld [vmem:[%s7998_s7 + $0x58] sm:$0xff]  ;;  %v1277_v63 = vld [vmem:[%s7998_s7 + $0x50] sm:$0xff] }
  0x52   :  { %613 = vmatprep.subr.mxu0 %v6251_v1  ;;  %724 = vmatprep.subr.mxu1 %v5995_v9  ;;  %v686_v9 = vrot.slane %v6274_v23, 1 }
  0x53   :  { %614 = vmatpush1.msra.mxu0 %v6258_v3  ;;  %725 = vmatpush1.msra.mxu1 %v6007_v11  ;;  %v6296_v11 = vld [vmem:[%s7991_s0 + $0x38] sm:$0xf] }
  0x54   :  { %615 = vmatprep.subr.mxu0 %v6269_v7  ;;  %726 = vmatprep.subr.mxu1 %v6019_v13  ;;  %v570_v13 = vsel %vm136_vm0, %v567_v19, %v569_v30  ;;  %v687_v21 = vsel %vm121_vm1, %v684_v22, %v686_v9  ;;  %v688_v40 = vrot.slane %v6296_v11, 1  ;;  %v1273_v19 = vld [vmem:[%s7998_s7 + $0x30] sm:$0xff]  ;;  %v1271_v22 = vld [vmem:[%s7998_s7 + $0x20] sm:$0xff] }
  0x55   :  { %616 = vmatpush1.msra.mxu0 %v6281_v17  ;;  %649 = vmatprep.mubr.f32.mxu0 %v8005_v0 }
  0x56   :  { %727 = vmatpush1.msra.mxu1 %v6029_v15  ;;  %760 = vmatprep.mubr.f32.mxu1 %v8005_v0  ;;  %v572_v15 = vsel %vm136_vm0, %v569_v30, %v571_v35  ;;  %v1301_v30 = vld [vmem:[%s7998_s7 + $0x110] sm:$0xff] }
  0x57   :  { %4640 = vmatmul.mubr.msk.f32.vlgmr.msra.gmra.mxu0 %vm129_vm2, %v568_v18  ;;  %4649 = vmatmul.mubr.msk.f32.vlgmr.msra.gmra.mxu1 %vm129_vm2, %v685_v29  ;;  %v1267_v18 = vld [vmem:[%s7998_s7] sm:$0xff]  ;;  %v1302_v29 = vld [vmem:[%s7998_s7 + $0x118] sm:$0xff] }
  0x58   :  { %655 = vmatprep.mubr.f32.mxu0 %v8005_v0  ;;  %766 = vmatprep.mubr.f32.mxu1 %v8005_v0 }
  0x59   :  { %4652 = vmatprep.subr.msk.mxu0 %vm136_vm0, %v5952_v2  ;;  %4657 = vmatprep.subr.msk.mxu1 %vm136_vm0, %v6066_v24  ;;  %v689_v2 = vsel %vm121_vm1, %v686_v9, %v688_v40  ;;  %v869_v24 = vrot.slane %v6240_v61, 2  ;;  %v1300_v9 = vld [vmem:[%s7998_s7 + $0x108] sm:$0xff] }
  0x5a   :  { %4653 = vmatpush1.msk.msra.mxu0 %vm136_vm0, %v5966_v4  ;;  %4658 = vmatpush1.msk.msra.mxu1 %vm136_vm0, %v6079_v26  ;;  %v868_v4 = vrot.slane %v6235_v60, 2  ;;  %v1072_v26 = vrot.slane %v6235_v60, 4 }
  0x5b   :  { %4641 = vmatmul.mubr.msk.f32.gmra.mxu0 %vm129_vm2, %v570_v13  ;;  %4650 = vmatmul.mubr.msk.f32.gmra.mxu1 %vm129_vm2, %v687_v21 }
  0x5c   :  { %811 = vmatprep.subr.mxu0 %v5976_v6  ;;  %907 = vmatprep.subr.mxu1 %v6102_v31  ;;  %v870_v6 = vsel %vm330_vm3, %v868_v4, %v869_v24 }
  0x5d   :  { %661 = vmatprep.mubr.f32.mxu0 %v8005_v0  ;;  %772 = vmatprep.mubr.f32.mxu1 %v8005_v0 }
  0x5e   :  { %812 = vmatpush1.msra.mxu0 %v5990_v8  ;;  %908 = vmatpush1.msra.mxu1 %v6119_v33  ;;  %v871_v8 = vrot.slane %v6274_v23, 2  ;;  %v1075_v33 = vrot.slane %v6274_v23, 4 }
  0x5f   :  { %4642 = vmatmul.mubr.msk.f32.gmra.mxu0 %vm129_vm2, %v572_v15  ;;  %4651 = vmatmul.mubr.msk.f32.gmra.mxu1 %vm129_vm2, %v689_v2 }
  0x60   :  { %813 = vmatprep.subr.mxu0 %v6002_v10  ;;  %909 = vmatprep.subr.mxu1 %v6134_v36  ;;  %v872_v10 = vsel %vm330_vm3, %v869_v24, %v871_v8 }
  0x61   :  { %814 = vmatpush1.msra.mxu0 %v6012_v12  ;;  %910 = vmatpush1.msra.mxu1 %v6146_v38  ;;  %v873_v12 = vrot.slane %v6296_v11, 2  ;;  %v1077_v38 = vrot.slane %v6296_v11, 4 }
  0x62   :  { %815 = vmatprep.subr.mxu0 %v6024_v14  ;;  %911 = vmatprep.subr.mxu1 %v6163_v44  ;;  %v1296_v44 = vld [vmem:[%s7998_s7 + $0xe8] sm:$0xff] }
  0x63   :  { %816 = vmatpush1.msra.mxu0 %v6036_v16  ;;  %849 = vmatprep.mubr.f32.mxu0 %v8005_v0  ;;  %v874_v14 = vsel %vm330_vm3, %v871_v8, %v873_v12  ;;  %v970_v16 = vrot.slane %v6235_v60, 3  ;;  %v1078_v41 = vsel %vm136_vm0, %v1075_v33, %v1077_v38 }
  0x64   :  { %912 = vmatpush1.msra.mxu1 %v6175_v46  ;;  %945 = vmatprep.mubr.f32.mxu1 %v8005_v0  ;;  %v1294_v46 = vld [vmem:[%s7998_s7 + $0xd8] sm:$0xff] }
  0x65   :  { %4654 = vmatmul.mubr.msk.f32.vlgmr.msra.gmra.mxu0 %vm129_vm2, %v6235_v60  ;;  %4659 = vmatmul.mubr.msk.f32.vlgmr.msra.gmra.mxu1 %vm129_vm2, %v870_v6  ;;  %v1280_v60 = vld [vmem:[%s7998_s7 + $0x68] sm:$0xff] }
  0x66   :  { %855 = vmatprep.mubr.f32.mxu0 %v8005_v0  ;;  %951 = vmatprep.mubr.f32.mxu1 %v8005_v0 }
  0x67   :  { %4662 = vmatprep.subr.msk.mxu0 %vm136_vm0, %v6071_v25  ;;  %4667 = vmatprep.subr.msk.mxu1 %vm136_vm0, %v6197_v52  ;;  %v971_v25 = vrot.slane %v6240_v61, 3  ;;  %v1288_v52 = vld [vmem:[%s7998_s7 + $0xa8] sm:$0xff] }
  0x68   :  { %4663 = vmatpush1.msk.msra.mxu0 %vm136_vm0, %v6084_v27  ;;  %4668 = vmatpush1.msk.msra.mxu1 %vm136_vm0, %v6204_v53  ;;  %v1073_v27 = vrot.slane %v6240_v61, 4  ;;  %v1287_v53 = vld [vmem:[%s7998_s7 + $0xa0] sm:$0xff] }
  0x69   :  { %4655 = vmatmul.mubr.msk.f32.gmra.mxu0 %vm129_vm2, %v6240_v61  ;;  %4660 = vmatmul.mubr.msk.f32.gmra.mxu1 %vm129_vm2, %v872_v10  ;;  %v972_v28 = vsel %vm448_vm4, %v970_v16, %v971_v25  ;;  %v1279_v61 = vld [vmem:[%s7998_s7 + $0x60] sm:$0xff] }
  0x6a   :  { %1009 = vmatprep.subr.mxu0 %v6107_v32  ;;  %1111 = vmatprep.subr.mxu1 %v6219_v58  ;;  %v1074_v31 = vsel %vm136_vm0, %v1072_v26, %v1073_v27  ;;  %v973_v32 = vrot.slane %v6274_v23, 3  ;;  %v1076_v36 = vsel %vm136_vm0, %v1073_v27, %v1075_v33  ;;  %v1282_v58 = vld [vmem:[%s7998_s7 + $0x78] sm:$0xff] }
  0x6b   :  { %861 = vmatprep.mubr.f32.mxu0 %v8005_v0  ;;  %957 = vmatprep.mubr.f32.mxu1 %v8005_v0 }
  0x6c   :  { %1010 = vmatpush1.msra.mxu0 %v6124_v34  ;;  %1112 = vmatpush1.msra.mxu1 %v6230_v59  ;;  %v974_v34 = vsel %vm448_vm4, %v971_v25, %v973_v32  ;;  %v1281_v59 = vld [vmem:[%s7998_s7 + $0x70] sm:$0xff] }
  0x6d   :  { %4656 = vmatmul.mubr.msk.f32.gmra.mxu0 %vm129_vm2, %v6274_v23  ;;  %4661 = vmatmul.mubr.msk.f32.gmra.mxu1 %vm129_vm2, %v874_v14  ;;  %v1269_v23 = vld [vmem:[%s7998_s7 + $0x10] sm:$0xff] }
  0x6e   :  { %1011 = vmatprep.subr.mxu0 %v6139_v37  ;;  %1113 = vmatprep.subr.mxu1 %v6251_v1  ;;  %v975_v37 = vrot.slane %v6296_v11, 3  ;;  %v1276_v1 = vld [vmem:[%s7998_s7 + $0x48] sm:$0xff]  ;;  %v1299_v11 = vld [vmem:[%s7998_s7 + $0x100] sm:$0xff] }
  0x6f   :  { %1012 = vmatpush1.msra.mxu0 %v6151_v39  ;;  %1114 = vmatpush1.msra.mxu1 %v6258_v3  ;;  %v1275_v3 = vld [vmem:[%s7998_s7 + $0x40] sm:$0xff] }
  0x70   :  { %1013 = vmatprep.subr.mxu0 %v6168_v45  ;;  %1115 = vmatprep.subr.mxu1 %v6269_v7  ;;  %v976_v39 = vsel %vm448_vm4, %v973_v32, %v975_v37  ;;  %v1295_v45 = vld [vmem:[%s7998_s7 + $0xe0] sm:$0xff]  ;;  %v1270_v7 = vld [vmem:[%s7998_s7 + $0x18] sm:$0xff] }
  0x71   :  { %1014 = vmatpush1.msra.mxu0 %v6182_v47  ;;  %1047 = vmatprep.mubr.f32.mxu0 %v8005_v0  ;;  %v1293_v47 = vld [vmem:[%s7998_s7 + $0xd0] sm:$0xff] }
  0x72   :  { %1116 = vmatpush1.msra.mxu1 %v6281_v17  ;;  %1149 = vmatprep.mubr.f32.mxu1 %v8005_v0  ;;  %v1268_v17 = vld [vmem:[%s7998_s7 + $0x8] sm:$0xff] }
  0x73   :  { %4664 = vmatmul.mubr.msk.f32.vlgmr.msra.gmra.mxu0 %vm129_vm2, %v972_v28  ;;  %4669 = vmatmul.mubr.msk.f32.vlgmr.msra.gmra.mxu1 %vm129_vm2, %v1074_v31 }
  0x74   :  { %1053 = vmatprep.mubr.f32.mxu0 %v8005_v0  ;;  %1155 = vmatprep.mubr.f32.mxu1 %v8005_v0 }
  0x75   :  { %1306 = vmatprep.subr.mxu0 %v1298_v42  ;;  %1382 = vmatprep.subr.mxu1 %v1298_v42 }
  0x76   :  { %1307 = vmatpush1.msra.mxu0 %v1297_v43  ;;  %1383 = vmatpush1.msra.mxu1 %v1297_v43 }
  0x77   :  { %4665 = vmatmul.mubr.msk.f32.gmra.mxu0 %vm129_vm2, %v974_v34  ;;  %4670 = vmatmul.mubr.msk.f32.gmra.mxu1 %vm129_vm2, %v1076_v36 }
  0x78   :  { %1059 = vmatprep.mubr.f32.mxu0 %v8005_v0  ;;  %1161 = vmatprep.mubr.f32.mxu1 %v8005_v0 }
  0x79   :  { %1308 = vmatprep.subr.mxu0 %v1296_v44  ;;  %1384 = vmatprep.subr.mxu1 %v1296_v44 }
  0x7a   :  { %1309 = vmatpush1.msra.mxu0 %v1295_v45  ;;  %1385 = vmatpush1.msra.mxu1 %v1295_v45 }
  0x7b   :  { %4666 = vmatmul.mubr.msk.f32.gmra.mxu0 %vm129_vm2, %v976_v39  ;;  %4671 = vmatmul.mubr.msk.f32.gmra.mxu1 %vm129_vm2, %v1078_v41 }
  0x7c   :  { %1310 = vmatprep.subr.mxu0 %v1294_v46  ;;  %1386 = vmatprep.subr.mxu1 %v1294_v46 }
  0x7d   :  { %1311 = vmatpush1.msra.mxu0 %v1293_v47  ;;  %1387 = vmatpush1.msra.mxu1 %v1293_v47 }
  0x7e   :  { %1312 = vmatprep.subr.mxu0 %v1292_v48  ;;  %1388 = vmatprep.subr.mxu1 %v1292_v48 }
  0x7f   :  { %1313 = vmatpush1.msra.mxu0 %v1291_v49  ;;  %1389 = vmatpush1.msra.mxu1 %v1291_v49 }
  0x80   :  { %1314 = vmatprep.subr.mxu0 %v1290_v50  ;;  %1390 = vmatprep.subr.mxu1 %v1290_v50 }
  0x81   :  { %1315 = vmatpush1.msra.mxu0 %v1289_v51  ;;  %1391 = vmatpush1.msra.mxu1 %v1289_v51 }
  0x82   :  { %1316 = vmatprep.subr.mxu0 %v1288_v52  ;;  %1392 = vmatprep.subr.mxu1 %v1288_v52 }
  0x83   :  { %1317 = vmatpush1.msra.mxu0 %v1287_v53  ;;  %1393 = vmatpush1.msra.mxu1 %v1287_v53 }
  0x84   :  { %1318 = vmatprep.subr.mxu0 %v1286_v54  ;;  %1394 = vmatprep.subr.mxu1 %v1286_v54 }
  0x85   :  { %1319 = vmatpush1.msra.mxu0 %v1285_v55  ;;  %1395 = vmatpush1.msra.mxu1 %v1285_v55 }
  0x86   :  { %1320 = vmatprep.subr.mxu0 %v1284_v56  ;;  %1396 = vmatprep.subr.mxu1 %v1284_v56 }
  0x87   :  { %1321 = vmatpush1.msra.mxu0 %v1283_v57  ;;  %1397 = vmatpush1.msra.mxu1 %v1283_v57 }
  0x88   :  { %1322 = vmatprep.subr.mxu0 %v1282_v58  ;;  %1398 = vmatprep.subr.mxu1 %v1282_v58 }
  0x89   :  { %1323 = vmatpush1.msra.mxu0 %v1281_v59  ;;  %1399 = vmatpush1.msra.mxu1 %v1281_v59 }
  0x8a   :  { %1324 = vmatprep.subr.mxu0 %v1280_v60  ;;  %1400 = vmatprep.subr.mxu1 %v1280_v60 }
  0x8b   :  { %1325 = vmatpush1.msra.mxu0 %v1279_v61  ;;  %1401 = vmatpush1.msra.mxu1 %v1279_v61 }
  0x8c   :  { %1326 = vmatprep.subr.mxu0 %v1278_v62  ;;  %1402 = vmatprep.subr.mxu1 %v1278_v62 }
  0x8d   :  { %1327 = vmatpush1.msra.mxu0 %v1277_v63  ;;  %1403 = vmatpush1.msra.mxu1 %v1277_v63 }
  0x8e   :  { %1328 = vmatprep.subr.mxu0 %v1276_v1  ;;  %1404 = vmatprep.subr.mxu1 %v1276_v1 }
  0x8f   :  { %1329 = vmatpush1.msra.mxu0 %v1275_v3  ;;  %1405 = vmatpush1.msra.mxu1 %v1275_v3 }
  0x90   :  { %1330 = vmatprep.subr.mxu0 %v1274_v5  ;;  %1406 = vmatprep.subr.mxu1 %v1274_v5 }
  0x91   :  { %1331 = vmatpush1.msra.mxu0 %v1273_v19  ;;  %1407 = vmatpush1.msra.mxu1 %v1273_v19 }
  0x92   :  { %1332 = vmatprep.subr.mxu0 %v1272_v20  ;;  %1408 = vmatprep.subr.mxu1 %v1272_v20 }
  0x93   :  { %1333 = vmatpush1.msra.mxu0 %v1271_v22  ;;  %1409 = vmatpush1.msra.mxu1 %v1271_v22 }
  0x94   :  { %1334 = vmatprep.subr.mxu0 %v1270_v7  ;;  %1410 = vmatprep.subr.mxu1 %v1270_v7 }
  0x95   :  { %1335 = vmatpush1.msra.mxu0 %v1269_v23  ;;  %1411 = vmatpush1.msra.mxu1 %v1269_v23 }
  0x96   :  { %1336 = vmatprep.subr.mxu0 %v1268_v17  ;;  %1412 = vmatprep.subr.mxu1 %v1268_v17 }
  0x97   :  { %1337 = vmatpush1.msra.mxu0 %v1267_v18  ;;  %1413 = vmatpush1.msra.mxu1 %v1267_v18 }
  0x98   :  { %1366 = vmatprep.subr.mxu0 %v1302_v29  ;;  %1442 = vmatprep.subr.mxu1 %v1302_v29 }
  0x99   :  { %1367 = vmatpush2.msra.mxu0 %v1301_v30  ;;  %1443 = vmatpush2.msra.mxu1 %v1301_v30 }
  0x9a   :  { %1368 = vmatprep.subr.mxu0 %v1300_v9  ;;  %1444 = vmatprep.subr.mxu1 %v1300_v9 }
  0x9b   :  { %1369 = vmatpush2.msra.mxu0 %v1299_v11  ;;  %1445 = vmatpush2.msra.mxu1 %v1299_v11 }
  0x9c   :  { %1575 = vmatprep.subr.mxu0 %v8005_v0  ;;  %1674 = vmatprep.subr.mxu1 %v8005_v0 }
  0xfb   :  { %v304_v21 = vpop.f32.mrf.mxu1 }
  0xfc   :  { %v209_v13 = vpop.f32.mrf.mxu0 }
  0xfd   :  { %v306_v40 = vpop.f32.mrf.mxu1  ;;  %v305_v58 = vadd.f32 %v304_v21, %v209_v13 }
  0xfe   :  { %v211_v35 = vpop.f32.mrf.mxu0 }
  0xff   :  { %v310_v2 = vpop.f32.mrf.mxu1  ;;  %v307_v52 = vadd.f32 %v306_v40, %v211_v35 }
 0x100   :  { %v215_v15 = vpop.f32.mrf.mxu0 }
 0x101   :  { %v312_v24 = vpop.f32.mrf.mxu1  ;;  %v311_v53 = vadd.f32 %v310_v2, %v215_v15 }
 0x102   :  { %v217_v4 = vpop.f32.mrf.mxu0 }
 0x103   :  { %v316_v8 = vpop.f32.mrf.mxu1  ;;  %v313_v51 = vadd.f32 %v312_v24, %v217_v4 }
 0x104   :  { %v221_v6 = vpop.f32.mrf.mxu0 }
 0x105   :  { %v318_v12 = vpop.f32.mrf.mxu1  ;;  %v317_v61 = vadd.f32 %v316_v8, %v221_v6 }
 0x106   :  { %v223_v10 = vpop.f32.mrf.mxu0 }
 0x107   :  { %v319_v54 = vadd.f32 %v318_v12, %v223_v10 }
 0x109   :  { %v416_v14 = vpop.f32.mrf.mxu0  ;;  %v534_v16 = vpop.f32.mrf.mxu1 }
 0x10a   :  { %v433_v3 = vadd.f32 %v416_v14, %v305_v58 }
 0x10b   :  { %v418_v25 = vpop.f32.mrf.mxu0  ;;  %v536_v26 = vpop.f32.mrf.mxu1 }
 0x10c   :  { %v434_v59 = vadd.f32 %v418_v25, %v307_v52  ;;  %v551_v9 = vadd.f32 %v534_v16, %v433_v3 }
 0x10d   :  { %v422_v27 = vpop.f32.mrf.mxu0  ;;  %v540_v28 = vpop.f32.mrf.mxu1 }
 0x10e   :  { %v435_v60 = vadd.f32 %v422_v27, %v311_v53  ;;  %v552_v7 = vadd.f32 %v536_v26, %v434_v59 }
 0x10f   :  { %v424_v31 = vpop.f32.mrf.mxu0  ;;  %v542_v32 = vpop.f32.mrf.mxu1 }
 0x110   :  { %v436_v55 = vadd.f32 %v424_v31, %v313_v51  ;;  %v553_v23 = vadd.f32 %v540_v28, %v435_v60 }
 0x111   :  { %v428_v33 = vpop.f32.mrf.mxu0  ;;  %v546_v34 = vpop.f32.mrf.mxu1 }
 0x112   :  { %v554_v5 = vadd.f32 %v542_v32, %v436_v55  ;;  %v437_v19 = vadd.f32 %v428_v33, %v317_v61 }
 0x113   :  { %v430_v36 = vpop.f32.mrf.mxu0  ;;  %v548_v37 = vpop.f32.mrf.mxu1 }
 0x114   :  { %v438_v62 = vadd.f32 %v430_v36, %v319_v54  ;;  %v555_v21 = vadd.f32 %v546_v34, %v437_v19 }
 0x116   :  { %v556_v17 = vadd.f32 %v548_v37, %v438_v62 }
 0x117   :  { %v651_v38 = vpop.f32.mrf.mxu0  ;;  %v762_v39 = vpop.f32.mrf.mxu1 }
 0x118   :  { %v6526_v2 = vadd.f32 %v651_v38, %v551_v9 }
 0x119   :  { %v653_v41 = vpop.f32.mrf.mxu0  ;;  %v764_v42 = vpop.f32.mrf.mxu1 }
 0x11a   :  { %v6520_v11 = vadd.f32 %v653_v41, %v552_v7  ;;  %v1194_v27 = vmul.f32 %v6526_v2, %v6526_v2 }
 0x11b   :  { %v657_v43 = vpop.f32.mrf.mxu0  ;;  %v768_v44 = vpop.f32.mrf.mxu1 }
 0x11c   :  { %v6522_v13 = vadd.f32 %v657_v43, %v553_v23  ;;  %v1195_v10 = vmul.f32 %v6520_v11, %v6520_v11  ;;  %v1183_v28 = vsel %vm1182_vm5, %v6520_v11, 0.0 }
 0x11d   :  { %v659_v45 = vpop.f32.mrf.mxu0  ;;  %v770_v46 = vpop.f32.mrf.mxu1 }
 0x11e   :  { %v6518_v18 = vadd.f32 %v659_v45, %v554_v5  ;;  %v1196_v12 = vmul.f32 %v6522_v13, %v6522_v13  ;;  %v1174_v33 = vadd.f32 %v6522_v13, %v6526_v2  ;;  %v1208_v41 = vsel %vm1182_vm5, %v1195_v10, 0.0 }
 0x11f   :  { %v663_v47 = vpop.f32.mrf.mxu0  ;;  %v6514_v48 = vpop.f32.mrf.mxu1 }
 0x120   :  { %v1197_v4 = vmul.f32 %v6518_v18, %v6518_v18  ;;  %v6530_v24 = vadd.f32 %v663_v47, %v555_v21  ;;  %v1184_v14 = vsel %vm1182_vm5, %v6518_v18, 0.0 }
 0x121   :  { %v665_v49 = vpop.f32.mrf.mxu0  ;;  %v6516_v50 = vpop.f32.mrf.mxu1  ;;  %v1185_v34 = vadd.f32 %v1184_v14, %v1183_v28 }
 0x122   :  { %v6524_v35 = vadd.f32 %v665_v49, %v556_v17  ;;  %v1209_v36 = vsel %vm1182_vm5, %v1197_v4, 0.0  ;;  %v1198_v37 = vmul.f32 %v6530_v24, %v6530_v24  ;;  %v1175_v47 = vadd.f32 %v1174_v33, %v6530_v24 }
 0x123   :  { %v1210_v54 = vadd.f32 %v1209_v36, %v1208_v41 }
 0x124   :  { %v1199_v25 = vmul.f32 %v6524_v35, %v6524_v35  ;;  %v1186_v31 = vsel %vm1182_vm5, %v6524_v35, 0.0  ;;  %v1176_v5 = vrot.slane %v1175_v47, 4 }
 0x125   :  { %v851_v56 = vpop.f32.mrf.mxu0  ;;  %v947_v57 = vpop.f32.mrf.mxu1  ;;  %v1187_v49 = vadd.f32 %v1186_v31, %v1185_v34 }
 0x126   :  { %v852_v26 = vadd.f32 %v851_v56, %v762_v39 }
 0x127   :  { %v853_v63 = vpop.f32.mrf.mxu0  ;;  %v949_v1 = vpop.f32.mrf.mxu1  ;;  %v1188_v19 = vrot.slane %v1187_v49, 4 }
 0x128   :  { %v854_v16 = vadd.f32 %v853_v63, %v764_v42  ;;  %v1200_v42 = vadd.f32 %v1196_v12, %v1194_v27  ;;  %v964_v51 = vadd.f32 %v947_v57, %v852_v26 }
 0x129   :  { %v857_v20 = vpop.f32.mrf.mxu0  ;;  %v953_v22 = vpop.f32.mrf.mxu1 }
 0x12a   :  { %v858_v32 = vadd.f32 %v857_v20, %v768_v44  ;;  %v965_v43 = vadd.f32 %v949_v1, %v854_v16  ;;  %v1211_v44 = vsel %vm1182_vm5, %v1199_v25, 0.0  ;;  %v1201_v58 = vadd.f32 %v1200_v42, %v1198_v37 }
 0x12b   :  { %v859_v29 = vpop.f32.mrf.mxu0  ;;  %v955_v30 = vpop.f32.mrf.mxu1  ;;  %v1212_v63 = vadd.f32 %v1211_v44, %v1210_v54 }
 0x12c   :  { %v860_v45 = vadd.f32 %v859_v29, %v770_v46  ;;  %v966_v55 = vadd.f32 %v953_v22, %v858_v32  ;;  %v1202_v17 = vrot.slane %v1201_v58, 4 }
 0x12d   :  { %v863_v40 = vpop.f32.mrf.mxu0  ;;  %v959_v15 = vpop.f32.mrf.mxu1 }
 0x12e   :  { %v864_v59 = vadd.f32 %v863_v40, %v6514_v48  ;;  %v967_v1 = vadd.f32 %v955_v30, %v860_v45  ;;  %v1213_v40 = vrot.slane %v1212_v63, 4 }
 0x12f   :  { %v865_v6 = vpop.f32.mrf.mxu0  ;;  %v961_v8 = vpop.f32.mrf.mxu1 }
 0x130   :  { %v866_v46 = vadd.f32 %v865_v6, %v6516_v50  ;;  %v968_v29 = vadd.f32 %v959_v15, %v864_v59  ;;  %v1177_v50 = vadd.f32 %v1176_v5, %v1175_v47  ;;  %v1189_v6 = vadd.f32 %v1188_v19, %v1187_v49 }
 0x131   :  { %v1214_v33 = vadd.f32 %v1213_v40, %v1212_v63 }
 0x132   :  { %v969_v30 = vadd.f32 %v961_v8, %v866_v46  ;;  %v1203_v8 = vadd.f32 %v1202_v17, %v1201_v58  ;;  %v1178_v54 = vrot.slane %v1177_v50, 2 }
 0x133   :  { %v1049_v38 = vpop.f32.mrf.mxu0  ;;  %v1151_v39 = vpop.f32.mrf.mxu1 }
 0x134   :  { %v1066_v60 = vadd.f32 %v1049_v38, %v964_v51  ;;  %v1179_v19 = vadd.f32 %v1178_v54, %v1177_v50  ;;  %v6644_v54 = vld [vmem:[%s7994_s3 + $0xf0] sm:$0xff] }
 0x135   :  { %v1051_v52 = vpop.f32.mrf.mxu0  ;;  %v1153_v53 = vpop.f32.mrf.mxu1 }
 0x136   :  { %v1067_v56 = vadd.f32 %v1051_v52, %v965_v43  ;;  %v6560_v48 = vadd.f32 %v1151_v39, %v1066_v60  ;;  %v1190_v43 = vrot.slane %v1189_v6, 2 }
 0x137   :  { %v1055_v61 = vpop.f32.mrf.mxu0  ;;  %v1157_v62 = vpop.f32.mrf.mxu1 }
 0x138   :  { %v1068_v3 = vadd.f32 %v1055_v61, %v966_v55  ;;  %v6556_v7 = vadd.f32 %v1153_v53, %v1067_v56  ;;  %v1240_v27 = vmul.f32 %v6560_v48, %v6560_v48  ;;  %v1215_v55 = vrot.slane %v1214_v33, 2 }
 0x139   :  { %v1057_v20 = vpop.f32.mrf.mxu0  ;;  %v1159_v57 = vpop.f32.mrf.mxu1  ;;  %v1191_v63 = vadd.f32 %v1190_v43, %v1189_v6 }
 0x13a   :  { %v6558_v23 = vadd.f32 %v1157_v62, %v1068_v3  ;;  %v1069_v22 = vadd.f32 %v1057_v20, %v967_v1  ;;  %v1241_v16 = vmul.f32 %v6556_v7, %v6556_v7  ;;  %v1227_v34 = vsel %vm1182_vm5, %v6556_v7, 0.0 }
 0x13b   :  { %v1061_v9 = vpop.f32.mrf.mxu0  ;;  %v1163_v21 = vpop.f32.mrf.mxu1  ;;  %v1204_v62 = vrot.slane %v1203_v8, 2  ;;  %v1216_v20 = vadd.f32 %v1215_v55, %v1214_v33  ;;  %v6653_v55 = vld [vmem:[%s7994_s3 + $0x58] sm:$0xff] }
 0x13c   :  { %v6562_v4 = vadd.f32 %v1159_v57, %v1069_v22  ;;  %v1242_v10 = vmul.f32 %v6558_v23, %v6558_v23  ;;  %v1070_v12 = vadd.f32 %v1061_v9, %v968_v29  ;;  %v1219_v28 = vadd.f32 %v6558_v23, %v6560_v48 }
 0x13d   :  { %v1063_v14 = vpop.f32.mrf.mxu0  ;;  %v1165_v32 = vpop.f32.mrf.mxu1  ;;  %v1254_v45 = vsel %vm1182_vm5, %v1241_v16, 0.0  ;;  %v1205_v9 = vadd.f32 %v1204_v62, %v1203_v8  ;;  %v1217_v6 = vrot.slane %v1216_v20, 1  ;;  %v6695_v62 = vld [vmem:[%s7994_s3 + $0x40] sm:$0xff] }
 0x13e   :  { %v1228_v15 = vsel %vm1182_vm5, %v6562_v4, 0.0  ;;  %v1243_v25 = vmul.f32 %v6562_v4, %v6562_v4  ;;  %v1071_v26 = vadd.f32 %v1063_v14, %v969_v30  ;;  %v6576_v31 = vadd.f32 %v1163_v21, %v1070_v12 }
 0x13f   :  { %v1246_v38 = vadd.f32 %v1242_v10, %v1240_v27  ;;  %v1229_v39 = vadd.f32 %v1228_v15, %v1227_v34  ;;  %v1192_v21 = vrot.slane %v1191_v63, 1  ;;  %v1180_v14 = vrot.slane %v1179_v19, 1 }
 0x140   :  { %v1255_v36 = vsel %vm1182_vm5, %v1243_v25, 0.0  ;;  %v6581_v37 = vadd.f32 %v1165_v32, %v1071_v26  ;;  %v1220_v41 = vadd.f32 %v1219_v28, %v6576_v31  ;;  %v1244_v42 = vmul.f32 %v6576_v31, %v6576_v31 }
 0x141   :  { %v1256_v44 = vadd.f32 %v1255_v36, %v1254_v45  ;;  %v1206_v26 = vrot.slane %v1205_v9, 1  ;;  %v1193_v28 = vadd.f32 %v1192_v21, %v1191_v63  ;;  %v1181_v33 = vadd.f32 %v1180_v14, %v1179_v19  ;;  %v6597_v45 = vld [vmem:[%s7994_s3 + $0x78] sm:$0xff]  ;;  %v6700_v63 = vld [vmem:[%s7994_s3 + $0xd0] sm:$0xff]  ;;  %v6733_v19 = vld [vmem:[%s7994_s3 + $0x28] sm:$0xff] }
 0x142   :  { %v1230_v47 = vsel %vm1182_vm5, %v6581_v37, 0.0  ;;  %v1245_v49 = vmul.f32 %v6581_v37, %v6581_v37  ;;  %v1221_v51 = vrot.slane %v1220_v41, 4  ;;  %v1247_v52 = vadd.f32 %v1246_v38, %v1244_v42  ;;  %v6780_v21 = vld [vmem:[%s7994_s3 + $0xa0] sm:$0xff]  ;;  %v6817_v14 = vld [vmem:[%s7994_s3 + $0x88] sm:$0xff] }
 0x143   :  { %v1231_v53 = vadd.f32 %v1230_v47, %v1229_v39  ;;  %v1218_v38 = vadd.f32 %v1217_v6, %v1216_v20  ;;  %v1207_v39 = vadd.f32 %v1206_v26, %v1205_v9  ;;  %v6602_v47 = vld [vmem:[%s7994_s3 + $0x108] sm:$0xff]  ;;  %v6738_v20 = vld [vmem:[%s7994_s3 + $0xb8] sm:$0xff]  ;;  %v6775_v9 = vld [vmem:[%s7994_s3 + $0x10] sm:$0xff]  ;;  %8021 = vst [vmem:[#allocation19_spill] sm:$0xff] %v6817_v14 }
 0x144   :  { %v1257_v56 = vsel %vm1182_vm5, %v1245_v49, 0.0  ;;  %v1222_v58 = vadd.f32 %v1221_v51, %v1220_v41  ;;  %v1248_v59 = vrot.slane %v1247_v52, 4  ;;  %v6611_v49 = vld [vmem:[%s7994_s3 + $0x70] sm:$0xff]  ;;  %v6625_v51 = vld [vmem:[%s7994_s3 + $0x68] sm:$0xff] }
 0x145   :  { %v1232_v60 = vrot.slane %v1231_v53, 4  ;;  %v1258_v61 = vadd.f32 %v1257_v56, %v1256_v44  ;;  %v6616_v44 = vld [vmem:[%s7994_s3 + $0x100] sm:$0xff]  ;;  %v6658_v56 = vld [vmem:[%s7994_s3 + $0xe8] sm:$0xff]  ;;  %v6840_v6 = vld [vmem:[%s7994_s3 + $0x110] sm:$0xff] }
 0x146   :  { %v1223_v1 = vrot.slane %v1222_v58, 2  ;;  %v1249_v46 = vadd.f32 %v1248_v59, %v1247_v52  ;;  %v6630_v52 = vld [vmem:[%s7994_s3 + $0xf8] sm:$0xff]  ;;  %v6672_v59 = vld [vmem:[%s7994_s3 + $0xe0] sm:$0xff]  ;;  %8024 = vst [vmem:[#allocation22_spill] sm:$0xff] %v6840_v6 }
 0x147   :  { %v1233_v3 = vadd.f32 %v1232_v60, %v1231_v53  ;;  %v1259_v5 = vrot.slane %v1258_v61, 4  ;;  %v6639_v53 = vld [vmem:[%s7994_s3 + $0x60] sm:$0xff]  ;;  %v6681_v60 = vld [vmem:[%s7994_s3 + $0x48] sm:$0xff] }
 0x148   :  { %v1224_v57 = vadd.f32 %v1223_v1, %v1222_v58  ;;  %v1250_v22 = vrot.slane %v1249_v46, 2  ;;  %v6667_v58 = vld [vmem:[%s7994_s3 + $0x50] sm:$0xff]  ;;  %v6709_v1 = vld [vmem:[%s7994_s3 + $0x38] sm:$0xff] }
 0x149   :  { %v1234_v17 = vrot.slane %v1233_v3, 2  ;;  %v1260_v29 = vadd.f32 %v1259_v5, %v1258_v61  ;;  %v6686_v61 = vld [vmem:[%s7994_s3 + $0xd8] sm:$0xff]  ;;  %v6726_v5 = vld [vmem:[%s7994_s3 + $0xc0] sm:$0xff] }
 0x14a   :  { %v1225_v40 = vrot.slane %v1224_v57, 1  ;;  %v1251_v30 = vadd.f32 %v1250_v22, %v1249_v46  ;;  %v6714_v46 = vld [vmem:[%s7994_s3 + $0xc8] sm:$0xff]  ;;  %v6752_v22 = vld [vmem:[%s7994_s3 + $0xb0] sm:$0xff] }
 0x14b   :  { %v1235_v10 = vadd.f32 %v1234_v17, %v1233_v3  ;;  %v1261_v12 = vrot.slane %v1260_v29, 2  ;;  %v6719_v3 = vld [vmem:[%s7994_s3 + $0x30] sm:$0xff]  ;;  %v6761_v17 = vld [vmem:[%s7994_s3 + $0x18] sm:$0xff] }
 0x14c   :  { %v1252_v16 = vrot.slane %v1251_v30, 1  ;;  %v1226_v27 = vadd.f32 %v1225_v40, %v1224_v57  ;;  %v6747_v57 = vld [vmem:[%s7994_s3 + $0x20] sm:$0xff]  ;;  %v6789_v40 = vld [vmem:[%s7994_s3 + $0x8] sm:$0xff] }
 0x14d   :  { %v1236_v15 = vrot.slane %v1235_v10, 1  ;;  %v1262_v25 = vadd.f32 %v1261_v12, %v1260_v29  ;;  %v6766_v29 = vld [vmem:[%s7994_s3 + $0xa8] sm:$0xff]  ;;  %8017 = vst [vmem:[#allocation15_spill] sm:$0xff] %v6789_v40  ;;  %v6808_v12 = vld [vmem:[%s7994_s3 + $0x90] sm:$0xff] }
 0x14e   :  { %v1253_v34 = vadd.f32 %v1252_v16, %v1251_v30  ;;  %v1238_v41 = vadd.f32 %v1226_v27, %v1181_v33  ;;  %v6794_v30 = vld [vmem:[%s7994_s3 + $0x98] sm:$0xff]  ;;  %8020 = vst [vmem:[#allocation18_spill] sm:$0xff] %v6808_v12 }
 0x14f   :  { %v1237_v50 = vadd.f32 %v1236_v15, %v1235_v10  ;;  %v1263_v32 = vrot.slane %v1262_v25, 1  ;;  %8018 = vst [vmem:[#allocation16_spill] sm:$0xff] %v6794_v30  ;;  %v6803_v10 = vld [vmem:[%s7994_s3] sm:$0xff]  ;;  %v6822_v16 = vld [vmem:[%s7994_s3 + $0x118] sm:$0xff] }
 0x150   :  { %v1265_v43 = vadd.f32 %v1253_v34, %v1207_v39  ;;  %8019 = vst [vmem:[#allocation17_spill] sm:$0xff] %v6803_v10  ;;  %8022 = vst [vmem:[#allocation20_spill] sm:$0xff] %v6822_v16  ;;  %v6831_v15 = vld [vmem:[%s7994_s3 + $0x80] sm:$0xff] }
 0x151   :  { %v1239_v36 = vadd.f32 %v1237_v50, %v1193_v28  ;;  %v1264_v8 = vadd.f32 %v1263_v32, %v1262_v25  ;;  %8023 = vst [vmem:[#allocation21_spill] sm:$0xff] %v6831_v15 }
 0x153   :  { %4672 = vmatprep.mubr.msk.f32.mxu0 %vm1182_vm5, %v1239_v36  ;;  %v1266_v42 = vadd.f32 %v1264_v8, %v1218_v38 }
 0x154   :  { %1371 = vmatmul.mubr.f32.vlgmr.msra.gmra.mxu0 %v1238_v41 }
 0x155   :  { %4673 = vmatprep.mubr.msk.f32.mxu1 %vm1182_vm5, %v1266_v42  ;;  %1576 = vmatpush1.msra.mxu0 %v6597_v45 }
 0x156   :  { %1447 = vmatmul.mubr.f32.vlgmr.msra.gmra.mxu1 %v1265_v43  ;;  %1577 = vmatprep.subr.mxu0 %v8005_v0 }
 0x157   :  { %1675 = vmatpush1.msra.mxu1 %v6602_v47  ;;  %1578 = vmatpush1.msra.mxu0 %v6611_v49 }
 0x158   :  { %1676 = vmatprep.subr.mxu1 %v8005_v0  ;;  %1579 = vmatprep.subr.mxu0 %v8005_v0 }
 0x159   :  { %1677 = vmatpush1.msra.mxu1 %v6616_v44  ;;  %1580 = vmatpush1.msra.mxu0 %v6625_v51 }
 0x15a   :  { %1678 = vmatprep.subr.mxu1 %v8005_v0  ;;  %1581 = vmatprep.subr.mxu0 %v8005_v0 }
 0x15b   :  { %1679 = vmatpush1.msra.mxu1 %v6630_v52  ;;  %1582 = vmatpush1.msra.mxu0 %v6639_v53 }
 0x15c   :  { %1680 = vmatprep.subr.mxu1 %v8005_v0  ;;  %1583 = vmatprep.subr.mxu0 %v8005_v0 }
 0x15d   :  { %1681 = vmatpush1.msra.mxu1 %v6644_v54  ;;  %1584 = vmatpush1.msra.mxu0 %v6653_v55 }
 0x15e   :  { %1682 = vmatprep.subr.mxu1 %v8005_v0  ;;  %1585 = vmatprep.subr.mxu0 %v8005_v0 }
 0x15f   :  { %1683 = vmatpush1.msra.mxu1 %v6658_v56  ;;  %1586 = vmatpush1.msra.mxu0 %v6667_v58 }
 0x160   :  { %1684 = vmatprep.subr.mxu1 %v8005_v0  ;;  %1587 = vmatprep.subr.mxu0 %v8005_v0 }
 0x161   :  { %1685 = vmatpush1.msra.mxu1 %v6672_v59  ;;  %1588 = vmatpush1.msra.mxu0 %v6681_v60 }
 0x162   :  { %1686 = vmatprep.subr.mxu1 %v8005_v0  ;;  %1589 = vmatprep.subr.mxu0 %v8005_v0 }
 0x163   :  { %1687 = vmatpush1.msra.mxu1 %v6686_v61  ;;  %1590 = vmatpush1.msra.mxu0 %v6695_v62 }
 0x164   :  { %1688 = vmatprep.subr.mxu1 %v8005_v0  ;;  %1591 = vmatprep.subr.mxu0 %v8005_v0 }
 0x165   :  { %1689 = vmatpush1.msra.mxu1 %v6700_v63  ;;  %1592 = vmatpush1.msra.mxu0 %v6709_v1 }
 0x166   :  { %1690 = vmatprep.subr.mxu1 %v8005_v0  ;;  %1593 = vmatprep.subr.mxu0 %v8005_v0 }
 0x167   :  { %1691 = vmatpush1.msra.mxu1 %v6714_v46  ;;  %1594 = vmatpush1.msra.mxu0 %v6719_v3 }
 0x168   :  { %1692 = vmatprep.subr.mxu1 %v8005_v0  ;;  %1595 = vmatprep.subr.mxu0 %v8005_v0 }
 0x169   :  { %1693 = vmatpush1.msra.mxu1 %v6726_v5  ;;  %1596 = vmatpush1.msra.mxu0 %v6733_v19 }
 0x16a   :  { %1694 = vmatprep.subr.mxu1 %v8005_v0  ;;  %1597 = vmatprep.subr.mxu0 %v8005_v0 }
 0x16b   :  { %1695 = vmatpush1.msra.mxu1 %v6738_v20  ;;  %1598 = vmatpush1.msra.mxu0 %v6747_v57 }
 0x16c   :  { %1696 = vmatprep.subr.mxu1 %v8005_v0  ;;  %1599 = vmatprep.subr.mxu0 %v8005_v0 }
 0x16d   :  { %1697 = vmatpush1.msra.mxu1 %v6752_v22  ;;  %1600 = vmatpush1.msra.mxu0 %v6761_v17 }
 0x16e   :  { %1698 = vmatprep.subr.mxu1 %v8005_v0  ;;  %1601 = vmatprep.subr.mxu0 %v8005_v0 }
 0x16f   :  { %1699 = vmatpush1.msra.mxu1 %v6766_v29  ;;  %1602 = vmatpush1.msra.mxu0 %v6775_v9 }
 0x170   :  { %1700 = vmatprep.subr.mxu1 %v8005_v0  ;;  %1603 = vmatprep.subr.mxu0 %v8005_v0 }
 0x171   :  { %1701 = vmatpush1.msra.mxu1 %v6780_v21  ;;  %1604 = vmatpush1.msra.mxu0 %v6789_v40  ;;  %v1461_v40 = vld [vmem:[#allocation7] ss:$2 sm:$0x3] }
 0x172   :  { %1702 = vmatprep.subr.mxu1 %v8005_v0  ;;  %1605 = vmatprep.subr.mxu0 %v8005_v0 }
 0x173   :  { %1703 = vmatpush1.msra.mxu1 %v6794_v30  ;;  %1606 = vmatpush1.msra.mxu0 %v6803_v10 }
 0x174   :  { %1704 = vmatprep.subr.mxu1 %v8005_v0  ;;  %1635 = vmatprep.subr.mxu0 %v8005_v0 }
 0x175   :  { %1705 = vmatpush1.msra.mxu1 %v6808_v12  ;;  %1636 = vmatpush2.msra.mxu0 %v6817_v14 }
 0x176   :  { %1734 = vmatprep.subr.mxu1 %v8005_v0  ;;  %1637 = vmatprep.subr.mxu0 %v8005_v0 }
 0x177   :  { %1735 = vmatpush2.msra.mxu1 %v6822_v16  ;;  %1638 = vmatpush2.msra.mxu0 %v6831_v15  ;;  %v5857_v15 = vmov 1966171168   ;;  %v1472_v16 = vlaneseq }
 0x178   :  { %1736 = vmatprep.subr.mxu1 %v8005_v0 }
 0x179   :  { %1737 = vmatpush2.msra.mxu1 %v6840_v6  ;;  %v1470_v6 = vunpack.c.l.s4 %v5857_v15  ;;  %v1473_v14 = vshrl.u32 %v1472_v16, 7 }
 0x214   :  { %v1372_v25 = vpop.f32.mrf.mxu0 }
 0x215   :  { %v1377_v26 = vmul.f32 0.00086805556, %v1372_v25  ;;  %v1471_v25 = vunpack.c.0.s8 %v1470_v6  ;;  %v1486_v6 = vld [vmem:[#allocation7 + $0x1] ss:$2 sm:$0x3] }
 0x216   :  { %v1374_v27 = vpop.f32.mrf.mxu0  ;;  %v1448_v28 = vpop.f32.mrf.mxu1 }
 0x217   :  { %v1455_v50 = vmul.f32 %v1377_v26, %v1377_v26  ;;  %v1378_v32 = vmul.f32 0.00086805556, %v1374_v27  ;;  %v1453_v33 = vmul.f32 0.00086805556, %v1448_v28  ;;  %v1474_v10 = vsub.s32 %v1471_v25, %v1473_v14 }
 0x218   :  { %v1450_v34 = vpop.f32.mrf.mxu1 }
 0x219   :  { %v1456_v36 = vmul.f32 %v1378_v32, %v1378_v32  ;;  %v1457_v38 = vsub.f32 %v1453_v33, %v1455_v50  ;;  %v1454_v8 = vmul.f32 0.00086805556, %v1450_v34  ;;  %v6844_v33 = vsub.s32 0, %v1473_v14 }
 0x21a   :  { %v1494_v34 = vsub.s32 1, %v1473_v14 }
 0x21b   :  { %v1459_v39 = vmax.f32 %v1457_v38, 0.0  ;;  %v1458_v41 = vsub.f32 %v1454_v8, %v1456_v36 }
 0x21d   :  { %v1462_v42 = vadd.f32 1e-05, %v1459_v39  ;;  %v1460_v43 = vmax.f32 %v1458_v41, 0.0 }
 0x21f   :  { %v1463_v0 = vadd.f32 1e-05, %v1460_v43  ;;  %5736 = vrsqrt.f32 %v1462_v42 }
 0x221   :  { %5738 = vrsqrt.f32 %v1463_v0 }
 0x22c   :  { %v5737_v12 = vpop.eup %5736 }
 0x22e   :  { %v5739_v27 = vpop.eup %5738 }
 0x22f   :  { %v1468_v28 = vcombine.low %v5737_v12, %v5739_v27 }
 0x231   :  { %v1475_v30 = vrot.slane %v1468_v28, %v1474_v10 }
 0x233   :  { %v1482_v50 = vrot.slane %v1475_v30, %v1474_v10 }
 0x235   :  { %v1484_v36 = vmul.f32 %v1482_v50, %v1461_v40 }
 0x237   :  { %v1491_v38 = vrot.slane %v1484_v36, %v6844_v33  ;;  %v1495_v8 = vrot.slane %v1484_v36, %v1494_v34 }
 0x239   :  { %v1498_v0 = vmul.f32 %v1491_v38, %v1377_v26  ;;  %v1499_v39 = vmul.f32 %v1495_v8, %v1378_v32  ;;  %v1520_v43 = vmul.f32 %v1495_v8, %v6520_v11  ;;  %v1519_v25 = vmul.f32 %v1491_v38, %v6526_v2 }
 0x23a   :  { %v1522_v14 = vmul.f32 %v1495_v8, %v6518_v18  ;;  %v1928_v40 = vmul.f32 %v1495_v8, %v6556_v7  ;;  %v1927_v27 = vmul.f32 %v1491_v38, %v6560_v48  ;;  %v1521_v50 = vmul.f32 %v1491_v38, %v6522_v13 }
 0x23b   :  { %v1502_v15 = vcombine.low %v1498_v0, %v1499_v39  ;;  %v1930_v2 = vmul.f32 %v1495_v8, %v6562_v4  ;;  %v1929_v18 = vmul.f32 %v1491_v38, %v6558_v23  ;;  %v1932_v7 = vmul.f32 %v1495_v8, %v6581_v37 }
 0x23c   :  { %v1523_v23 = vmul.f32 %v1491_v38, %v6530_v24  ;;  %v6881_v24 = vld [vmem:[%s7995_s4] sm:$0xff] }
 0x23d   :  { %v1509_v41 = vrot.slane %v1502_v15, %v1474_v10  ;;  %v1931_v15 = vmul.f32 %v1491_v38, %v6576_v31  ;;  %v6886_v38 = vld [vmem:[%s7995_s4 + $0x10] sm:$0xff] }
 0x23f   :  { %v1516_v16 = vrot.slane %v1509_v41, %v1474_v10  ;;  %v1524_v10 = vmul.f32 %v1495_v8, %v6524_v35 }
 0x241   :  { %v1518_v42 = vsub.f32 %v1486_v6, %v1516_v16 }
 0x243   :  { %v1533_v12 = vrot.slane %v1518_v42, %v1494_v34  ;;  %v1529_v30 = vrot.slane %v1518_v42, %v6844_v33 }
 0x245   :  { %v1537_v26 = vadd.f32 %v1533_v12, %v1520_v43  ;;  %v1536_v32 = vadd.f32 %v1529_v30, %v1519_v25  ;;  %v1539_v28 = vadd.f32 %v1533_v12, %v1522_v14  ;;  %v6855_v36 = vadd.f32 %v1928_v40, %v1533_v12 }
 0x246   :  { %v6857_v11 = vadd.f32 %v1927_v27, %v1529_v30  ;;  %v1538_v48 = vadd.f32 %v1529_v30, %v1521_v50  ;;  %v1541_v39 = vadd.f32 %v1533_v12, %v1524_v10  ;;  %v6865_v35 = vadd.f32 %v1930_v2, %v1533_v12 }
 0x247   :  { %v1543_v34 = vmax.f32 %v1537_v26, 0.0  ;;  %v1542_v0 = vmax.f32 %v1536_v32, 0.0  ;;  %v1545_v13 = vmax.f32 %v1539_v28, 0.0  ;;  %v6867_v41 = vadd.f32 %v1929_v18, %v1529_v30  ;;  %v6900_v18 = vld [vmem:[%s7995_s4 + $0x18] sm:$0xf] }
 0x248   :  { %v6869_v4 = vadd.f32 %v1932_v7, %v1533_v12  ;;  %v6872_v37 = vadd.f32 %v1931_v15, %v1529_v30  ;;  %v1544_v31 = vmax.f32 %v1538_v48, 0.0  ;;  %v1540_v8 = vadd.f32 %v1529_v30, %v1523_v23  ;;  %v7000_v23 = vld [vmem:[#allocation2 + $0x88] sm:$0xff] }
 0x249   :  { %4674 = vmatprep.mubr.msk.f32.mxu0 %vm1182_vm5, %v1543_v34  ;;  %4695 = vmatprep.mubr.msk.f32.mxu1 %vm1182_vm5, %v1543_v34  ;;  %v1547_v6 = vmax.f32 %v1541_v39, 0.0  ;;  %v1940_v7 = vmax.f32 %v6855_v36, 0.0  ;;  %v8025_v48 = vmov 0.0  }
 0x24a   :  { %1640 = vmatmul.mubr.f32.vlgmr.msra.gmra.mxu0 %v1542_v0  ;;  %1739 = vmatmul.mubr.f32.vlgmr.msra.gmra.mxu1 %v1542_v0  ;;  %v1546_v16 = vmax.f32 %v1540_v8, 0.0  ;;  %v6895_v0 = vld [vmem:[%s7995_s4 + $0x8] sm:$0xf]  ;;  %v7013_v8 = vld [vmem:[#allocation2 + $0x80] sm:$0xff] }
 0x24b   :  { %4675 = vmatprep.mubr.msk.f32.mxu0 %vm1182_vm5, %v1545_v13  ;;  %4696 = vmatprep.mubr.msk.f32.mxu1 %vm1182_vm5, %v1545_v13 }
 0x24e   :  { %1645 = vmatmul.mubr.f32.gmra.mxu0 %v1544_v31  ;;  %1744 = vmatmul.mubr.f32.gmra.mxu1 %v1544_v31 }
 0x24f   :  { %4676 = vmatprep.mubr.msk.f32.mxu0 %vm1182_vm5, %v1547_v6  ;;  %4697 = vmatprep.mubr.msk.f32.mxu1 %vm1182_vm5, %v1547_v6  ;;  %v7015_v6 = vld [vmem:[#allocation2 + $0x38] sm:$0xff] }
 0x252   :  { %1650 = vmatmul.mubr.f32.gmra.mxu0 %v1546_v16  ;;  %1749 = vmatmul.mubr.f32.gmra.mxu1 %v1546_v16  ;;  %v7022_v16 = vld [vmem:[#allocation2 + $0x78] sm:$0xff] }
 0x253   :  { %5154 = vmatprep.mubr.msk.f32.mxu0 %vm1759_vm6, %v6881_v24  ;;  %5163 = vmatprep.mubr.msk.f32.mxu1 %vm1759_vm6, %v6886_v38 }
 0x30a   :  { %v1641_v42 = vpop.f32.mrf.mxu0  ;;  %v1740_v43 = vpop.f32.mrf.mxu1 }
 0x30b   :  { %v1754_v34 = vmax.f32 %v1641_v42, %v1740_v43  ;;  %v7032_v42 = vld [vmem:[#allocation2 + $0x28] sm:$0xff] }
 0x30c   :  { %v1643_v12 = vpop.f32.mrf.mxu0  ;;  %v1742_v25 = vpop.f32.mrf.mxu1  ;;  %v7038_v43 = vld [vmem:[#allocation2 + $0x68] sm:$0xff] }
 0x30d   :  { %v7040_v12 = vld [vmem:[#allocation2 + $0x20] sm:$0xff] }
 0x30e   :  { %v1646_v30 = vpop.f32.mrf.mxu0  ;;  %v1745_v14 = vpop.f32.mrf.mxu1  ;;  %v7046_v25 = vld [vmem:[#allocation2 + $0x60] sm:$0xff] }
 0x30f   :  { %v1755_v2 = vmax.f32 %v1646_v30, %v1745_v14  ;;  %v7048_v30 = vld [vmem:[#allocation2 + $0x18] sm:$0xff] }
 0x310   :  { %v1648_v40 = vpop.f32.mrf.mxu0  ;;  %v1747_v27 = vpop.f32.mrf.mxu1  ;;  %v7054_v14 = vld [vmem:[#allocation2 + $0x58] sm:$0xff] }
 0x311   :  { %v7056_v40 = vld [vmem:[#allocation2 + $0x10] sm:$0xff] }
 0x312   :  { %v1651_v26 = vpop.f32.mrf.mxu0  ;;  %v1750_v32 = vpop.f32.mrf.mxu1  ;;  %v2280_v27 = vld [vmem:[#allocation2 + $0x50] sm:$0xff] }
 0x313   :  { %v1756_v28 = vmax.f32 %v1651_v26, %v1750_v32  ;;  %v7062_v26 = vld [vmem:[#allocation2 + $0x8] sm:$0xff] }
 0x314   :  { %v1653_v50 = vpop.f32.mrf.mxu0  ;;  %v1752_v10 = vpop.f32.mrf.mxu1  ;;  %v2279_v32 = vld [vmem:[#allocation2 + $0x48] sm:$0xff] }
 0x315   :  { %5148 = vmatprep.subr.mxu0 %v1756_v28  ;;  %5157 = vmatprep.subr.mxu1 %v1756_v28 }
 0x316   :  { %5149 = vmatpush3.msra.mxu0 %v1756_v28  ;;  %5158 = vmatpush3.msra.mxu1 %v1756_v28  ;;  %v7068_v28 = vld [vmem:[#allocation2] sm:$0xff] }
 0x317   :  { %5150 = vmatprep.subr.mxu0 %v1755_v2  ;;  %5159 = vmatprep.subr.mxu1 %v1755_v2 }
 0x318   :  { %5151 = vmatpush3.msra.mxu0 %v1755_v2  ;;  %5160 = vmatpush3.msra.mxu1 %v1755_v2  ;;  %v7075_v2 = vld [vmem:[#allocation2 + $0xd0] sm:$0xff] }
 0x319   :  { %5152 = vmatprep.subr.mxu0 %v1754_v34  ;;  %5161 = vmatprep.subr.mxu1 %v1754_v34 }
 0x31a   :  { %5153 = vmatpush3.msra.mxu0 %v1754_v34  ;;  %5162 = vmatpush3.msra.mxu1 %v1754_v34 }
 0x31b   :  { %5155 = vmatmul.mubr.msk.f32.vlgmr.msra.gmra.mxu0 %vm1759_vm6, %v6895_v0  ;;  %5164 = vmatmul.mubr.msk.f32.vlgmr.msra.gmra.mxu1 %vm1759_vm6, %v6900_v18 }
 0x31c   :  { %1954 = vmatprep.subr.mxu0 %v8025_v48  ;;  %2034 = vmatprep.subr.mxu1 %v8025_v48 }
 0x31d   :  { %1955 = vmatpush1.msra.mxu0 %v6597_v45  ;;  %4704 = vmatprep.mubr.msk.f32.mxu0 %vm1182_vm5, %v1940_v7  ;;  %v8026_v45 = vld [vmem:[#allocation15_spill] sm:$0xff] }
 0x31e   :  { %2035 = vmatpush1.msra.mxu1 %v6602_v47  ;;  %4707 = vmatprep.mubr.msk.f32.mxu1 %vm1182_vm5, %v1940_v7  ;;  %v8027_v47 = vld [vmem:[#allocation16_spill] sm:$0xff]  ;;  %v7095_v7 = vld [vmem:[#allocation2 + $0xb8] sm:$0xff] }
 0x31f   :  { %1956 = vmatprep.subr.mxu0 %v8025_v48  ;;  %2036 = vmatprep.subr.mxu1 %v8025_v48 }
 0x320   :  { %1957 = vmatpush1.msra.mxu0 %v6611_v49  ;;  %2037 = vmatpush1.msra.mxu1 %v6616_v44  ;;  %v8028_v49 = vld [vmem:[#allocation17_spill] sm:$0xff]  ;;  %v8029_v44 = vld [vmem:[#allocation18_spill] sm:$0xff] }
 0x321   :  { %1958 = vmatprep.subr.mxu0 %v8025_v48  ;;  %2038 = vmatprep.subr.mxu1 %v8025_v48 }
 0x322   :  { %1959 = vmatpush1.msra.mxu0 %v6625_v51  ;;  %2039 = vmatpush1.msra.mxu1 %v6630_v52  ;;  %v8030_v51 = vld [vmem:[#allocation19_spill] sm:$0xff]  ;;  %v8031_v52 = vld [vmem:[#allocation20_spill] sm:$0xff] }
 0x323   :  { %1960 = vmatprep.subr.mxu0 %v8025_v48  ;;  %2040 = vmatprep.subr.mxu1 %v8025_v48 }
 0x324   :  { %1961 = vmatpush1.msra.mxu0 %v6639_v53  ;;  %2041 = vmatpush1.msra.mxu1 %v6644_v54  ;;  %v1939_v53 = vmax.f32 %v6857_v11, 0.0  ;;  %v8032_v54 = vld [vmem:[#allocation21_spill] sm:$0xff] }
 0x325   :  { %1962 = vmatprep.subr.mxu0 %v8025_v48  ;;  %2042 = vmatprep.subr.mxu1 %v8025_v48 }
 0x326   :  { %1963 = vmatpush1.msra.mxu0 %v6653_v55  ;;  %2043 = vmatpush1.msra.mxu1 %v6658_v56  ;;  %v8033_v55 = vld [vmem:[#allocation22_spill] sm:$0xff]  ;;  %v1942_v56 = vmax.f32 %v6865_v35, 0.0 }
 0x327   :  { %1964 = vmatprep.subr.mxu0 %v8025_v48  ;;  %2044 = vmatprep.subr.mxu1 %v8025_v48 }
 0x328   :  { %1965 = vmatpush1.msra.mxu0 %v6667_v58  ;;  %2045 = vmatpush1.msra.mxu1 %v6672_v59  ;;  %v1941_v58 = vmax.f32 %v6867_v41, 0.0  ;;  %v1944_v59 = vmax.f32 %v6869_v4, 0.0 }
 0x329   :  { %1966 = vmatprep.subr.mxu0 %v8025_v48  ;;  %2046 = vmatprep.subr.mxu1 %v8025_v48 }
 0x32a   :  { %1967 = vmatpush1.msra.mxu0 %v6681_v60  ;;  %2047 = vmatpush1.msra.mxu1 %v6686_v61  ;;  %v1943_v60 = vmax.f32 %v6872_v37, 0.0  ;;  %v7002_v37 = vld [vmem:[#allocation2 + $0x40] sm:$0xff] }
 0x32b   :  { %1968 = vmatprep.subr.mxu0 %v8025_v48  ;;  %2048 = vmatprep.subr.mxu1 %v8025_v48 }
 0x32c   :  { %1969 = vmatpush1.msra.mxu0 %v6695_v62  ;;  %2049 = vmatpush1.msra.mxu1 %v6700_v63 }
 0x32d   :  { %1970 = vmatprep.subr.mxu0 %v8025_v48  ;;  %2050 = vmatprep.subr.mxu1 %v8025_v48 }
 0x32e   :  { %1971 = vmatpush1.msra.mxu0 %v6709_v1  ;;  %2051 = vmatpush1.msra.mxu1 %v6714_v46 }
 0x32f   :  { %1972 = vmatprep.subr.mxu0 %v8025_v48  ;;  %2052 = vmatprep.subr.mxu1 %v8025_v48 }
 0x330   :  { %1973 = vmatpush1.msra.mxu0 %v6719_v3  ;;  %2053 = vmatpush1.msra.mxu1 %v6726_v5 }
 0x331   :  { %1974 = vmatprep.subr.mxu0 %v8025_v48  ;;  %2054 = vmatprep.subr.mxu1 %v8025_v48 }
 0x332   :  { %1975 = vmatpush1.msra.mxu0 %v6733_v19  ;;  %2055 = vmatpush1.msra.mxu1 %v6738_v20 }
 0x333   :  { %1976 = vmatprep.subr.mxu0 %v8025_v48  ;;  %2056 = vmatprep.subr.mxu1 %v8025_v48 }
 0x334   :  { %1977 = vmatpush1.msra.mxu0 %v6747_v57  ;;  %2057 = vmatpush1.msra.mxu1 %v6752_v22 }
 0x335   :  { %1978 = vmatprep.subr.mxu0 %v8025_v48  ;;  %2058 = vmatprep.subr.mxu1 %v8025_v48 }
 0x336   :  { %1979 = vmatpush1.msra.mxu0 %v6761_v17  ;;  %2059 = vmatpush1.msra.mxu1 %v6766_v29 }
 0x337   :  { %1980 = vmatprep.subr.mxu0 %v8025_v48  ;;  %2060 = vmatprep.subr.mxu1 %v8025_v48 }
 0x338   :  { %1981 = vmatpush1.msra.mxu0 %v6775_v9  ;;  %2061 = vmatpush1.msra.mxu1 %v6780_v21 }
 0x339   :  { %1982 = vmatprep.subr.mxu0 %v8025_v48  ;;  %2062 = vmatprep.subr.mxu1 %v8025_v48 }
 0x33a   :  { %1983 = vmatpush1.msra.mxu0 %v8026_v45  ;;  %2063 = vmatpush1.msra.mxu1 %v8027_v47  ;;  %v7101_v45 = vld [vmem:[#allocation2 + $0xb0] sm:$0xff]  ;;  %v7107_v47 = vld [vmem:[#allocation2 + $0xa8] sm:$0xff] }
 0x33b   :  { %1984 = vmatprep.subr.mxu0 %v8025_v48  ;;  %2064 = vmatprep.subr.mxu1 %v8025_v48 }
 0x33c   :  { %1985 = vmatpush1.msra.mxu0 %v8028_v49  ;;  %2065 = vmatpush1.msra.mxu1 %v8029_v44  ;;  %v7113_v49 = vld [vmem:[#allocation2 + $0xa0] sm:$0xff]  ;;  %v7119_v44 = vld [vmem:[#allocation2 + $0x98] sm:$0xff] }
 0x33d   :  { %2014 = vmatprep.subr.mxu0 %v8025_v48  ;;  %2094 = vmatprep.subr.mxu1 %v8025_v48 }
 0x33e   :  { %2015 = vmatpush2.msra.mxu0 %v8030_v51  ;;  %2095 = vmatpush2.msra.mxu1 %v8031_v52  ;;  %v7125_v51 = vld [vmem:[#allocation2 + $0x90] sm:$0xff] }
 0x33f   :  { %2016 = vmatprep.subr.mxu0 %v8025_v48  ;;  %2096 = vmatprep.subr.mxu1 %v8025_v48 }
 0x340   :  { %2017 = vmatpush2.msra.mxu0 %v8032_v54  ;;  %2097 = vmatpush2.msra.mxu1 %v8033_v55 }
 0x341   :  { %2019 = vmatmul.mubr.f32.vlgmr.msra.gmra.mxu0 %v1939_v53  ;;  %2099 = vmatmul.mubr.f32.vlgmr.msra.gmra.mxu1 %v1939_v53 }
 0x342   :  { %4705 = vmatprep.mubr.msk.f32.mxu0 %vm1182_vm5, %v1942_v56  ;;  %4708 = vmatprep.mubr.msk.f32.mxu1 %vm1182_vm5, %v1942_v56 }
 0x345   :  { %2024 = vmatmul.mubr.f32.gmra.mxu0 %v1941_v58  ;;  %2104 = vmatmul.mubr.f32.gmra.mxu1 %v1941_v58 }
 0x346   :  { %4706 = vmatprep.mubr.msk.f32.mxu0 %vm1182_vm5, %v1944_v59  ;;  %4709 = vmatprep.mubr.msk.f32.mxu1 %vm1182_vm5, %v1944_v59 }
 0x349   :  { %2029 = vmatmul.mubr.f32.gmra.mxu0 %v1943_v60  ;;  %2109 = vmatmul.mubr.f32.gmra.mxu1 %v1943_v60 }
 0x34a   :  { %5172 = vmatprep.mubr.msk.f32.mxu0 %vm1759_vm6, %v6881_v24  ;;  %5181 = vmatprep.mubr.msk.f32.mxu1 %vm1759_vm6, %v6886_v38  ;;  %v7024_v24 = vld [vmem:[#allocation2 + $0x30] sm:$0xff] }
 0x34b   :  { %v7030_v38 = vld [vmem:[#allocation2 + $0x70] sm:$0xff] }
 0x3db   :  { %v5156_v61 = vpop.f32.mrf.mxu0  ;;  %v5165_v62 = vpop.f32.mrf.mxu1 }
 0x3dc   :  { %v6994_v36 = vmax.f32 %v5156_v61, %v5165_v62 }
 0x3dd   :  { %v1832_v63 = vpop.f32.mrf.mxu0  ;;  %v1916_v1 = vpop.f32.mrf.mxu1 }
 0x3de   :  { %v6996_v11 = vmax.f32 %v1832_v63, %v1916_v1  ;;  %v2291_v41 = vrot.slane %v6994_v36, 1  ;;  %v2463_v50 = vrot.slane %v6994_v36, 2 }
 0x3e0   :  { %v2290_v4 = vrot.slane %v6996_v11, 1  ;;  %v2462_v10 = vrot.slane %v6996_v11, 2 }
 0x3e2   :  { %v2292_v31 = vsel %vm121_vm1, %v2290_v4, %v2291_v41  ;;  %v2464_v34 = vsel %vm330_vm3, %v2462_v10, %v2463_v50 }
 0x401   :  { %v2020_v46 = vpop.f32.mrf.mxu0  ;;  %v2100_v3 = vpop.f32.mrf.mxu1 }
 0x402   :  { %v2114_v35 = vmax.f32 %v2020_v46, %v2100_v3  ;;  %v2851_v46 = vld [vmem:[#allocation5 + $0x70] sm:$0xff]  ;;  %v2850_v3 = vld [vmem:[#allocation5 + $0x68] sm:$0xff] }
 0x403   :  { %v2022_v5 = vpop.f32.mrf.mxu0  ;;  %v2102_v19 = vpop.f32.mrf.mxu1 }
 0x404   :  { %v2849_v5 = vld [vmem:[#allocation5 + $0x60] sm:$0xff]  ;;  %v2848_v19 = vld [vmem:[#allocation5 + $0x58] sm:$0xff] }
 0x405   :  { %v2025_v20 = vpop.f32.mrf.mxu0  ;;  %v2105_v57 = vpop.f32.mrf.mxu1 }
 0x406   :  { %v2115_v13 = vmax.f32 %v2025_v20, %v2105_v57  ;;  %v2847_v20 = vld [vmem:[#allocation5 + $0x50] sm:$0xff]  ;;  %v2846_v57 = vld [vmem:[#allocation5 + $0x48] sm:$0xff] }
 0x407   :  { %v2027_v22 = vpop.f32.mrf.mxu0  ;;  %v2107_v17 = vpop.f32.mrf.mxu1 }
 0x408   :  { %v2845_v22 = vld [vmem:[#allocation5 + $0x40] sm:$0xff]  ;;  %v2844_v17 = vld [vmem:[#allocation5 + $0x38] sm:$0xff] }
 0x409   :  { %v2030_v29 = vpop.f32.mrf.mxu0  ;;  %v2110_v9 = vpop.f32.mrf.mxu1 }
 0x40a   :  { %v2116_v21 = vmax.f32 %v2030_v29, %v2110_v9  ;;  %v2843_v29 = vld [vmem:[#allocation5 + $0x30] sm:$0xff]  ;;  %v2842_v9 = vld [vmem:[#allocation5 + $0x28] sm:$0xff] }
 0x40b   :  { %v2032_v39 = vpop.f32.mrf.mxu0  ;;  %v2112_v15 = vpop.f32.mrf.mxu1 }
 0x40c   :  { %5166 = vmatprep.subr.mxu0 %v2116_v21  ;;  %5175 = vmatprep.subr.mxu1 %v2116_v21  ;;  %v2838_v39 = vld [vmem:[#allocation5 + $0x8] sm:$0xff]  ;;  %v2837_v15 = vld [vmem:[#allocation5] sm:$0xff] }
 0x40d   :  { %5167 = vmatpush3.msra.mxu0 %v2116_v21  ;;  %5176 = vmatpush3.msra.mxu1 %v2116_v21  ;;  %v2841_v21 = vld [vmem:[#allocation5 + $0x20] sm:$0xff] }
 0x40e   :  { %5168 = vmatprep.subr.mxu0 %v2115_v13  ;;  %5177 = vmatprep.subr.mxu1 %v2115_v13 }
 0x40f   :  { %5169 = vmatpush3.msra.mxu0 %v2115_v13  ;;  %5178 = vmatpush3.msra.mxu1 %v2115_v13 }
 0x410   :  { %5170 = vmatprep.subr.mxu0 %v2114_v35  ;;  %5179 = vmatprep.subr.mxu1 %v2114_v35 }
 0x411   :  { %5171 = vmatpush3.msra.mxu0 %v2114_v35  ;;  %5180 = vmatpush3.msra.mxu1 %v2114_v35 }
 0x412   :  { %5173 = vmatmul.mubr.msk.f32.vlgmr.msra.gmra.mxu0 %vm1759_vm6, %v6895_v0  ;;  %5182 = vmatmul.mubr.msk.f32.vlgmr.msra.gmra.mxu1 %vm1759_vm6, %v6900_v18  ;;  %v7084_v0 = vld [vmem:[#allocation2 + $0xc8] sm:$0xff]  ;;  %v7089_v18 = vld [vmem:[#allocation2 + $0xc0] sm:$0xff] }
 0x413   :  { %5184 = vmatprep.subr.mxu0 %v7000_v23  ;;  %5205 = vmatprep.subr.mxu1 %v7002_v37 }
 0x414   :  { %5185 = vmatpush3.msra.mxu0 %v7000_v23  ;;  %5202 = vmatprep.mubr.msk.f32.mxu0 %vm2293_vm7, %v2292_v31 }
 0x415   :  { %5206 = vmatpush3.msra.mxu1 %v7002_v37  ;;  %5223 = vmatprep.mubr.msk.f32.mxu1 %vm2293_vm7, %v6996_v11  ;;  %v2839_v11 = vld [vmem:[#allocation5 + $0x10] sm:$0xff] }
 0x416   :  { %5186 = vmatprep.subr.mxu0 %v7013_v8  ;;  %5207 = vmatprep.subr.mxu1 %v7015_v6 }
 0x417   :  { %5187 = vmatpush3.msra.mxu0 %v7013_v8  ;;  %5208 = vmatpush3.msra.mxu1 %v7015_v6 }
 0x418   :  { %5188 = vmatprep.subr.mxu0 %v7022_v16  ;;  %5209 = vmatprep.subr.mxu1 %v7024_v24 }
 0x419   :  { %5189 = vmatpush3.msra.mxu0 %v7022_v16  ;;  %5210 = vmatpush3.msra.mxu1 %v7024_v24 }
 0x41a   :  { %5190 = vmatprep.subr.mxu0 %v7030_v38  ;;  %5211 = vmatprep.subr.mxu1 %v7032_v42 }
 0x41b   :  { %5191 = vmatpush3.msra.mxu0 %v7030_v38  ;;  %5212 = vmatpush3.msra.mxu1 %v7032_v42 }
 0x41c   :  { %5192 = vmatprep.subr.mxu0 %v7038_v43  ;;  %5213 = vmatprep.subr.mxu1 %v7040_v12 }
 0x41d   :  { %5193 = vmatpush3.msra.mxu0 %v7038_v43  ;;  %5214 = vmatpush3.msra.mxu1 %v7040_v12 }
 0x41e   :  { %5194 = vmatprep.subr.mxu0 %v7046_v25  ;;  %5215 = vmatprep.subr.mxu1 %v7048_v30 }
 0x41f   :  { %5195 = vmatpush3.msra.mxu0 %v7046_v25  ;;  %5216 = vmatpush3.msra.mxu1 %v7048_v30 }
 0x420   :  { %5196 = vmatprep.subr.mxu0 %v7054_v14  ;;  %5217 = vmatprep.subr.mxu1 %v7056_v40 }
 0x421   :  { %5197 = vmatpush3.msra.mxu0 %v7054_v14  ;;  %5218 = vmatpush3.msra.mxu1 %v7056_v40 }
 0x422   :  { %5198 = vmatprep.subr.mxu0 %v2280_v27  ;;  %5219 = vmatprep.subr.mxu1 %v7062_v26 }
 0x423   :  { %5199 = vmatpush3.msra.mxu0 %v2280_v27  ;;  %5220 = vmatpush3.msra.mxu1 %v7062_v26 }
 0x424   :  { %5200 = vmatprep.subr.mxu0 %v2279_v32  ;;  %5221 = vmatprep.subr.mxu1 %v7068_v28 }
 0x425   :  { %5201 = vmatpush3.msra.mxu0 %v2279_v32  ;;  %5222 = vmatpush3.msra.mxu1 %v7068_v28 }
 0x426   :  { %5203 = vmatmul.mubr.msk.f32.vlgmr.msra.gmra.mxu0 %vm2293_vm7, %v2291_v41  ;;  %5224 = vmatmul.mubr.msk.f32.vlgmr.msra.gmra.mxu1 %vm2293_vm7, %v6994_v36  ;;  %v2840_v36 = vld [vmem:[#allocation5 + $0x18] sm:$0xff] }
 0x427   :  { %5226 = vmatprep.subr.mxu0 %v7075_v2  ;;  %5244 = vmatprep.mubr.msk.f32.mxu0 %vm2293_vm7, %v2464_v34 }
 0x428   :  { %5227 = vmatpush3.msra.mxu0 %v7075_v2  ;;  %5247 = vmatprep.subr.mxu1 %v7000_v23 }
 0x429   :  { %5228 = vmatprep.subr.mxu0 %v7084_v0  ;;  %5248 = vmatpush3.msra.mxu1 %v7000_v23 }
 0x42a   :  { %5229 = vmatpush3.msra.mxu0 %v7084_v0  ;;  %5249 = vmatprep.subr.mxu1 %v7013_v8 }
 0x42b   :  { %5230 = vmatprep.subr.mxu0 %v7089_v18  ;;  %5250 = vmatpush3.msra.mxu1 %v7013_v8 }
 0x42c   :  { %5231 = vmatpush3.msra.mxu0 %v7089_v18  ;;  %5251 = vmatprep.subr.mxu1 %v7022_v16 }
 0x42d   :  { %5232 = vmatprep.subr.mxu0 %v7095_v7  ;;  %5252 = vmatpush3.msra.mxu1 %v7022_v16 }
 0x42e   :  { %5233 = vmatpush3.msra.mxu0 %v7095_v7  ;;  %5253 = vmatprep.subr.mxu1 %v7030_v38 }
 0x42f   :  { %5234 = vmatprep.subr.mxu0 %v7101_v45  ;;  %5254 = vmatpush3.msra.mxu1 %v7030_v38 }
 0x430   :  { %5235 = vmatpush3.msra.mxu0 %v7101_v45  ;;  %5255 = vmatprep.subr.mxu1 %v7038_v43 }
 0x431   :  { %5236 = vmatprep.subr.mxu0 %v7107_v47  ;;  %5256 = vmatpush3.msra.mxu1 %v7038_v43 }
 0x432   :  { %5237 = vmatpush3.msra.mxu0 %v7107_v47  ;;  %5257 = vmatprep.subr.mxu1 %v7046_v25 }
 0x433   :  { %5238 = vmatprep.subr.mxu0 %v7113_v49  ;;  %5258 = vmatpush3.msra.mxu1 %v7046_v25 }
 0x434   :  { %5239 = vmatpush3.msra.mxu0 %v7113_v49  ;;  %5259 = vmatprep.subr.mxu1 %v7054_v14 }
 0x435   :  { %5240 = vmatprep.subr.mxu0 %v7119_v44  ;;  %5260 = vmatpush3.msra.mxu1 %v7054_v14 }
 0x436   :  { %5241 = vmatpush3.msra.mxu0 %v7119_v44  ;;  %5261 = vmatprep.subr.mxu1 %v2280_v27 }
 0x437   :  { %5242 = vmatprep.subr.mxu0 %v7125_v51  ;;  %5262 = vmatpush3.msra.mxu1 %v2280_v27 }
 0x438   :  { %5243 = vmatpush3.msra.mxu0 %v7125_v51  ;;  %5263 = vmatprep.subr.mxu1 %v2279_v32 }
 0x439   :  { %5245 = vmatmul.mubr.msk.f32.vlgmr.msra.gmra.mxu0 %vm2293_vm7, %v2463_v50  ;;  %5268 = vmatprep.subr.mxu0 %v7002_v37 }
 0x43a   :  { %5269 = vmatpush3.msra.mxu0 %v7002_v37  ;;  %5264 = vmatpush3.msra.mxu1 %v2279_v32 }
 0x43b   :  { %5270 = vmatprep.subr.mxu0 %v7015_v6  ;;  %5289 = vmatprep.subr.mxu1 %v7075_v2 }
 0x43c   :  { %5271 = vmatpush3.msra.mxu0 %v7015_v6 }
 0x43d   :  { %5272 = vmatprep.subr.mxu0 %v7024_v24 }
 0x43e   :  { %5273 = vmatpush3.msra.mxu0 %v7024_v24 }
 0x43f   :  { %5274 = vmatprep.subr.mxu0 %v7032_v42 }
 0x440   :  { %5275 = vmatpush3.msra.mxu0 %v7032_v42 }
 0x441   :  { %5276 = vmatprep.subr.mxu0 %v7040_v12 }
 0x442   :  { %5277 = vmatpush3.msra.mxu0 %v7040_v12 }
 0x443   :  { %5278 = vmatprep.subr.mxu0 %v7048_v30 }
 0x444   :  { %5279 = vmatpush3.msra.mxu0 %v7048_v30 }
 0x445   :  { %5280 = vmatprep.subr.mxu0 %v7056_v40 }
 0x446   :  { %5281 = vmatpush3.msra.mxu0 %v7056_v40 }
 0x447   :  { %5282 = vmatprep.subr.mxu0 %v7062_v26 }
 0x448   :  { %5283 = vmatpush3.msra.mxu0 %v7062_v26 }
 0x449   :  { %5284 = vmatprep.subr.mxu0 %v7068_v28 }
 0x44a   :  { %5285 = vmatpush3.msra.mxu0 %v7068_v28 }
 0x44b   :  { %5310 = vmatprep.subr.mxu0 %v8025_v48 }
 0x4d2   :  { %v5174_v52 = vpop.f32.mrf.mxu0  ;;  %v5183_v53 = vpop.f32.mrf.mxu1 }
 0x4d3   :  { %v2268_v54 = vmax.f32 %v5174_v52, %v5183_v53 }
 0x4d4   :  { %v2183_v55 = vpop.f32.mrf.mxu0  ;;  %v2258_v56 = vpop.f32.mrf.mxu1 }
 0x4d5   :  { %v2267_v58 = vmax.f32 %v2183_v55, %v2258_v56  ;;  %v2549_v59 = vrot.slane %v2268_v54, 1  ;;  %v2710_v62 = vrot.slane %v2268_v54, 2 }
 0x4d7   :  { %v2548_v60 = vrot.slane %v2267_v58, 1  ;;  %v2709_v61 = vrot.slane %v2267_v58, 2  ;;  %5286 = vmatprep.mubr.msk.f32.mxu0 %vm2293_vm7, %v2267_v58 }
 0x4d8   :  { %5287 = vmatmul.mubr.msk.f32.vlgmr.msra.gmra.mxu0 %vm2293_vm7, %v2268_v54 }
 0x4d9   :  { %v2550_v63 = vsel %vm121_vm1, %v2548_v60, %v2549_v59  ;;  %v2711_v1 = vsel %vm330_vm3, %v2709_v61, %v2710_v62  ;;  %5311 = vmatpush3.msra.mxu0 %v2851_v46  ;;  %5340 = vmatprep.mubr.msk.f32.mxu0 %vm5858_vm8, %v8025_v48 }
 0x4da   :  { %5265 = vmatprep.mubr.msk.f32.mxu1 %vm2293_vm7, %v2550_v63  ;;  %5312 = vmatprep.subr.mxu0 %v8025_v48 }
 0x4db   :  { %5266 = vmatmul.mubr.msk.f32.vlgmr.msra.gmra.mxu1 %vm2293_vm7, %v2549_v59  ;;  %5313 = vmatpush3.msra.mxu0 %v2850_v3 }
 0x4dc   :  { %5290 = vmatpush3.msra.mxu1 %v7075_v2  ;;  %5307 = vmatprep.mubr.msk.f32.mxu1 %vm2293_vm7, %v2711_v1 }
 0x4dd   :  { %5291 = vmatprep.subr.mxu1 %v7084_v0  ;;  %5314 = vmatprep.subr.mxu0 %v8025_v48 }
 0x4de   :  { %5292 = vmatpush3.msra.mxu1 %v7084_v0  ;;  %5315 = vmatpush3.msra.mxu0 %v2849_v5 }
 0x4df   :  { %5293 = vmatprep.subr.mxu1 %v7089_v18  ;;  %5316 = vmatprep.subr.mxu0 %v8025_v48 }
 0x4e0   :  { %5294 = vmatpush3.msra.mxu1 %v7089_v18  ;;  %5317 = vmatpush3.msra.mxu0 %v2848_v19 }
 0x4e1   :  { %5295 = vmatprep.subr.mxu1 %v7095_v7  ;;  %5318 = vmatprep.subr.mxu0 %v8025_v48 }
 0x4e2   :  { %5296 = vmatpush3.msra.mxu1 %v7095_v7  ;;  %5319 = vmatpush3.msra.mxu0 %v2847_v20 }
 0x4e3   :  { %5297 = vmatprep.subr.mxu1 %v7101_v45  ;;  %5320 = vmatprep.subr.mxu0 %v8025_v48 }
 0x4e4   :  { %5298 = vmatpush3.msra.mxu1 %v7101_v45  ;;  %5321 = vmatpush3.msra.mxu0 %v2846_v57 }
 0x4e5   :  { %5299 = vmatprep.subr.mxu1 %v7107_v47  ;;  %5322 = vmatprep.subr.mxu0 %v8025_v48 }
 0x4e6   :  { %5300 = vmatpush3.msra.mxu1 %v7107_v47  ;;  %5323 = vmatpush3.msra.mxu0 %v2845_v22  ;;  %v5204_v13 = vpop.f32.mrf.mxu0  ;;  %v5225_v35 = vpop.f32.mrf.mxu1 }
 0x4e7   :  { %5301 = vmatprep.subr.mxu1 %v7113_v49  ;;  %5324 = vmatprep.subr.mxu0 %v8025_v48  ;;  %v2449_v8 = vadd.f32 %v5225_v35, %v5204_v13  ;;  %v7245_v13 = vld [vmem:[%s7996_s5 + $0x70] sm:$0xff]  ;;  %v7250_v35 = vld [vmem:[%s7996_s5 + $0xe8] sm:$0xff] }
 0x4e8   :  { %5302 = vmatpush3.msra.mxu1 %v7113_v49  ;;  %5325 = vmatpush3.msra.mxu0 %v2844_v17  ;;  %v2364_v41 = vpop.f32.mrf.mxu0  ;;  %v2443_v23 = vpop.f32.mrf.mxu1 }
 0x4e9   :  { %5303 = vmatprep.subr.mxu1 %v7119_v44  ;;  %5326 = vmatprep.subr.mxu0 %v8025_v48  ;;  %v2444_v31 = vadd.f32 %v2443_v23, %v2364_v41  ;;  %v7259_v41 = vld [vmem:[%s7996_s5 + $0x68] sm:$0xff]  ;;  %v7273_v23 = vld [vmem:[%s7996_s5 + $0x60] sm:$0xff] }
 0x4ea   :  { %5304 = vmatpush3.msra.mxu1 %v7119_v44  ;;  %5327 = vmatpush3.msra.mxu0 %v2843_v29 }
 0x4eb   :  { %5305 = vmatprep.subr.mxu1 %v7125_v51  ;;  %5328 = vmatprep.subr.mxu0 %v8025_v48 }
 0x4ec   :  { %5306 = vmatpush3.msra.mxu1 %v7125_v51  ;;  %5329 = vmatpush3.msra.mxu0 %v2842_v9 }
 0x4ed   :  { %5308 = vmatmul.mubr.msk.f32.vlgmr.msra.gmra.mxu1 %vm2293_vm7, %v2710_v62  ;;  %5343 = vmatprep.subr.mxu1 %v8025_v48 }
 0x4ee   :  { %5344 = vmatpush3.msra.mxu1 %v2851_v46  ;;  %5330 = vmatprep.subr.mxu0 %v8025_v48 }
 0x4ef   :  { %5345 = vmatprep.subr.mxu1 %v8025_v48  ;;  %5331 = vmatpush3.msra.mxu0 %v2841_v21 }
 0x4f0   :  { %5346 = vmatpush3.msra.mxu1 %v2850_v3  ;;  %5332 = vmatprep.subr.mxu0 %v8025_v48 }
 0x4f1   :  { %5347 = vmatprep.subr.mxu1 %v8025_v48  ;;  %5333 = vmatpush3.msra.mxu0 %v2840_v36 }
 0x4f2   :  { %5348 = vmatpush3.msra.mxu1 %v2849_v5  ;;  %5334 = vmatprep.subr.mxu0 %v8025_v48 }
 0x4f3   :  { %5349 = vmatprep.subr.mxu1 %v8025_v48  ;;  %5335 = vmatpush3.msra.mxu0 %v2839_v11 }
 0x4f4   :  { %5350 = vmatpush3.msra.mxu1 %v2848_v19  ;;  %5336 = vmatprep.subr.mxu0 %v8025_v48 }
 0x4f5   :  { %5351 = vmatprep.subr.mxu1 %v8025_v48  ;;  %5337 = vmatpush3.msra.mxu0 %v2838_v39 }
 0x4f6   :  { %5352 = vmatpush3.msra.mxu1 %v2847_v20  ;;  %5338 = vmatprep.subr.mxu0 %v8025_v48 }
 0x4f7   :  { %5353 = vmatprep.subr.mxu1 %v8025_v48  ;;  %5339 = vmatpush3.msra.mxu0 %v2837_v15 }
 0x4f8   :  { %5354 = vmatpush3.msra.mxu1 %v2846_v57  ;;  %5373 = vmatprep.mubr.msk.f32.mxu1 %vm5858_vm8, %v8025_v48 }
 0x4f9   :  { %5355 = vmatprep.subr.mxu1 %v8025_v48  ;;  %v5246_v4 = vpop.f32.mrf.mxu0  ;;  %5376 = vmatprep.subr.mxu0 %v7245_v13 }
 0x4fa   :  { %5356 = vmatpush3.msra.mxu1 %v2845_v22  ;;  %v7214_v16 = vadd.f32 %v5246_v4, %v2449_v8  ;;  %v7264_v4 = vld [vmem:[%s7996_s5 + $0xe0] sm:$0xff]  ;;  %v7292_v8 = vld [vmem:[%s7996_s5 + $0xd0] sm:$0xff] }
 0x4fb   :  { %5357 = vmatprep.subr.mxu1 %v8025_v48  ;;  %v2535_v37 = vpop.f32.mrf.mxu0 }
 0x4fc   :  { %5358 = vmatpush3.msra.mxu1 %v2844_v17  ;;  %v7212_v6 = vadd.f32 %v2535_v37, %v2444_v31  ;;  %v2805_v38 = vmul.f32 %v7214_v16, %v7214_v16  ;;  %v2796_v43 = vsel %vm2795_vm10, %v7214_v16, 0.0  ;;  %v7278_v37 = vld [vmem:[%s7996_s5 + $0xd8] sm:$0xff] }
 0x4fd   :  { %5359 = vmatprep.subr.mxu1 %v8025_v48  ;;  %v7287_v31 = vld [vmem:[%s7996_s5 + $0x58] sm:$0xff] }
 0x4fe   :  { %5360 = vmatpush3.msra.mxu1 %v2843_v29  ;;  %v2804_v24 = vmul.f32 %v7212_v6, %v7212_v6  ;;  %v2794_v42 = vsel %vm2793_vm9, %v7212_v6, 0.0  ;;  %v2807_v14 = vsel %vm2795_vm10, %v2805_v38, 0.0  ;;  %v7306_v38 = vld [vmem:[%s7996_s5 + $0xc8] sm:$0xff] }
 0x4ff   :  { %5361 = vmatprep.subr.mxu1 %v8025_v48  ;;  %v2797_v25 = vadd.f32 %v2796_v43, %v2794_v42  ;;  %v7315_v42 = vld [vmem:[%s7996_s5 + $0x48] sm:$0xff]  ;;  %v7320_v43 = vld [vmem:[%s7996_s5 + $0xc0] sm:$0xff] }
 0x500   :  { %5362 = vmatpush3.msra.mxu1 %v2842_v9  ;;  %v2806_v12 = vsel %vm2793_vm9, %v2804_v24, 0.0  ;;  %v7301_v24 = vld [vmem:[%s7996_s5 + $0x50] sm:$0xff] }
 0x501   :  { %5363 = vmatprep.subr.mxu1 %v8025_v48  ;;  %v2808_v40 = vadd.f32 %v2807_v14, %v2806_v12  ;;  %v2798_v26 = vrot.slane %v2797_v25, 4  ;;  %v7329_v12 = vld [vmem:[%s7996_s5 + $0x40] sm:$0xff]  ;;  %v7348_v14 = vld [vmem:[%s7996_s5 + $0xb0] sm:$0xff] }
 0x502   :  { %5364 = vmatpush3.msra.mxu1 %v2841_v21 }
 0x503   :  { %5365 = vmatprep.subr.mxu1 %v8025_v48  ;;  %v2809_v50 = vrot.slane %v2808_v40, 4  ;;  %v2799_v18 = vadd.f32 %v2798_v26, %v2797_v25  ;;  %v7334_v25 = vld [vmem:[%s7996_s5 + $0xb8] sm:$0xff]  ;;  %v7371_v26 = vld [vmem:[%s7996_s5 + $0x28] sm:$0xff] }
 0x504   :  { %5366 = vmatpush3.msra.mxu1 %v2840_v36 }
 0x505   :  { %5367 = vmatprep.subr.mxu1 %v8025_v48  ;;  %v2810_v49 = vadd.f32 %v2809_v50, %v2808_v40  ;;  %v2800_v53 = vrot.slane %v2799_v18, 2  ;;  %v7357_v40 = vld [vmem:[%s7996_s5 + $0x30] sm:$0xff]  ;;  %v7388_v50 = vld [vmem:[%s7996_s5 + $0x98] sm:$0xff] }
 0x506   :  { %5368 = vmatpush3.msra.mxu1 %v2839_v11 }
 0x507   :  { %5369 = vmatprep.subr.mxu1 %v8025_v48  ;;  %v2811_v58 = vrot.slane %v2810_v49, 2  ;;  %v2801_v61 = vadd.f32 %v2800_v53, %v2799_v18  ;;  %v7414_v18 = vld [vmem:[%s7996_s5 + $0x88] sm:$0xff] }
 0x508   :  { %5370 = vmatpush3.msra.mxu1 %v2838_v39 }
 0x509   :  { %5371 = vmatprep.subr.mxu1 %v8025_v48  ;;  %v2812_v1 = vadd.f32 %v2811_v58, %v2810_v49  ;;  %v2802_v5 = vrot.slane %v2801_v61, 1  ;;  %v7437_v49 = vld [vmem:[%s7996_s5] sm:$0xff] }
 0x50a   :  { %5372 = vmatpush3.msra.mxu1 %v2837_v15 }
 0x50b   :  { %v2813_v57 = vrot.slane %v2812_v1, 1  ;;  %v2803_v29 = vadd.f32 %v2802_v5, %v2801_v61  ;;  %5409 = vmatprep.subr.mxu1 %v7250_v35 }
 0x50d   :  { %v2814_v11 = vadd.f32 %v2813_v57, %v2812_v1 }
 0x598   :  { %v5288_v27 = vpop.f32.mrf.mxu0 }
 0x59a   :  { %v2700_v10 = vpop.f32.mrf.mxu0 }
 0x59b   :  { %v5267_v30 = vpop.f32.mrf.mxu1 }
 0x59c   :  { %v2706_v28 = vadd.f32 %v5288_v27, %v5267_v30  ;;  %v7343_v30 = vld [vmem:[%s7996_s5 + $0x38] sm:$0xff]  ;;  %v7362_v27 = vld [vmem:[%s7996_s5 + $0xa8] sm:$0xff] }
 0x59d   :  { %v2621_v32 = vpop.f32.mrf.mxu1 }
 0x59e   :  { %v2701_v34 = vadd.f32 %v2700_v10, %v2621_v32  ;;  %v7376_v32 = vld [vmem:[%s7996_s5 + $0xa0] sm:$0xff]  ;;  %v7395_v10 = vld [vmem:[%s7996_s5 + $0x18] sm:$0xff] }
 0x5ad   :  { %v5309_v2 = vpop.f32.mrf.mxu1 }
 0x5ae   :  { %v7226_v0 = vadd.f32 %v5309_v2, %v2706_v28  ;;  %v7381_v28 = vld [vmem:[%s7996_s5 + $0x20] sm:$0xff]  ;;  %v7400_v2 = vld [vmem:[%s7996_s5 + $0x90] sm:$0xff] }
 0x5af   :  { %v2782_v7 = vpop.f32.mrf.mxu1 }
 0x5b0   :  { %v2826_v45 = vmul.f32 %v7226_v0, %v7226_v0  ;;  %v7230_v47 = vadd.f32 %v2782_v7, %v2701_v34  ;;  %v2816_v44 = vsel %vm2795_vm10, %v7226_v0, 0.0  ;;  %v7409_v34 = vld [vmem:[%s7996_s5 + $0x10] sm:$0xff]  ;;  %v7423_v7 = vld [vmem:[%s7996_s5 + $0x8] sm:$0xff] }
 0x5b2   :  { %v2815_v51 = vsel %vm2793_vm9, %v7230_v47, 0.0  ;;  %v2825_v52 = vmul.f32 %v7230_v47, %v7230_v47  ;;  %v2828_v55 = vsel %vm2795_vm10, %v2826_v45, 0.0  ;;  %v7428_v45 = vld [vmem:[%s7996_s5 + $0x80] sm:$0xff] }
 0x5b3   :  { %v2817_v54 = vadd.f32 %v2816_v44, %v2815_v51  ;;  %v7442_v44 = vld [vmem:[%s7996_s5 + $0x78] sm:$0xff] }
 0x5b4   :  { %v2827_v56 = vsel %vm2793_vm9, %v2825_v52, 0.0 }
 0x5b5   :  { %v2818_v59 = vrot.slane %v2817_v54, 4  ;;  %v2829_v60 = vadd.f32 %v2828_v55, %v2827_v56 }
 0x5b7   :  { %v2819_v62 = vadd.f32 %v2818_v59, %v2817_v54  ;;  %v2830_v63 = vrot.slane %v2829_v60, 4 }
 0x5b9   :  { %v2820_v46 = vrot.slane %v2819_v62, 2  ;;  %v2831_v3 = vadd.f32 %v2830_v63, %v2829_v60 }
 0x5bb   :  { %v2821_v19 = vadd.f32 %v2820_v46, %v2819_v62  ;;  %v2832_v20 = vrot.slane %v2831_v3, 2  ;;  %v3003_v62 = vld [vmem:[#allocation8] sm:$0x1]  ;;  %v3007_v46 = vld [vmem:[#allocation8 + $0x1] sm:$0x1] }
 0x5bd   :  { %v2822_v22 = vrot.slane %v2821_v19, 1  ;;  %v2833_v17 = vadd.f32 %v2832_v20, %v2831_v3 }
 0x5bf   :  { %v2823_v9 = vadd.f32 %v2822_v22, %v2821_v19  ;;  %v2834_v21 = vrot.slane %v2833_v17, 1 }
 0x5c1   :  { %v2824_v36 = vadd.f32 %v2823_v9, %v2803_v29  ;;  %v2835_v39 = vadd.f32 %v2834_v21, %v2833_v17 }
 0x5c3   :  { %5341 = vmatmul.mubr.msk.f32.vlgmr.msra.gmra.mxu0 %vm2793_vm9, %v2824_v36  ;;  %v2836_v15 = vadd.f32 %v2835_v39, %v2814_v11 }
 0x5c4   :  { %5377 = vmatpush3.msra.mxu0 %v7245_v13 }
 0x5c5   :  { %5374 = vmatmul.mubr.msk.f32.vlgmr.msra.gmra.mxu1 %vm2793_vm9, %v2836_v15  ;;  %5378 = vmatprep.subr.mxu0 %v7259_v41 }
 0x5c6   :  { %5410 = vmatpush3.msra.mxu1 %v7250_v35  ;;  %5379 = vmatpush3.msra.mxu0 %v7259_v41 }
 0x5c7   :  { %5411 = vmatprep.subr.mxu1 %v7264_v4  ;;  %5380 = vmatprep.subr.mxu0 %v7273_v23 }
 0x5c8   :  { %5412 = vmatpush3.msra.mxu1 %v7264_v4  ;;  %5381 = vmatpush3.msra.mxu0 %v7273_v23 }
 0x5c9   :  { %5413 = vmatprep.subr.mxu1 %v7278_v37  ;;  %5382 = vmatprep.subr.mxu0 %v7287_v31 }
 0x5ca   :  { %5414 = vmatpush3.msra.mxu1 %v7278_v37  ;;  %5383 = vmatpush3.msra.mxu0 %v7287_v31 }
 0x5cb   :  { %5415 = vmatprep.subr.mxu1 %v7292_v8  ;;  %5384 = vmatprep.subr.mxu0 %v7301_v24 }
 0x5cc   :  { %5416 = vmatpush3.msra.mxu1 %v7292_v8  ;;  %5385 = vmatpush3.msra.mxu0 %v7301_v24 }
 0x5cd   :  { %5417 = vmatprep.subr.mxu1 %v7306_v38  ;;  %5386 = vmatprep.subr.mxu0 %v7315_v42 }
 0x5ce   :  { %5418 = vmatpush3.msra.mxu1 %v7306_v38  ;;  %5387 = vmatpush3.msra.mxu0 %v7315_v42 }
 0x5cf   :  { %5419 = vmatprep.subr.mxu1 %v7320_v43  ;;  %5388 = vmatprep.subr.mxu0 %v7329_v12 }
 0x5d0   :  { %5420 = vmatpush3.msra.mxu1 %v7320_v43  ;;  %5389 = vmatpush3.msra.mxu0 %v7329_v12 }
 0x5d1   :  { %5421 = vmatprep.subr.mxu1 %v7334_v25  ;;  %5390 = vmatprep.subr.mxu0 %v7343_v30 }
 0x5d2   :  { %5422 = vmatpush3.msra.mxu1 %v7334_v25  ;;  %5391 = vmatpush3.msra.mxu0 %v7343_v30 }
 0x5d3   :  { %5423 = vmatprep.subr.mxu1 %v7348_v14  ;;  %5392 = vmatprep.subr.mxu0 %v7357_v40 }
 0x5d4   :  { %5424 = vmatpush3.msra.mxu1 %v7348_v14  ;;  %5393 = vmatpush3.msra.mxu0 %v7357_v40 }
 0x5d5   :  { %5425 = vmatprep.subr.mxu1 %v7362_v27  ;;  %5394 = vmatprep.subr.mxu0 %v7371_v26 }
 0x5d6   :  { %5426 = vmatpush3.msra.mxu1 %v7362_v27  ;;  %5395 = vmatpush3.msra.mxu0 %v7371_v26 }
 0x5d7   :  { %5427 = vmatprep.subr.mxu1 %v7376_v32  ;;  %5396 = vmatprep.subr.mxu0 %v7381_v28 }
 0x5d8   :  { %5428 = vmatpush3.msra.mxu1 %v7376_v32  ;;  %5397 = vmatpush3.msra.mxu0 %v7381_v28 }
 0x5d9   :  { %5429 = vmatprep.subr.mxu1 %v7388_v50  ;;  %5398 = vmatprep.subr.mxu0 %v7395_v10 }
 0x5da   :  { %5430 = vmatpush3.msra.mxu1 %v7388_v50  ;;  %5399 = vmatpush3.msra.mxu0 %v7395_v10 }
 0x5db   :  { %5431 = vmatprep.subr.mxu1 %v7400_v2  ;;  %5400 = vmatprep.subr.mxu0 %v7409_v34 }
 0x5dc   :  { %5432 = vmatpush3.msra.mxu1 %v7400_v2  ;;  %5401 = vmatpush3.msra.mxu0 %v7409_v34 }
 0x5dd   :  { %5433 = vmatprep.subr.mxu1 %v7414_v18  ;;  %5402 = vmatprep.subr.mxu0 %v7423_v7 }
 0x5de   :  { %5434 = vmatpush3.msra.mxu1 %v7414_v18  ;;  %5403 = vmatpush3.msra.mxu0 %v7423_v7 }
 0x5df   :  { %5435 = vmatprep.subr.mxu1 %v7428_v45  ;;  %5404 = vmatprep.subr.mxu0 %v7437_v49 }
 0x5e0   :  { %5436 = vmatpush3.msra.mxu1 %v7428_v45  ;;  %5405 = vmatpush3.msra.mxu0 %v7437_v49 }
 0x5e1   :  { %5437 = vmatprep.subr.mxu1 %v7442_v44  ;;  %5442 = vmatprep.subr.mxu0 %v8025_v48 }
 0x5e2   :  { %5438 = vmatpush3.msra.mxu1 %v7442_v44 }
 0x5e3   :  { %5475 = vmatprep.subr.mxu1 %v8025_v48 }
 0x683   :  { %v2921_v51 = vpop.f32.mrf.mxu0 }
 0x684   :  { %v2925_v52 = vmul.f32 0.005, %v2921_v51 }
 0x685   :  { %v5342_v53 = vpop.f32.mrf.mxu0  ;;  %v2995_v54 = vpop.f32.mrf.mxu1 }
 0x686   :  { %v3000_v55 = vmul.f32 %v2925_v52, %v2925_v52  ;;  %v2999_v56 = vmul.f32 0.005, %v2995_v54  ;;  %v3212_v54 = vld [vmem:[%s7997_s6] sm:$0x1f] }
 0x687   :  { %v5375_v58 = vpop.f32.mrf.mxu1 }
 0x688   :  { %v3001_v59 = vsub.f32 %v2999_v56, %v3000_v55  ;;  %v4749_v55 = vld [vmem:[%s7997_s6 + $0x8] sm:$0x1f]  ;;  %v3374_v56 = vld [vmem:[%s8002_s11 + $0x38] sm:$0xf]  ;;  %v7520_v58 = vld [vmem:[%s8002_s11 + $0x30] sm:$0xff] }
 0x68a   :  { %v3002_v60 = vmax.f32 %v3001_v59, 0.0  ;;  %v7529_v59 = vld [vmem:[%s8002_s11 + $0x28] sm:$0xff] }
 0x68c   :  { %v3004_v61 = vadd.f32 1e-05, %v3002_v60  ;;  %v7536_v60 = vld [vmem:[%s8002_s11 + $0x20] sm:$0xff] }
 0x68e   :  { %5740 = vrsqrt.f32 %v3004_v61  ;;  %v7543_v61 = vld [vmem:[%s8002_s11 + $0x18] sm:$0xff] }
 0x69b   :  { %v5741_v63 = vpop.eup %5740 }
 0x69c   :  { %v3006_v1 = vmul.f32 %v5741_v63, %v3003_v62  ;;  %v7552_v62 = vld [vmem:[%s8002_s11 + $0x10] sm:$0xff]  ;;  %v7557_v63 = vld [vmem:[%s8002_s11 + $0x58] sm:$0xff] }
 0x69e   :  { %v3008_v3 = vmul.f32 %v3006_v1, %v2925_v52  ;;  %v3014_v5 = vrot.slane %v3006_v1, %v6844_v33  ;;  %v7566_v1 = vld [vmem:[%s8002_s11 + $0x8] sm:$0xff] }
 0x6a0   :  { %v3009_v19 = vsub.f32 %v3007_v46, %v3008_v3  ;;  %v3015_v20 = vmul.f32 %v3014_v5, %v7212_v6  ;;  %v3016_v22 = vmul.f32 %v3014_v5, %v7214_v16  ;;  %v3799_v17 = vmul.f32 %v3014_v5, %v7230_v47  ;;  %v7480_v6 = vld [vmem:[%s8002_s11 + $0x70] sm:$0xff]  ;;  %v7487_v16 = vld [vmem:[%s8002_s11 + $0x68] sm:$0xff]  ;;  %v7580_v3 = vld [vmem:[%s8002_s11] sm:$0xff] }
 0x6a1   :  { %v3800_v29 = vmul.f32 %v3014_v5, %v7226_v0  ;;  %v7494_v0 = vld [vmem:[%s8002_s11 + $0x60] sm:$0xff]  ;;  %v7571_v46 = vld [vmem:[%s8002_s11 + $0x50] sm:$0xff]  ;;  %v7585_v5 = vld [vmem:[%s8002_s11 + $0x48] sm:$0xff] }
 0x6a2   :  { %v3020_v57 = vrot.slane %v3009_v19, %v6844_v33  ;;  %v4761_v33 = vld [vmem:[%s8002_s11 + $0x78] sm:$0xf]  ;;  %v7594_v19 = vld [vmem:[%s8002_s11 + $0x40] sm:$0xff] }
 0x6a4   :  { %v3021_v9 = vadd.f32 %v3020_v57, %v3015_v20  ;;  %v3022_v21 = vadd.f32 %v3020_v57, %v3016_v22  ;;  %v7460_v36 = vadd.f32 %v3799_v17, %v3020_v57  ;;  %v7462_v11 = vadd.f32 %v3800_v29, %v3020_v57  ;;  %v4771_v29 = vld [vmem:[%s8002_s11 + $0xb8] sm:$0xf] }
 0x6a6   :  { %5406 = vmatprep.mubr.msk.f32.mxu0 %vm2793_vm9, %v3021_v9  ;;  %5439 = vmatprep.mubr.msk.f32.mxu1 %vm2793_vm9, %v3021_v9 }
 0x6a7   :  { %5407 = vmatmul.mubr.msk.f32.vlgmr.msra.gmra.mxu0 %vm2793_vm9, %v3022_v21  ;;  %5440 = vmatmul.mubr.msk.f32.vlgmr.msra.gmra.mxu1 %vm2793_vm9, %v3022_v21 }
 0x6a8   :  { %5446 = vmatprep.mubr.msk.f32.mxu0 %vm5858_vm8, %v8025_v48  ;;  %5491 = vmatprep.mubr.msk.f32.mxu1 %vm5858_vm8, %v8025_v48 }
 0x6a9   :  { %5476 = vmatpush3.msk.msra.mxu1 %vm136_vm0, %v4761_v33  ;;  %v7609_v33 = vld [vmem:[%s8002_s11 + $0xb0] sm:$0xff] }
 0x6aa   :  { %5477 = vmatprep.subr.mxu1 %v8025_v48 }
 0x6ab   :  { %5478 = vmatpush3.msra.mxu1 %v7480_v6 }
 0x6ac   :  { %5479 = vmatprep.subr.mxu1 %v8025_v48 }
 0x6ad   :  { %5480 = vmatpush3.msra.mxu1 %v7487_v16 }
 0x6ae   :  { %5481 = vmatprep.subr.mxu1 %v8025_v48 }
 0x6af   :  { %5482 = vmatpush3.msra.mxu1 %v7494_v0 }
 0x6b0   :  { %5483 = vmatprep.subr.mxu1 %v8025_v48 }
 0x6b1   :  { %5484 = vmatpush3.msra.mxu1 %v7557_v63 }
 0x6b2   :  { %5485 = vmatprep.subr.mxu1 %v8025_v48 }
 0x6b3   :  { %5486 = vmatpush3.msra.mxu1 %v7571_v46 }
 0x6b4   :  { %5487 = vmatprep.subr.mxu1 %v8025_v48 }
 0x6b5   :  { %5488 = vmatpush3.msra.mxu1 %v7585_v5 }
 0x6b6   :  { %5489 = vmatprep.subr.mxu1 %v8025_v48 }
 0x6b7   :  { %5490 = vmatpush3.msra.mxu1 %v7594_v19 }
 0x6b8   :  { %5513 = vmatprep.subr.mxu1 %v8025_v48 }
 0x767   :  { %v5408_v47 = vpop.f32.mrf.mxu0  ;;  %v5441_v39 = vpop.f32.mrf.mxu1 }
 0x768   :  { %v3211_v15 = vmax.f32 %v5408_v47, %v5441_v39  ;;  %v4781_v47 = vld [vmem:[%s8002_s11 + $0xf8] sm:$0xf]  ;;  %v7622_v39 = vld [vmem:[%s8002_s11 + $0xa8] sm:$0xff] }
 0x769   :  { %v3110_v51 = vpop.f32.mrf.mxu0  ;;  %v3201_v52 = vpop.f32.mrf.mxu1 }
 0x76a   :  { %v3210_v53 = vmax.f32 %v3110_v51, %v3201_v52  ;;  %5443 = vmatpush3.msk.msra.mxu0 %vm3217_vm11, %v3211_v15  ;;  %v7636_v51 = vld [vmem:[%s8002_s11 + $0xa0] sm:$0xff]  ;;  %v7641_v52 = vld [vmem:[%s8002_s11 + $0xe8] sm:$0xff] }
 0x76b   :  { %5444 = vmatprep.subr.mxu0 %v8025_v48 }
 0x76c   :  { %5445 = vmatpush3.msra.mxu0 %v3210_v53 }
 0x76d   :  { %5447 = vmatmul.mubr.msk.f32.vlgmr.msra.gmra.mxu0 %vm3213_vm12, %v3212_v54  ;;  %5449 = vmatprep.subr.mxu0 %v8025_v48  ;;  %v7655_v54 = vld [vmem:[%s8002_s11 + $0xe0] sm:$0xff] }
 0x76e   :  { %5450 = vmatpush3.msk.msra.mxu0 %vm3217_vm11, %v3211_v15  ;;  %5453 = vmatprep.mubr.msk.f32.mxu0 %vm5858_vm8, %v8025_v48  ;;  %v7627_v15 = vld [vmem:[%s8002_s11 + $0xf0] sm:$0xff] }
 0x76f   :  { %5451 = vmatprep.subr.mxu0 %v8025_v48 }
 0x770   :  { %5452 = vmatpush3.msra.mxu0 %v3210_v53  ;;  %v7650_v53 = vld [vmem:[%s8002_s11 + $0x98] sm:$0xff] }
 0x771   :  { %5454 = vmatmul.mubr.msk.f32.vlgmr.msra.gmra.mxu0 %vm3213_vm12, %v4749_v55  ;;  %5456 = vmatprep.subr.mxu0 %v8025_v48  ;;  %v7664_v55 = vld [vmem:[%s8002_s11 + $0x90] sm:$0xff] }
 0x772   :  { %5457 = vmatpush3.msk.msra.mxu0 %vm136_vm0, %v3374_v56  ;;  %5472 = vmatprep.mubr.msk.f32.mxu0 %vm5858_vm8, %v8025_v48  ;;  %v7669_v56 = vld [vmem:[%s8002_s11 + $0xd8] sm:$0xff] }
 0x773   :  { %5458 = vmatprep.subr.mxu0 %v8025_v48 }
 0x774   :  { %5459 = vmatpush3.msra.mxu0 %v7520_v58 }
 0x775   :  { %5460 = vmatprep.subr.mxu0 %v8025_v48 }
 0x776   :  { %5461 = vmatpush3.msra.mxu0 %v7529_v59 }
 0x777   :  { %5462 = vmatprep.subr.mxu0 %v8025_v48 }
 0x778   :  { %5463 = vmatpush3.msra.mxu0 %v7536_v60 }
 0x779   :  { %5464 = vmatprep.subr.mxu0 %v8025_v48 }
 0x77a   :  { %5465 = vmatpush3.msra.mxu0 %v7543_v61 }
 0x77b   :  { %5466 = vmatprep.subr.mxu0 %v8025_v48 }
 0x77c   :  { %5467 = vmatpush3.msra.mxu0 %v7552_v62 }
 0x77d   :  { %5468 = vmatprep.subr.mxu0 %v8025_v48 }
 0x77e   :  { %5469 = vmatpush3.msra.mxu0 %v7566_v1 }
 0x77f   :  { %5470 = vmatprep.subr.mxu0 %v8025_v48 }
 0x780   :  { %5471 = vmatpush3.msra.mxu0 %v7580_v3 }
 0x781   :  { %5494 = vmatprep.subr.mxu0 %v8025_v48 }
 0x82d   :  { %v3287_v20 = vpop.f32.mrf.mxu0 }
 0x82f   :  { %v5448_v57 = vpop.f32.mrf.mxu0 }
 0x830   :  { %v7683_v57 = vld [vmem:[%s8002_s11 + $0xd0] sm:$0xff] }
 0x831   :  { %v3362_v22 = vpop.f32.mrf.mxu0  ;;  %8034 = vst [vmem:[#allocation15_spill] sm:$0xff] %v7683_v57 }
 0x832   :  { %v7598_v17 = vmax.f32 %v3287_v20, %v3362_v22  ;;  %v7678_v20 = vld [vmem:[%s8002_s11 + $0x88] sm:$0xff]  ;;  %v7692_v22 = vld [vmem:[%s8002_s11 + $0x80] sm:$0xff] }
 0x833   :  { %v5455_v9 = vpop.f32.mrf.mxu0  ;;  %8035 = vst [vmem:[#allocation16_spill] sm:$0xff] %v7692_v22 }
 0x834   :  { %5473 = vmatmul.mubr.msk.f32.vlgmr.msra.gmra.mxu0 %vm3375_vm13, %v7598_v17  ;;  %v3462_v21 = vrot.slane %v7598_v17, 1  ;;  %v3548_v9 = vrot.slane %v7598_v17, 2 }
 0x835   :  { %5495 = vmatpush3.msk.msra.mxu0 %vm136_vm0, %v4771_v29  ;;  %5510 = vmatprep.mubr.msk.f32.mxu0 %vm5858_vm8, %v8025_v48  ;;  %v7697_v29 = vld [vmem:[%s8002_s11 + $0xc8] sm:$0xff] }
 0x836   :  { %5496 = vmatprep.subr.mxu0 %v8025_v48  ;;  %5492 = vmatmul.mubr.msk.f32.vlgmr.msra.gmra.mxu1 %vm3375_vm13, %v3462_v21  ;;  %v7707_v21 = vld [vmem:[%s8002_s11 + $0xc0] sm:$0xff] }
 0x837   :  { %5497 = vmatpush3.msra.mxu0 %v7609_v33  ;;  %5514 = vmatpush3.msk.msra.mxu1 %vm136_vm0, %v4781_v47  ;;  %v4791_v47 = vld [vmem:[%s8002_s11 + $0x138] sm:$0xf] }
 0x838   :  { %5498 = vmatprep.subr.mxu0 %v8025_v48  ;;  %5515 = vmatprep.subr.mxu1 %v8025_v48 }
 0x839   :  { %5499 = vmatpush3.msra.mxu0 %v7622_v39  ;;  %5516 = vmatpush3.msra.mxu1 %v7627_v15 }
 0x83a   :  { %5500 = vmatprep.subr.mxu0 %v8025_v48  ;;  %5517 = vmatprep.subr.mxu1 %v8025_v48 }
 0x83b   :  { %5501 = vmatpush3.msra.mxu0 %v7636_v51  ;;  %5518 = vmatpush3.msra.mxu1 %v7641_v52 }
 0x83c   :  { %5502 = vmatprep.subr.mxu0 %v8025_v48  ;;  %5519 = vmatprep.subr.mxu1 %v8025_v48 }
 0x83d   :  { %5503 = vmatpush3.msra.mxu0 %v7650_v53  ;;  %5520 = vmatpush3.msra.mxu1 %v7655_v54 }
 0x83e   :  { %5504 = vmatprep.subr.mxu0 %v8025_v48  ;;  %5521 = vmatprep.subr.mxu1 %v8025_v48 }
 0x83f   :  { %5505 = vmatpush3.msra.mxu0 %v7664_v55  ;;  %5522 = vmatpush3.msra.mxu1 %v7669_v56 }
 0x840   :  { %5506 = vmatprep.subr.mxu0 %v8025_v48  ;;  %5523 = vmatprep.subr.mxu1 %v8025_v48 }
 0x841   :  { %5507 = vmatpush3.msra.mxu0 %v7678_v20  ;;  %5524 = vmatpush3.msra.mxu1 %v7683_v57  ;;  %v3634_v57 = vrot.slane %v7598_v17, 3 }
 0x842   :  { %5508 = vmatprep.subr.mxu0 %v8025_v48  ;;  %5525 = vmatprep.subr.mxu1 %v8025_v48 }
 0x843   :  { %5509 = vmatpush3.msra.mxu0 %v7692_v22  ;;  %5526 = vmatpush3.msra.mxu1 %v7697_v29  ;;  %v7722_v22 = vld [vmem:[%s8002_s11 + $0x130] sm:$0xff] }
 0x844   :  { %5511 = vmatmul.mubr.msk.f32.vlgmr.msra.gmra.mxu0 %vm3375_vm13, %v3548_v9  ;;  %5527 = vmatprep.subr.mxu1 %v8025_v48  ;;  %v7734_v9 = vld [vmem:[%s8002_s11 + $0x128] sm:$0xff] }
 0x845   :  { %5532 = vmatprep.subr.mxu0 %v8025_v48  ;;  %5528 = vmatpush3.msra.mxu1 %v7707_v21 }
 0x846   :  { %5529 = vmatprep.mubr.msk.f32.mxu1 %vm5858_vm8, %v8025_v48  ;;  %5533 = vmatpush3.msk.msra.mxu0 %vm136_vm0, %v4791_v47  ;;  %v3720_v47 = vrot.slane %v7598_v17, 4 }
 0x847   :  { %5530 = vmatmul.mubr.msk.f32.vlgmr.msra.gmra.mxu1 %vm3375_vm13, %v3634_v57  ;;  %5534 = vmatprep.subr.mxu0 %v8025_v48  ;;  %v7744_v57 = vld [vmem:[%s8002_s11 + $0x120] sm:$0xff] }
 0x848   :  { %5551 = vmatprep.subr.mxu1 %v7245_v13  ;;  %5535 = vmatpush3.msra.mxu0 %v7722_v22 }
 0x849   :  { %5552 = vmatpush3.msra.mxu1 %v7245_v13  ;;  %5581 = vmatprep.mubr.msk.f32.mxu1 %vm2793_vm9, %v7460_v36  ;;  %v7753_v13 = vld [vmem:[%s8002_s11 + $0x118] sm:$0xff] }
 0x84a   :  { %5536 = vmatprep.subr.mxu0 %v8025_v48  ;;  %5553 = vmatprep.subr.mxu1 %v7259_v41 }
 0x84b   :  { %5537 = vmatpush3.msra.mxu0 %v7734_v9  ;;  %5554 = vmatpush3.msra.mxu1 %v7259_v41  ;;  %v7762_v41 = vld [vmem:[%s8002_s11 + $0x110] sm:$0xff] }
 0x84c   :  { %5538 = vmatprep.subr.mxu0 %v8025_v48  ;;  %5555 = vmatprep.subr.mxu1 %v7273_v23 }
 0x84d   :  { %5539 = vmatpush3.msra.mxu0 %v7744_v57  ;;  %5556 = vmatpush3.msra.mxu1 %v7273_v23  ;;  %v7771_v23 = vld [vmem:[%s8002_s11 + $0x108] sm:$0xff] }
 0x84e   :  { %5540 = vmatprep.subr.mxu0 %v8025_v48  ;;  %5557 = vmatprep.subr.mxu1 %v7287_v31 }
 0x84f   :  { %5541 = vmatpush3.msra.mxu0 %v7753_v13  ;;  %5558 = vmatpush3.msra.mxu1 %v7287_v31  ;;  %v7780_v31 = vld [vmem:[%s8002_s11 + $0x100] sm:$0xff] }
 0x850   :  { %5542 = vmatprep.subr.mxu0 %v8025_v48  ;;  %5559 = vmatprep.subr.mxu1 %v7301_v24 }
 0x851   :  { %5543 = vmatpush3.msra.mxu0 %v7762_v41  ;;  %5560 = vmatpush3.msra.mxu1 %v7301_v24 }
 0x852   :  { %5544 = vmatprep.subr.mxu0 %v8025_v48  ;;  %5561 = vmatprep.subr.mxu1 %v7315_v42 }
 0x853   :  { %5545 = vmatpush3.msra.mxu0 %v7771_v23  ;;  %5562 = vmatpush3.msra.mxu1 %v7315_v42 }
 0x854   :  { %5546 = vmatprep.subr.mxu0 %v8025_v48  ;;  %5563 = vmatprep.subr.mxu1 %v7329_v12 }
 0x855   :  { %5547 = vmatpush3.msra.mxu0 %v7780_v31  ;;  %5548 = vmatprep.mubr.msk.f32.mxu0 %vm5858_vm8, %v8025_v48 }
 0x856   :  { %5564 = vmatpush3.msra.mxu1 %v7329_v12  ;;  %5549 = vmatmul.mubr.msk.f32.vlgmr.msra.gmra.mxu0 %vm3375_vm13, %v3720_v47  ;;  %v7872_v12 = vld [vmem:[%s8003_s12] sm:$0x1] }
 0x857   :  { %5565 = vmatprep.subr.mxu1 %v7343_v30  ;;  %5584 = vmatprep.subr.mxu0 %v7250_v35 }
 0x858   :  { %5566 = vmatpush3.msra.mxu1 %v7343_v30  ;;  %5585 = vmatpush3.msra.mxu0 %v7250_v35  ;;  %v4827_v35 = vld [vmem:[%s8002_s11 + $0x78] sm:$0xf] }
 0x859   :  { %5614 = vmatprep.mubr.msk.f32.mxu0 %vm2793_vm9, %v7460_v36  ;;  %5567 = vmatprep.subr.mxu1 %v7357_v40 }
 0x85a   :  { %5586 = vmatprep.subr.mxu0 %v7264_v4  ;;  %5568 = vmatpush3.msra.mxu1 %v7357_v40 }
 0x85b   :  { %5587 = vmatpush3.msra.mxu0 %v7264_v4  ;;  %5569 = vmatprep.subr.mxu1 %v7371_v26 }
 0x85c   :  { %5588 = vmatprep.subr.mxu0 %v7278_v37  ;;  %5570 = vmatpush3.msra.mxu1 %v7371_v26 }
 0x85d   :  { %5589 = vmatpush3.msra.mxu0 %v7278_v37  ;;  %5571 = vmatprep.subr.mxu1 %v7381_v28 }
 0x85e   :  { %5590 = vmatprep.subr.mxu0 %v7292_v8  ;;  %5572 = vmatpush3.msra.mxu1 %v7381_v28 }
 0x85f   :  { %5591 = vmatpush3.msra.mxu0 %v7292_v8  ;;  %5573 = vmatprep.subr.mxu1 %v7395_v10 }
 0x860   :  { %5592 = vmatprep.subr.mxu0 %v7306_v38  ;;  %5574 = vmatpush3.msra.mxu1 %v7395_v10 }
 0x861   :  { %5593 = vmatpush3.msra.mxu0 %v7306_v38  ;;  %5575 = vmatprep.subr.mxu1 %v7409_v34 }
 0x862   :  { %5594 = vmatprep.subr.mxu0 %v7320_v43  ;;  %5576 = vmatpush3.msra.mxu1 %v7409_v34 }
 0x863   :  { %5595 = vmatpush3.msra.mxu0 %v7320_v43  ;;  %5577 = vmatprep.subr.mxu1 %v7423_v7 }
 0x864   :  { %5596 = vmatprep.subr.mxu0 %v7334_v25  ;;  %5578 = vmatpush3.msra.mxu1 %v7423_v7 }
 0x865   :  { %5597 = vmatpush3.msra.mxu0 %v7334_v25  ;;  %5579 = vmatprep.subr.mxu1 %v7437_v49 }
 0x866   :  { %5598 = vmatprep.subr.mxu0 %v7348_v14  ;;  %5580 = vmatpush3.msra.mxu1 %v7437_v49  ;;  %v4815_v49 = vld [vmem:[%s7997_s6 + $0x8] sm:$0x1f] }
 0x867   :  { %5599 = vmatpush3.msra.mxu0 %v7348_v14  ;;  %5582 = vmatmul.mubr.msk.f32.vlgmr.msra.gmra.mxu1 %vm2793_vm9, %v7462_v11 }
 0x868   :  { %5600 = vmatprep.subr.mxu0 %v7362_v27  ;;  %5617 = vmatprep.subr.mxu1 %v8025_v48 }
 0x869   :  { %5601 = vmatpush3.msra.mxu0 %v7362_v27  ;;  %5621 = vmatprep.mubr.msk.f32.mxu1 %vm5858_vm8, %v8025_v48 }
 0x86a   :  { %5602 = vmatprep.subr.mxu0 %v7376_v32 }
 0x86b   :  { %5603 = vmatpush3.msra.mxu0 %v7376_v32 }
 0x86c   :  { %5604 = vmatprep.subr.mxu0 %v7388_v50 }
 0x86d   :  { %5605 = vmatpush3.msra.mxu0 %v7388_v50 }
 0x86e   :  { %5606 = vmatprep.subr.mxu0 %v7400_v2 }
 0x86f   :  { %5607 = vmatpush3.msra.mxu0 %v7400_v2 }
 0x870   :  { %5608 = vmatprep.subr.mxu0 %v7414_v18 }
 0x871   :  { %5609 = vmatpush3.msra.mxu0 %v7414_v18 }
 0x872   :  { %5610 = vmatprep.subr.mxu0 %v7428_v45 }
 0x873   :  { %5611 = vmatpush3.msra.mxu0 %v7428_v45  ;;  %v3991_v45 = vld [vmem:[%s7997_s6] sm:$0x1f] }
 0x874   :  { %5612 = vmatprep.subr.mxu0 %v7442_v44 }
 0x875   :  { %5613 = vmatpush3.msra.mxu0 %v7442_v44  ;;  %v4150_v44 = vld [vmem:[%s8002_s11 + $0x38] sm:$0xf] }
 0x876   :  { %5615 = vmatmul.mubr.msk.f32.vlgmr.msra.gmra.mxu0 %vm2793_vm9, %v7462_v11  ;;  %5650 = vmatprep.subr.mxu0 %v8025_v48 }
 0x877   :  { %5666 = vmatprep.mubr.msk.f32.mxu0 %vm5858_vm8, %v8025_v48  ;;  %5651 = vmatpush3.msk.msra.mxu0 %vm136_vm0, %v4827_v35 }
 0x878   :  { %5652 = vmatprep.subr.mxu0 %v8025_v48 }
 0x879   :  { %5653 = vmatpush3.msra.mxu0 %v7480_v6 }
 0x87a   :  { %5654 = vmatprep.subr.mxu0 %v8025_v48 }
 0x87b   :  { %5655 = vmatpush3.msra.mxu0 %v7487_v16 }
 0x87c   :  { %5656 = vmatprep.subr.mxu0 %v8025_v48 }
 0x87d   :  { %5657 = vmatpush3.msra.mxu0 %v7494_v0  ;;  %v4837_v0 = vld [vmem:[%s8002_s11 + $0xb8] sm:$0xf] }
 0x87e   :  { %5658 = vmatprep.subr.mxu0 %v8025_v48 }
 0x87f   :  { %5659 = vmatpush3.msra.mxu0 %v7557_v63  ;;  %v8037_v63 = vld [vmem:[#allocation16_spill] sm:$0xff] }
 0x880   :  { %5660 = vmatprep.subr.mxu0 %v8025_v48 }
 0x881   :  { %5661 = vmatpush3.msra.mxu0 %v7571_v46 }
 0x882   :  { %5662 = vmatprep.subr.mxu0 %v8025_v48 }
 0x883   :  { %5663 = vmatpush3.msra.mxu0 %v7585_v5 }
 0x884   :  { %5664 = vmatprep.subr.mxu0 %v8025_v48 }
 0x885   :  { %5665 = vmatpush3.msra.mxu0 %v7594_v19 }
 0x886   :  { %5688 = vmatprep.subr.mxu0 %v8025_v48 }
 0x8f4   :  { %v3448_v4 = vpop.f32.mrf.mxu0 }
 0x8f5   :  { %v3452_v30 = vadd.f32 %v3448_v4, %v7872_v12 }
 0x8f6   :  { %v5474_v37 = vpop.f32.mrf.mxu0  ;;  %v3534_v8 = vpop.f32.mrf.mxu1 }
 0x8f7   :  { %v3538_v14 = vadd.f32 %v3534_v8, %v3452_v30 }
 0x8f8   :  { %v5493_v24 = vpop.f32.mrf.mxu1 }
 0x904   :  { %v3620_v38 = vpop.f32.mrf.mxu0 }
 0x905   :  { %v3624_v40 = vadd.f32 %v3620_v38, %v3538_v14 }
 0x906   :  { %v5512_v42 = vpop.f32.mrf.mxu0 }
 0x907   :  { %v3706_v43 = vpop.f32.mrf.mxu1 }
 0x908   :  { %v3710_v27 = vadd.f32 %v3706_v43, %v3624_v40 }
 0x909   :  { %v5531_v25 = vpop.f32.mrf.mxu1 }
 0x916   :  { %v3792_v26 = vpop.f32.mrf.mxu0 }
 0x917   :  { %v3796_v32 = vadd.f32 %v3792_v26, %v3710_v27 }
 0x918   :  { %v5550_v28 = vpop.f32.mrf.mxu0 }
 0x919   :  { %3798 = vst.msk [vmem:[#allocation10] sm:$0x1] %vm3797_vm14, %v3796_v32 }
 0x927   :  { %v5583_v50 = vpop.f32.mrf.mxu1 }
 0x929   :  { %v3890_v34 = vpop.f32.mrf.mxu1 }
 0x936   :  { %v5616_v10 = vpop.f32.mrf.mxu0 }
 0x937   :  { %v3990_v2 = vmax.f32 %v5583_v50, %v5616_v10 }
 0x938   :  { %v3980_v18 = vpop.f32.mrf.mxu0 }
 0x939   :  { %v3989_v7 = vmax.f32 %v3890_v34, %v3980_v18  ;;  %5618 = vmatpush3.msk.msra.mxu1 %vm3217_vm11, %v3990_v2 }
 0x93a   :  { %5619 = vmatprep.subr.mxu1 %v8025_v48 }
 0x93b   :  { %5620 = vmatpush3.msra.mxu1 %v3989_v7 }
 0x93c   :  { %5622 = vmatmul.mubr.msk.f32.vlgmr.msra.gmra.mxu1 %vm3213_vm12, %v3991_v45  ;;  %5624 = vmatprep.subr.mxu1 %v8025_v48 }
 0x93d   :  { %5625 = vmatpush3.msk.msra.mxu1 %vm3217_vm11, %v3990_v2  ;;  %5628 = vmatprep.mubr.msk.f32.mxu1 %vm5858_vm8, %v8025_v48 }
 0x93e   :  { %5626 = vmatprep.subr.mxu1 %v8025_v48 }
 0x93f   :  { %5627 = vmatpush3.msra.mxu1 %v3989_v7 }
 0x940   :  { %5629 = vmatmul.mubr.msk.f32.vlgmr.msra.gmra.mxu1 %vm3213_vm12, %v4815_v49  ;;  %5631 = vmatprep.subr.mxu1 %v8025_v48 }
 0x941   :  { %5632 = vmatpush3.msk.msra.mxu1 %vm136_vm0, %v4150_v44  ;;  %5647 = vmatprep.mubr.msk.f32.mxu1 %vm5858_vm8, %v8025_v48 }
 0x942   :  { %5633 = vmatprep.subr.mxu1 %v8025_v48 }
 0x943   :  { %5634 = vmatpush3.msra.mxu1 %v7520_v58 }
 0x944   :  { %5635 = vmatprep.subr.mxu1 %v8025_v48 }
 0x945   :  { %5636 = vmatpush3.msra.mxu1 %v7529_v59 }
 0x946   :  { %5637 = vmatprep.subr.mxu1 %v8025_v48 }
 0x947   :  { %5638 = vmatpush3.msra.mxu1 %v7536_v60  ;;  %v4847_v60 = vld [vmem:[%s8002_s11 + $0xf8] sm:$0xf] }
 0x948   :  { %5639 = vmatprep.subr.mxu1 %v8025_v48 }
 0x949   :  { %5640 = vmatpush3.msra.mxu1 %v7543_v61  ;;  %v8036_v61 = vld [vmem:[#allocation15_spill] sm:$0xff] }
 0x94a   :  { %5641 = vmatprep.subr.mxu1 %v8025_v48 }
 0x94b   :  { %5642 = vmatpush3.msra.mxu1 %v7552_v62 }
 0x94c   :  { %5643 = vmatprep.subr.mxu1 %v8025_v48 }
 0x94d   :  { %5644 = vmatpush3.msra.mxu1 %v7566_v1  ;;  %v4857_v1 = vld [vmem:[%s8002_s11 + $0x138] sm:$0xf]  ;;  %s5859_s11 = smov [#allocation10]  }
 0x94e   :  { %5645 = vmatprep.subr.mxu1 %v8025_v48  ;;  %s4575_s25 = sshll.u32 %s5859_s11, 4  ;;  %s4576_s25 = int_to_ptr.vmem [resolvable:$true] %s4575_s25 }
 0x94f   :  { %5646 = vmatpush3.msra.mxu1 %v7580_v3  ;;  %s5822_s26 = scalar_lea.vmem %s4576_s25, 32  ;;  %p5827_p7 = scmp.lt.s32.totalorder %s4576_s25, %s4576_s25 }
 0x950   :  { %5669 = vmatprep.subr.mxu1 %v8025_v48  ;;  %p5823_p6 = scmp.ne.s32.totalorder %s4576_s25, %s5822_s26  ;;  %p5828_p8 = scmp.lt.s32.totalorder %s5822_s26, %s5822_s26 }
 0x952   :  { %p5829_p9 = por %p5828_p8, %p5827_p7 }
 0x954   :  { %p5830_p10 = pnand %p5829_p9, %p5823_p6 }
 0x9fc   :  { %v4064_v36 = vpop.f32.mrf.mxu1 }
 0x9fe   :  { %v5623_v11 = vpop.f32.mrf.mxu1 }
 0xa00   :  { %v4138_v6 = vpop.f32.mrf.mxu1 }
 0xa01   :  { %v7913_v16 = vmax.f32 %v4064_v36, %v4138_v6 }
 0xa02   :  { %v5630_v58 = vpop.f32.mrf.mxu1 }
 0xa03   :  { %5648 = vmatmul.mubr.msk.f32.vlgmr.msra.gmra.mxu1 %vm3375_vm13, %v7913_v16  ;;  %v4236_v59 = vrot.slane %v7913_v16, 1  ;;  %v4321_v62 = vrot.slane %v7913_v16, 2  ;;  %v4406_v46 = vrot.slane %v7913_v16, 3  ;;  %v4491_v3 = vrot.slane %v7913_v16, 4 }
 0xa04   :  { %5670 = vmatpush3.msk.msra.mxu1 %vm136_vm0, %v4837_v0  ;;  %5685 = vmatprep.mubr.msk.f32.mxu1 %vm5858_vm8, %v8025_v48 }
 0xa05   :  { %5671 = vmatprep.subr.mxu1 %v8025_v48  ;;  %5667 = vmatmul.mubr.msk.f32.vlgmr.msra.gmra.mxu0 %vm3375_vm13, %v4236_v59 }
 0xa06   :  { %5672 = vmatpush3.msra.mxu1 %v7609_v33  ;;  %5689 = vmatpush3.msk.msra.mxu0 %vm136_vm0, %v4847_v60 }
 0xa07   :  { %5673 = vmatprep.subr.mxu1 %v8025_v48  ;;  %5690 = vmatprep.subr.mxu0 %v8025_v48 }
 0xa08   :  { %5674 = vmatpush3.msra.mxu1 %v7622_v39  ;;  %5691 = vmatpush3.msra.mxu0 %v7627_v15 }
 0xa09   :  { %5675 = vmatprep.subr.mxu1 %v8025_v48  ;;  %5692 = vmatprep.subr.mxu0 %v8025_v48 }
 0xa0a   :  { %5676 = vmatpush3.msra.mxu1 %v7636_v51  ;;  %5693 = vmatpush3.msra.mxu0 %v7641_v52 }
 0xa0b   :  { %5677 = vmatprep.subr.mxu1 %v8025_v48  ;;  %5694 = vmatprep.subr.mxu0 %v8025_v48 }
 0xa0c   :  { %5678 = vmatpush3.msra.mxu1 %v7650_v53  ;;  %5695 = vmatpush3.msra.mxu0 %v7655_v54 }
 0xa0d   :  { %5679 = vmatprep.subr.mxu1 %v8025_v48  ;;  %5696 = vmatprep.subr.mxu0 %v8025_v48 }
 0xa0e   :  { %5680 = vmatpush3.msra.mxu1 %v7664_v55  ;;  %5697 = vmatpush3.msra.mxu0 %v7669_v56 }
 0xa0f   :  { %5681 = vmatprep.subr.mxu1 %v8025_v48  ;;  %5698 = vmatprep.subr.mxu0 %v8025_v48 }
 0xa10   :  { %5682 = vmatpush3.msra.mxu1 %v7678_v20  ;;  %5699 = vmatpush3.msra.mxu0 %v8036_v61 }
 0xa11   :  { %5683 = vmatprep.subr.mxu1 %v8025_v48  ;;  %5700 = vmatprep.subr.mxu0 %v8025_v48 }
 0xa12   :  { %5684 = vmatpush3.msra.mxu1 %v8037_v63  ;;  %5701 = vmatpush3.msra.mxu0 %v7697_v29 }
 0xa13   :  { %5686 = vmatmul.mubr.msk.f32.vlgmr.msra.gmra.mxu1 %vm3375_vm13, %v4321_v62  ;;  %5702 = vmatprep.subr.mxu0 %v8025_v48 }
 0xa14   :  { %5707 = vmatprep.subr.mxu1 %v8025_v48  ;;  %5703 = vmatpush3.msra.mxu0 %v7707_v21 }
 0xa15   :  { %5704 = vmatprep.mubr.msk.f32.mxu0 %vm5858_vm8, %v8025_v48  ;;  %5708 = vmatpush3.msk.msra.mxu1 %vm136_vm0, %v4857_v1 }
 0xa16   :  { %5705 = vmatmul.mubr.msk.f32.vlgmr.msra.gmra.mxu0 %vm3375_vm13, %v4406_v46  ;;  %5709 = vmatprep.subr.mxu1 %v8025_v48 }
 0xa17   :  { %5710 = vmatpush3.msra.mxu1 %v7722_v22  ;;  %5723 = vmatprep.mubr.msk.f32.mxu1 %vm5858_vm8, %v8025_v48 }
 0xa18   :  { %5711 = vmatprep.subr.mxu1 %v8025_v48 }
 0xa19   :  { %5712 = vmatpush3.msra.mxu1 %v7734_v9 }
 0xa1a   :  { %5713 = vmatprep.subr.mxu1 %v8025_v48 }
 0xa1b   :  { %5714 = vmatpush3.msra.mxu1 %v7744_v57 }
 0xa1c   :  { %5715 = vmatprep.subr.mxu1 %v8025_v48 }
 0xa1d   :  { %5716 = vmatpush3.msra.mxu1 %v7753_v13 }
 0xa1e   :  { %5717 = vmatprep.subr.mxu1 %v8025_v48 }
 0xa1f   :  { %5718 = vmatpush3.msra.mxu1 %v7762_v41 }
 0xa20   :  { %5719 = vmatprep.subr.mxu1 %v8025_v48 }
 0xa21   :  { %5720 = vmatpush3.msra.mxu1 %v7771_v23 }
 0xa22   :  { %5721 = vmatprep.subr.mxu1 %v8025_v48 }
 0xa23   :  { %5722 = vmatpush3.msra.mxu1 %v7780_v31 }
 0xa24   :  { %5724 = vmatmul.mubr.msk.f32.vlgmr.msra.gmra.mxu1 %vm3375_vm13, %v4491_v3 }
 0xac3   :  { %v4223_v5 = vpop.f32.mrf.mxu1 }
 0xac4   :  { %v4227_v53 = vadd.f32 %v4223_v5, %v7872_v12 }
 0xac5   :  { %v5649_v19 = vpop.f32.mrf.mxu1  ;;  %v4308_v17 = vpop.f32.mrf.mxu0 }
 0xac6   :  { %v4312_v54 = vadd.f32 %v4308_v17, %v4227_v53 }
 0xac7   :  { %v5668_v33 = vpop.f32.mrf.mxu0 }
 0xad3   :  { %v4393_v39 = vpop.f32.mrf.mxu1 }
 0xad4   :  { %v4397_v55 = vadd.f32 %v4393_v39, %v4312_v54 }
 0xad5   :  { %v5687_v15 = vpop.f32.mrf.mxu1 }
 0xad6   :  { %v4478_v51 = vpop.f32.mrf.mxu0 }
 0xad7   :  { %v4482_v48 = vadd.f32 %v4478_v51, %v4397_v55 }
 0xad8   :  { %v5706_v52 = vpop.f32.mrf.mxu0 }
 0xae4   :  { %v4563_v56 = vpop.f32.mrf.mxu1 }
 0xae5   :  { %v4567_v20 = vadd.f32 %v4563_v56, %v4482_v48 }
 0xae6   :  { %v5725_v22 = vpop.f32.mrf.mxu1 }
 0xae7   :  { %4568 = vst.msk [vmem:[#allocation10 + $0x1] sm:$0x1] %vm3797_vm14, %v4567_v20 }
 0xae8   :  { %5833 = shalt.err (!%p5830_p10)
}
 0xae9   :  { %4578 = dma.vmem_to_hbm [thread:$0]  %s4576_s25, 32, %s8004_s13, [#allocation4]  }
 0xaea   :  { %5848 = dma.done.wait [#allocation4], 32  }
 0xaeb   :  { %5849 = vsyncadd [#allocation4], 4294967264 }
 0xaec   :  { %4582 = vsyncpa [#allocation3], 1 }
 0xaed   :  { %4583 = vsyncpa [#allocation6], 1 }
 0xaee   :  { %4584 = vsyncpa [#allocation9], 1 }
 0xaef   :  { %4585 = vsyncpa [#allocation4], 1 }

</bundles_post_ra>
